<compile_context>
chip_gen: v7x
topology: tpu7x:2x2x1
jax: 0.10.0
libtpu: 0.0.40
codegen_flags: <defaults>
</compile_context>

<pallas_src>
import jax
import jax.numpy as jnp
from jax.experimental import pallas as pl
from jax.experimental.pallas import tpu as pltpu

# ---------------- problem sizes (small, consistent with the module) ----------------
B, U_DIM, X, Y = 2, 4, 16, 16      # u0: (B, u_dim, X, Y)
Z_DIM = 8                          # latent dim
T = 8                              # number of time points (xi last dim)
HID = 128                          # readout hidden size (nn.Linear(z_dim, 128))

Z_PAD = 16                         # latent dim zero-padded to native bf16 sublane tile
U_IN_PAD = 16                      # lift input dim zero-padded (native bf16 contraction)
U_OUT_PAD = 8                      # readout output rows padded to a full sublane group


def _num_row_tiles():
    """2 row tiles only where a second TensorCore exists (megacore); else 1."""
    try:
        kind = jax.devices()[0].device_kind.lower()
    except Exception:  # pragma: no cover
        return 1
    return 2 if any(tag in kind for tag in ("v4", "v5p", "v7", "7x")) else 1


# ---------------------------------- kernel ----------------------------------------


def make_fused_kernel(n_steps, dt):
    """lift -> n_steps of explicit Euler on pde_func (BN folded) -> batched readout."""
    bf16 = jnp.bfloat16

    def fused_kernel(uT_ref, lwT_ref, lbT_ref, cwT_ref, cbT_ref,
                     w1T_ref, b1T_ref, w2T_ref, b2T_ref, o_ref, zs_ref):
        zp = cwT_ref.shape[0]
        tm = uT_ref.shape[1]

        # Hoist weight/bias loads (and the loop bias broadcast) out of the unrolled
        # time loop — JAX does not CSE re-emitted loads / broadcast_in_dim's.
        cw = cwT_ref[...]                                     # (Z_PAD, Z_PAD) bf16
        cb = jnp.broadcast_to(cbT_ref[...], (zp, tm))         # (Z_PAD, tm) f32, once

        # lift: z^T = lift_w^T @ u^T + b^T   (rows on lanes -> full-lane VPU/EUP)
        zT = (jnp.dot(lwT_ref[...], uT_ref[...].astype(bf16),
                      preferred_element_type=jnp.float32)
              + lbT_ref[...])                                 # (Z_PAD, tm) f32

        # Unrolled explicit-Euler time loop; only the (tiny, weight-stationary)
        # conv matmul stays inside.  Elementwise math stays f32.
        for t in range(n_steps):
            pre = jnp.dot(cw, zT.astype(bf16),
                          preferred_element_type=jnp.float32) + cb
            zT = zT + dt * jnp.tanh(pre)
            # Stash z_t (lane-concatenated over time) for the batched readout.
            zs_ref[:, t * tm:(t + 1) * tm] = zT.astype(bf16)

        # Batched 2-layer readout over all T steps at once (2 big matmuls instead of
        # 2*T tiny interleaved ones -> no per-step MXU weight reloads).
        z_all = zs_ref[...]                                   # (Z_PAD, T*tm) bf16
        h = (jnp.dot(w1T_ref[...], z_all, preferred_element_type=jnp.float32)
             + b1T_ref[...])                                  # (HID, T*tm) f32
        h = jnp.maximum(h, 0.0).astype(bf16)
        y = (jnp.dot(w2T_ref[...], h, preferred_element_type=jnp.float32)
             + b2T_ref[...])                                  # (U_OUT_PAD, T*tm) f32
        o_ref[...] = y.astype(o_ref.dtype)                    # lane-dense (>=128) store

    return fused_kernel


# --------------------------------- wrapper -----------------------------------------


def neural_pde_forward(u0, xi, params):
    """u0: (B, u_dim, X, Y) f32;  xi: (B, u_dim, X, Y, T) f32 (unused, see TODO).
       Returns ys: (B, u_dim, X, Y, T) — matches PyTorch NeuralPDE output layout."""
    b, u_dim, x, y = u0.shape
    n_steps = xi.shape[-1]
    dt = 1.0 / n_steps
    n = b * x * y

    n_tiles = _num_row_tiles()
    if n % (n_tiles * 128) != 0:
        n_tiles = 1
    tm = n // n_tiles

    bf16, f32 = jnp.bfloat16, jnp.float32
    z_dim = params["lift_w"].shape[1]
    hid = params["w1"].shape[1]
    zp, uip, uop = Z_PAD, U_IN_PAD, U_OUT_PAD

    # Fold BatchNorm (eval mode) into the 1x1 conv at trace time:
    #   pre*scale + shift == z @ (conv_w*scale) + (conv_b*scale + shift)
    cw = params["conv_w"] * params["bn_scale"]
    cb = params["conv_b"] * params["bn_scale"] + params["bn_shift"]

    # Transpose all weights into "weight @ activation" orientation, zero-pad to
    # hardware-friendly dims, and pre-cast the MXU operands to bf16 (once).
    lwT = jnp.pad(params["lift_w"].T, ((0, zp - z_dim), (0, uip - u_dim))).astype(bf16)
    lbT = jnp.pad(params["lift_b"].reshape(z_dim, 1), ((0, zp - z_dim), (0, 0)))
    cwT = jnp.pad(cw.T, ((0, zp - z_dim), (0, zp - z_dim))).astype(bf16)
    cbT = jnp.pad(cb.reshape(z_dim, 1), ((0, zp - z_dim), (0, 0)))
    w1T = jnp.pad(params["w1"].T, ((0, 0), (0, zp - z_dim))).astype(bf16)
    b1T = params["b1"].reshape(hid, 1)
    w2T = jnp.pad(params["w2"].T, ((0, uop - u_dim), (0, 0))).astype(bf16)
    b2T = jnp.pad(params["b2"].reshape(u_dim, 1), ((0, uop - u_dim), (0, 0)))

    # Rows (b, x, y) on the lane axis: (u_dim, B*X*Y), zero-padded to U_IN_PAD rows.
    uT = jnp.pad(u0.transpose(1, 0, 2, 3).reshape(u_dim, n), ((0, uip - u_dim), (0, 0)))

    flops = (2 * n * u_dim * z_dim
             + 2 * n * n_steps * (z_dim * z_dim + z_dim * hid + hid * u_dim))
    cost = pl.CostEstimate(
        flops=int(flops),
        transcendentals=int(n * n_steps * z_dim),
        bytes_accessed=int(4 * (uip * n + uop * n_steps * n) + 2 * hid * (zp + uop)))

    out = pl.pallas_call(
        make_fused_kernel(n_steps, dt),
        out_shape=jax.ShapeDtypeStruct((uop, n_tiles * n_steps * tm), f32),
        grid_spec=pltpu.PrefetchScalarGridSpec(
            num_scalar_prefetch=0,
            grid=(n_tiles,),
            in_specs=[
                pl.BlockSpec((uip, tm), lambda i: (0, i)),     # u^T rows tile (f32)
                pl.BlockSpec((zp, uip), lambda i: (0, 0)),     # lift_w^T (bf16)
                pl.BlockSpec((zp, 1), lambda i: (0, 0)),       # lift_b^T (f32)
                pl.BlockSpec((zp, zp), lambda i: (0, 0)),      # conv_w^T, BN folded (bf16)
                pl.BlockSpec((zp, 1), lambda i: (0, 0)),       # conv_b^T, BN folded (f32)
                pl.BlockSpec((hid, zp), lambda i: (0, 0)),     # readout w1^T (bf16)
                pl.BlockSpec((hid, 1), lambda i: (0, 0)),      # readout b1^T (f32)
                pl.BlockSpec((uop, hid), lambda i: (0, 0)),    # readout w2^T (bf16)
                pl.BlockSpec((uop, 1), lambda i: (0, 0)),      # readout b2^T (f32)
            ],
            out_specs=pl.BlockSpec((uop, n_steps * tm), lambda i: (0, i)),
            scratch_shapes=[pltpu.VMEM((zp, n_steps * tm), bf16)],   # z history
        ),
        compiler_params=pltpu.CompilerParams(dimension_semantics=("parallel",)),
        cost_estimate=cost,
    )(uT, lwT, lbT, cwT, cbT, w1T, b1T, w2T, b2T)

    # out[u, i*T*tm + t*tm + n_local]  ->  (B, u_dim, X, Y, T)
    ys = out[:u_dim].reshape(u_dim, n_tiles, n_steps, tm)
    ys = ys.transpose(0, 2, 1, 3).reshape(u_dim, n_steps, b, x, y)
    return ys.transpose(2, 0, 3, 4, 1)


# ------------------------------- pure-JAX reference ---------------------------------


def ref_forward(u0, n_steps, params, matmul_dtype=jnp.float32):
    """Reference forward pass.  matmul_dtype=bfloat16 mimics the kernel's MXU casts
    (bf16 operands, f32 accumulation, f32 elementwise) for a tight check."""
    dt = 1.0 / n_steps

    def mm(a, w):
        return jnp.dot(a.astype(matmul_dtype), w.astype(matmul_dtype),
                       precision=jax.lax.Precision.HIGHEST,
                       preferred_element_type=jnp.float32)

    b, u_dim, x, y = u0.shape
    n = b * x * y
    u_rows = u0.transpose(0, 2, 3, 1).reshape(n, u_dim)
    z = mm(u_rows, params["lift_w"]) + params["lift_b"]
    cw = params["conv_w"] * params["bn_scale"]
    cb = params["conv_b"] * params["bn_scale"] + params["bn_shift"]
    zs = []
    for _ in range(n_steps):
        pre = mm(z, cw) + cb
        z = z + dt * jnp.tanh(pre)
        zs.append(z)
    zs = jnp.stack(zs, axis=0)                                    # (T, N, Z)
    h = jnp.maximum(mm(zs, params["w1"]) + params["b1"], 0.0)
    yy = mm(h, params["w2"]) + params["b2"]                       # (T, N, U)
    return yy.reshape(n_steps, b, x, y, u_dim).transpose(1, 4, 2, 3, 0)


# ------------------------------------ main -------------------------------------------

if __name__ == "__main__":
    key = jax.random.PRNGKey(0)
    keys = jax.random.split(key, 12)

    u0 = jax.random.normal(keys[0], (B, U_DIM, X, Y), dtype=jnp.float32)
    xi = jax.random.normal(keys[1], (B, U_DIM, X, Y, T), dtype=jnp.float32)

    # BatchNorm2d (eval mode) folded into (scale, shift).
    bn_gamma = 1.0 + 0.1 * jax.random.normal(keys[2], (1, Z_DIM), dtype=jnp.float32)
    bn_beta = 0.1 * jax.random.normal(keys[3], (1, Z_DIM), dtype=jnp.float32)
    bn_mean = jnp.zeros((1, Z_DIM), jnp.float32)
    bn_var = jnp.ones((1, Z_DIM), jnp.float32)
    bn_scale = bn_gamma / jnp.sqrt(bn_var + 1e-5)
    bn_shift = bn_beta - bn_mean * bn_scale

    params = dict(
        lift_w=0.3 * jax.random.normal(keys[4], (U_DIM, Z_DIM), dtype=jnp.float32),
        lift_b=0.1 * jax.random.normal(keys[5], (1, Z_DIM), dtype=jnp.float32),
        conv_w=0.3 * jax.random.normal(keys[6], (Z_DIM, Z_DIM), dtype=jnp.float32),  # 1x1 conv
        conv_b=0.1 * jax.random.normal(keys[7], (1, Z_DIM), dtype=jnp.float32),
        bn_scale=bn_scale,
        bn_shift=bn_shift,
        w1=0.2 * jax.random.normal(keys[8], (Z_DIM, HID), dtype=jnp.float32),
        b1=0.1 * jax.random.normal(keys[9], (1, HID), dtype=jnp.float32),
        w2=0.2 * jax.random.normal(keys[10], (HID, U_DIM), dtype=jnp.float32),
        b2=0.1 * jax.random.normal(keys[11], (1, U_DIM), dtype=jnp.float32),
    )

    fwd = jax.jit(neural_pde_forward)
    ys = jax.block_until_ready(fwd(u0, xi, params))
    assert ys.shape == (B, U_DIM, X, Y, T), ys.shape

    # Tight check vs a reference that mimics the kernel's bf16 MXU casts.
    ys_ref_bf16 = ref_forward(u0, T, params, matmul_dtype=jnp.bfloat16)
    err_bf16 = float(jnp.max(jnp.abs(ys - ys_ref_bf16)))
    assert jnp.allclose(ys, ys_ref_bf16, rtol=1e-2, atol=1e-2), err_bf16

    # Loose sanity check vs the pure-f32 reference (kernel uses bf16 MXU inputs).
    ys_ref_f32 = ref_forward(u0, T, params, matmul_dtype=jnp.float32)
    err_f32 = float(jnp.max(jnp.abs(ys - ys_ref_f32)))
    assert jnp.allclose(ys, ys_ref_f32, rtol=1e-1, atol=1e-1), err_f32

    print("KERNEL_OK")
</pallas_src>

<mosaic_0001>
module attributes {stable_mosaic.version = 11 : i64} {
  func.func @fused_kernel(%arg0: i32, %arg1: memref<16x512xf32, #tpu.memory_space<vmem>>, %arg2: memref<16x16xbf16, #tpu.memory_space<vmem>>, %arg3: memref<16x1xf32, #tpu.memory_space<vmem>>, %arg4: memref<16x16xbf16, #tpu.memory_space<vmem>>, %arg5: memref<16x1xf32, #tpu.memory_space<vmem>>, %arg6: memref<128x16xbf16, #tpu.memory_space<vmem>>, %arg7: memref<128x1xf32, #tpu.memory_space<vmem>>, %arg8: memref<8x128xbf16, #tpu.memory_space<vmem>>, %arg9: memref<8x1xf32, #tpu.memory_space<vmem>>, %arg10: memref<8x4096xf32, #tpu.memory_space<vmem>>, %arg11: memref<16x4096xbf16, #tpu.memory_space<vmem>>) attributes {dimension_semantics = [#tpu.dimension_semantics<parallel>], iteration_bounds = array<i64: 1>, scalar_prefetch = 0 : i64, scratch_operands = 1 : i64, tpu.core_type = #tpu.core_type<tc>, window_params = [{transform_indices = @transform_0, window_bounds = array<i64: 16, 512>}, {pipeline_mode = #tpu.pipeline_mode<synchronous>, transform_indices = @transform_1, window_bounds = array<i64: 16, 16>}, {pipeline_mode = #tpu.pipeline_mode<synchronous>, transform_indices = @transform_2, window_bounds = array<i64: 16, 1>}, {pipeline_mode = #tpu.pipeline_mode<synchronous>, transform_indices = @transform_3, window_bounds = array<i64: 16, 16>}, {pipeline_mode = #tpu.pipeline_mode<synchronous>, transform_indices = @transform_4, window_bounds = array<i64: 16, 1>}, {pipeline_mode = #tpu.pipeline_mode<synchronous>, transform_indices = @transform_5, window_bounds = array<i64: 128, 16>}, {pipeline_mode = #tpu.pipeline_mode<synchronous>, transform_indices = @transform_6, window_bounds = array<i64: 128, 1>}, {pipeline_mode = #tpu.pipeline_mode<synchronous>, transform_indices = @transform_7, window_bounds = array<i64: 8, 128>}, {pipeline_mode = #tpu.pipeline_mode<synchronous>, transform_indices = @transform_8, window_bounds = array<i64: 8, 1>}, {transform_indices = @transform_9, window_bounds = array<i64: 8, 4096>}]} {
    %c0 = arith.constant 0 : index
    %c0_0 = arith.constant 0 : index
    %0 = vector.load %arg4[%c0, %c0_0] : memref<16x16xbf16, #tpu.memory_space<vmem>>, vector<16x16xbf16>
    %c0_1 = arith.constant 0 : index
    %c0_2 = arith.constant 0 : index
    %1 = vector.load %arg5[%c0_1, %c0_2] : memref<16x1xf32, #tpu.memory_space<vmem>>, vector<16x1xf32>
    %2 = vector.shape_cast %1 : vector<16x1xf32> to vector<16x1xf32>
    %3 = vector.broadcast %2 : vector<16x1xf32> to vector<16x512xf32>
    %c0_3 = arith.constant 0 : index
    %c0_4 = arith.constant 0 : index
    %4 = vector.load %arg2[%c0_3, %c0_4] : memref<16x16xbf16, #tpu.memory_space<vmem>>, vector<16x16xbf16>
    %c0_5 = arith.constant 0 : index
    %c0_6 = arith.constant 0 : index
    %5 = vector.load %arg1[%c0_5, %c0_6] : memref<16x512xf32, #tpu.memory_space<vmem>>, vector<16x512xf32>
    %6 = arith.truncf %5 : vector<16x512xf32> to vector<16x512xbf16>
    %cst = arith.constant dense<0.000000e+00> : vector<16x512xf32>
    %7 = tpu.matmul %4, %6, %cst {dimension_numbers = #tpu.dot_dimension_numbers<[1], [0], [0], [1], [0, 0, 1, 1], [], []>} : vector<16x16xbf16>, vector<16x512xbf16>, vector<16x512xf32> -> vector<16x512xf32>
    %c0_7 = arith.constant 0 : index
    %c0_8 = arith.constant 0 : index
    %8 = vector.load %arg3[%c0_7, %c0_8] : memref<16x1xf32, #tpu.memory_space<vmem>>, vector<16x1xf32>
    %9 = vector.broadcast %8 : vector<16x1xf32> to vector<16x512xf32>
    %10 = arith.addf %7, %9 : vector<16x512xf32>
    %11 = arith.truncf %10 : vector<16x512xf32> to vector<16x512xbf16>
    %cst_9 = arith.constant dense<0.000000e+00> : vector<16x512xf32>
    %12 = tpu.matmul %0, %11, %cst_9 {dimension_numbers = #tpu.dot_dimension_numbers<[1], [0], [0], [1], [0, 0, 1, 1], [], []>} : vector<16x16xbf16>, vector<16x512xbf16>, vector<16x512xf32> -> vector<16x512xf32>
    %13 = arith.addf %12, %3 : vector<16x512xf32>
    %14 = math.tanh %13 : vector<16x512xf32>
    %cst_10 = arith.constant 1.250000e-01 : f32
    %15 = vector.broadcast %cst_10 : f32 to vector<16x512xf32>
    %16 = arith.mulf %15, %14 : vector<16x512xf32>
    %17 = arith.addf %10, %16 : vector<16x512xf32>
    %18 = arith.truncf %17 : vector<16x512xf32> to vector<16x512xbf16>
    %c0_11 = arith.constant 0 : index
    %c0_12 = arith.constant 0 : index
    %19 = vector.load %arg11[%c0_11, %c0_12] : memref<16x4096xbf16, #tpu.memory_space<vmem>>, vector<16x512xbf16>
    tpu.vector_store %arg11[%c0_11, %c0_12], %18 {strides = array<i32>} : memref<16x4096xbf16, #tpu.memory_space<vmem>>, vector<16x512xbf16>,
    %20 = arith.truncf %17 : vector<16x512xf32> to vector<16x512xbf16>
    %cst_13 = arith.constant dense<0.000000e+00> : vector<16x512xf32>
    %21 = tpu.matmul %0, %20, %cst_13 {dimension_numbers = #tpu.dot_dimension_numbers<[1], [0], [0], [1], [0, 0, 1, 1], [], []>} : vector<16x16xbf16>, vector<16x512xbf16>, vector<16x512xf32> -> vector<16x512xf32>
    %22 = arith.addf %21, %3 : vector<16x512xf32>
    %23 = math.tanh %22 : vector<16x512xf32>
    %cst_14 = arith.constant 1.250000e-01 : f32
    %24 = vector.broadcast %cst_14 : f32 to vector<16x512xf32>
    %25 = arith.mulf %24, %23 : vector<16x512xf32>
    %26 = arith.addf %17, %25 : vector<16x512xf32>
    %27 = arith.truncf %26 : vector<16x512xf32> to vector<16x512xbf16>
    %c0_15 = arith.constant 0 : index
    %c512 = arith.constant 512 : index
    %28 = vector.load %arg11[%c0_15, %c512] : memref<16x4096xbf16, #tpu.memory_space<vmem>>, vector<16x512xbf16>
    tpu.vector_store %arg11[%c0_15, %c512], %27 {strides = array<i32>} : memref<16x4096xbf16, #tpu.memory_space<vmem>>, vector<16x512xbf16>,
    %29 = arith.truncf %26 : vector<16x512xf32> to vector<16x512xbf16>
    %cst_16 = arith.constant dense<0.000000e+00> : vector<16x512xf32>
    %30 = tpu.matmul %0, %29, %cst_16 {dimension_numbers = #tpu.dot_dimension_numbers<[1], [0], [0], [1], [0, 0, 1, 1], [], []>} : vector<16x16xbf16>, vector<16x512xbf16>, vector<16x512xf32> -> vector<16x512xf32>
    %31 = arith.addf %30, %3 : vector<16x512xf32>
    %32 = math.tanh %31 : vector<16x512xf32>
    %cst_17 = arith.constant 1.250000e-01 : f32
    %33 = vector.broadcast %cst_17 : f32 to vector<16x512xf32>
    %34 = arith.mulf %33, %32 : vector<16x512xf32>
    %35 = arith.addf %26, %34 : vector<16x512xf32>
    %36 = arith.truncf %35 : vector<16x512xf32> to vector<16x512xbf16>
    %c0_18 = arith.constant 0 : index
    %c1024 = arith.constant 1024 : index
    %37 = vector.load %arg11[%c0_18, %c1024] : memref<16x4096xbf16, #tpu.memory_space<vmem>>, vector<16x512xbf16>
    tpu.vector_store %arg11[%c0_18, %c1024], %36 {strides = array<i32>} : memref<16x4096xbf16, #tpu.memory_space<vmem>>, vector<16x512xbf16>,
    %38 = arith.truncf %35 : vector<16x512xf32> to vector<16x512xbf16>
    %cst_19 = arith.constant dense<0.000000e+00> : vector<16x512xf32>
    %39 = tpu.matmul %0, %38, %cst_19 {dimension_numbers = #tpu.dot_dimension_numbers<[1], [0], [0], [1], [0, 0, 1, 1], [], []>} : vector<16x16xbf16>, vector<16x512xbf16>, vector<16x512xf32> -> vector<16x512xf32>
    %40 = arith.addf %39, %3 : vector<16x512xf32>
    %41 = math.tanh %40 : vector<16x512xf32>
    %cst_20 = arith.constant 1.250000e-01 : f32
    %42 = vector.broadcast %cst_20 : f32 to vector<16x512xf32>
    %43 = arith.mulf %42, %41 : vector<16x512xf32>
    %44 = arith.addf %35, %43 : vector<16x512xf32>
    %45 = arith.truncf %44 : vector<16x512xf32> to vector<16x512xbf16>
    %c0_21 = arith.constant 0 : index
    %c1536 = arith.constant 1536 : index
    %46 = vector.load %arg11[%c0_21, %c1536] : memref<16x4096xbf16, #tpu.memory_space<vmem>>, vector<16x512xbf16>
    tpu.vector_store %arg11[%c0_21, %c1536], %45 {strides = array<i32>} : memref<16x4096xbf16, #tpu.memory_space<vmem>>, vector<16x512xbf16>,
    %47 = arith.truncf %44 : vector<16x512xf32> to vector<16x512xbf16>
    %cst_22 = arith.constant dense<0.000000e+00> : vector<16x512xf32>
    %48 = tpu.matmul %0, %47, %cst_22 {dimension_numbers = #tpu.dot_dimension_numbers<[1], [0], [0], [1], [0, 0, 1, 1], [], []>} : vector<16x16xbf16>, vector<16x512xbf16>, vector<16x512xf32> -> vector<16x512xf32>
    %49 = arith.addf %48, %3 : vector<16x512xf32>
    %50 = math.tanh %49 : vector<16x512xf32>
    %cst_23 = arith.constant 1.250000e-01 : f32
    %51 = vector.broadcast %cst_23 : f32 to vector<16x512xf32>
    %52 = arith.mulf %51, %50 : vector<16x512xf32>
    %53 = arith.addf %44, %52 : vector<16x512xf32>
    %54 = arith.truncf %53 : vector<16x512xf32> to vector<16x512xbf16>
    %c0_24 = arith.constant 0 : index
    %c2048 = arith.constant 2048 : index
    %55 = vector.load %arg11[%c0_24, %c2048] : memref<16x4096xbf16, #tpu.memory_space<vmem>>, vector<16x512xbf16>
    tpu.vector_store %arg11[%c0_24, %c2048], %54 {strides = array<i32>} : memref<16x4096xbf16, #tpu.memory_space<vmem>>, vector<16x512xbf16>,
    %56 = arith.truncf %53 : vector<16x512xf32> to vector<16x512xbf16>
    %cst_25 = arith.constant dense<0.000000e+00> : vector<16x512xf32>
    %57 = tpu.matmul %0, %56, %cst_25 {dimension_numbers = #tpu.dot_dimension_numbers<[1], [0], [0], [1], [0, 0, 1, 1], [], []>} : vector<16x16xbf16>, vector<16x512xbf16>, vector<16x512xf32> -> vector<16x512xf32>
    %58 = arith.addf %57, %3 : vector<16x512xf32>
    %59 = math.tanh %58 : vector<16x512xf32>
    %cst_26 = arith.constant 1.250000e-01 : f32
    %60 = vector.broadcast %cst_26 : f32 to vector<16x512xf32>
    %61 = arith.mulf %60, %59 : vector<16x512xf32>
    %62 = arith.addf %53, %61 : vector<16x512xf32>
    %63 = arith.truncf %62 : vector<16x512xf32> to vector<16x512xbf16>
    %c0_27 = arith.constant 0 : index
    %c2560 = arith.constant 2560 : index
    %64 = vector.load %arg11[%c0_27, %c2560] : memref<16x4096xbf16, #tpu.memory_space<vmem>>, vector<16x512xbf16>
    tpu.vector_store %arg11[%c0_27, %c2560], %63 {strides = array<i32>} : memref<16x4096xbf16, #tpu.memory_space<vmem>>, vector<16x512xbf16>,
    %65 = arith.truncf %62 : vector<16x512xf32> to vector<16x512xbf16>
    %cst_28 = arith.constant dense<0.000000e+00> : vector<16x512xf32>
    %66 = tpu.matmul %0, %65, %cst_28 {dimension_numbers = #tpu.dot_dimension_numbers<[1], [0], [0], [1], [0, 0, 1, 1], [], []>} : vector<16x16xbf16>, vector<16x512xbf16>, vector<16x512xf32> -> vector<16x512xf32>
    %67 = arith.addf %66, %3 : vector<16x512xf32>
    %68 = math.tanh %67 : vector<16x512xf32>
    %cst_29 = arith.constant 1.250000e-01 : f32
    %69 = vector.broadcast %cst_29 : f32 to vector<16x512xf32>
    %70 = arith.mulf %69, %68 : vector<16x512xf32>
    %71 = arith.addf %62, %70 : vector<16x512xf32>
    %72 = arith.truncf %71 : vector<16x512xf32> to vector<16x512xbf16>
    %c0_30 = arith.constant 0 : index
    %c3072 = arith.constant 3072 : index
    %73 = vector.load %arg11[%c0_30, %c3072] : memref<16x4096xbf16, #tpu.memory_space<vmem>>, vector<16x512xbf16>
    tpu.vector_store %arg11[%c0_30, %c3072], %72 {strides = array<i32>} : memref<16x4096xbf16, #tpu.memory_space<vmem>>, vector<16x512xbf16>,
    %74 = arith.truncf %71 : vector<16x512xf32> to vector<16x512xbf16>
    %cst_31 = arith.constant dense<0.000000e+00> : vector<16x512xf32>
    %75 = tpu.matmul %0, %74, %cst_31 {dimension_numbers = #tpu.dot_dimension_numbers<[1], [0], [0], [1], [0, 0, 1, 1], [], []>} : vector<16x16xbf16>, vector<16x512xbf16>, vector<16x512xf32> -> vector<16x512xf32>
    %76 = arith.addf %75, %3 : vector<16x512xf32>
    %77 = math.tanh %76 : vector<16x512xf32>
    %cst_32 = arith.constant 1.250000e-01 : f32
    %78 = vector.broadcast %cst_32 : f32 to vector<16x512xf32>
    %79 = arith.mulf %78, %77 : vector<16x512xf32>
    %80 = arith.addf %71, %79 : vector<16x512xf32>
    %81 = arith.truncf %80 : vector<16x512xf32> to vector<16x512xbf16>
    %c0_33 = arith.constant 0 : index
    %c3584 = arith.constant 3584 : index
    %82 = vector.load %arg11[%c0_33, %c3584] : memref<16x4096xbf16, #tpu.memory_space<vmem>>, vector<16x512xbf16>
    tpu.vector_store %arg11[%c0_33, %c3584], %81 {strides = array<i32>} : memref<16x4096xbf16, #tpu.memory_space<vmem>>, vector<16x512xbf16>,
    %c0_34 = arith.constant 0 : index
    %c0_35 = arith.constant 0 : index
    %83 = vector.load %arg11[%c0_34, %c0_35] : memref<16x4096xbf16, #tpu.memory_space<vmem>>, vector<16x4096xbf16>
    %c0_36 = arith.constant 0 : index
    %c0_37 = arith.constant 0 : index
    %84 = vector.load %arg6[%c0_36, %c0_37] : memref<128x16xbf16, #tpu.memory_space<vmem>>, vector<128x16xbf16>
    %cst_38 = arith.constant dense<0.000000e+00> : vector<128x4096xf32>
    %85 = tpu.matmul %84, %83, %cst_38 {dimension_numbers = #tpu.dot_dimension_numbers<[1], [0], [0], [1], [0, 0, 1, 1], [], []>} : vector<128x16xbf16>, vector<16x4096xbf16>, vector<128x4096xf32> -> vector<128x4096xf32>
    %c0_39 = arith.constant 0 : index
    %c0_40 = arith.constant 0 : index
    %86 = vector.load %arg7[%c0_39, %c0_40] : memref<128x1xf32, #tpu.memory_space<vmem>>, vector<128x1xf32>
    %87 = vector.broadcast %86 : vector<128x1xf32> to vector<128x4096xf32>
    %88 = arith.addf %85, %87 : vector<128x4096xf32>
    %cst_41 = arith.constant 0.000000e+00 : f32
    %89 = vector.broadcast %cst_41 : f32 to vector<128x4096xf32>
    %90 = arith.maximumf %88, %89 : vector<128x4096xf32>
    %91 = arith.truncf %90 : vector<128x4096xf32> to vector<128x4096xbf16>
    %c0_42 = arith.constant 0 : index
    %c0_43 = arith.constant 0 : index
    %92 = vector.load %arg8[%c0_42, %c0_43] : memref<8x128xbf16, #tpu.memory_space<vmem>>, vector<8x128xbf16>
    %cst_44 = arith.constant dense<0.000000e+00> : vector<8x4096xf32>
    %93 = tpu.matmul %92, %91, %cst_44 {dimension_numbers = #tpu.dot_dimension_numbers<[1], [0], [0], [1], [0, 0, 1, 1], [], []>} : vector<8x128xbf16>, vector<128x4096xbf16>, vector<8x4096xf32> -> vector<8x4096xf32>
    %c0_45 = arith.constant 0 : index
    %c0_46 = arith.constant 0 : index
    %94 = vector.load %arg9[%c0_45, %c0_46] : memref<8x1xf32, #tpu.memory_space<vmem>>, vector<8x1xf32>
    %95 = vector.broadcast %94 : vector<8x1xf32> to vector<8x4096xf32>
    %96 = arith.addf %93, %95 : vector<8x4096xf32>
    %c0_47 = arith.constant 0 : index
    %c0_48 = arith.constant 0 : index
    %97 = vector.load %arg10[%c0_47, %c0_48] : memref<8x4096xf32, #tpu.memory_space<vmem>>, vector<8x4096xf32>
    tpu.vector_store %arg10[%c0_47, %c0_48], %96 {strides = array<i32>} : memref<8x4096xf32, #tpu.memory_space<vmem>>, vector<8x4096xf32>,
    return
  }
  func.func @transform_0(%arg0: i32) -> (i32, i32) {
    %c0_i32 = arith.constant 0 : i32
    %c0_i32_0 = arith.constant 0 : i32
    return %c0_i32, %arg0 : i32, i32
  }
  func.func @transform_1(%arg0: i32) -> (i32, i32) {
    %c0_i32 = arith.constant 0 : i32
    %c0_i32_0 = arith.constant 0 : i32
    %c0_i32_1 = arith.constant 0 : i32
    return %c0_i32, %c0_i32_0 : i32, i32
  }
  func.func @transform_2(%arg0: i32) -> (i32, i32) {
    %c0_i32 = arith.constant 0 : i32
    %c0_i32_0 = arith.constant 0 : i32
    %c0_i32_1 = arith.constant 0 : i32
    return %c0_i32, %c0_i32_0 : i32, i32
  }
  func.func @transform_3(%arg0: i32) -> (i32, i32) {
    %c0_i32 = arith.constant 0 : i32
    %c0_i32_0 = arith.constant 0 : i32
    %c0_i32_1 = arith.constant 0 : i32
    return %c0_i32, %c0_i32_0 : i32, i32
  }
  func.func @transform_4(%arg0: i32) -> (i32, i32) {
    %c0_i32 = arith.constant 0 : i32
    %c0_i32_0 = arith.constant 0 : i32
    %c0_i32_1 = arith.constant 0 : i32
    return %c0_i32, %c0_i32_0 : i32, i32
  }
  func.func @transform_5(%arg0: i32) -> (i32, i32) {
    %c0_i32 = arith.constant 0 : i32
    %c0_i32_0 = arith.constant 0 : i32
    %c0_i32_1 = arith.constant 0 : i32
    return %c0_i32, %c0_i32_0 : i32, i32
  }
  func.func @transform_6(%arg0: i32) -> (i32, i32) {
    %c0_i32 = arith.constant 0 : i32
    %c0_i32_0 = arith.constant 0 : i32
    %c0_i32_1 = arith.constant 0 : i32
    return %c0_i32, %c0_i32_0 : i32, i32
  }
  func.func @transform_7(%arg0: i32) -> (i32, i32) {
    %c0_i32 = arith.constant 0 : i32
    %c0_i32_0 = arith.constant 0 : i32
    %c0_i32_1 = arith.constant 0 : i32
    return %c0_i32, %c0_i32_0 : i32, i32
  }
  func.func @transform_8(%arg0: i32) -> (i32, i32) {
    %c0_i32 = arith.constant 0 : i32
    %c0_i32_0 = arith.constant 0 : i32
    %c0_i32_1 = arith.constant 0 : i32
    return %c0_i32, %c0_i32_0 : i32, i32
  }
  func.func @transform_9(%arg0: i32) -> (i32, i32) {
    %c0_i32 = arith.constant 0 : i32
    %c0_i32_0 = arith.constant 0 : i32
    return %c0_i32, %arg0 : i32, i32
  }
}

</mosaic_0001>

<bundles_post_ra>
// kernel: neural_pde_forward.1
= control target key start
LH: loop header
LB: loop body
LE: loop exit
PB: predicated region body
PF: predicated region fallthrough
CT: control target
= control target key end

     0   :  { %v7358_v3 = vmov 0   ;;  %vm78_vm0 = vcmask 130048   ;;  %s7348_s0 = inlined_call_operand.vmem [shape: f32[16,512], index: 0, kind: input, shape index: {}]   ;;  %s7349_s1 = inlined_call_operand.vmem [shape: bf16[16,16], index: 1, kind: input, shape index: {}]   ;;  %s7350_s2 = inlined_call_operand.vmem [shape: f32[16,1], index: 2, kind: input, shape index: {}]   ;;  %s7351_s6 = inlined_call_operand.vmem [shape: f32[128,1], index: 6, kind: input, shape index: {}]   ;;  %s7352_s8 = inlined_call_operand.vmem [shape: f32[8,1], index: 8, kind: input, shape index: {}]   ;;  %s7353_s3 = inlined_call_operand.vmem [shape: bf16[16,16], index: 3, kind: input, shape index: {}]   ;;  %s7354_s4 = inlined_call_operand.vmem [shape: f32[16,1], index: 4, kind: input, shape index: {}]   ;;  %s7355_s5 = inlined_call_operand.vmem [shape: bf16[128,16], index: 5, kind: input, shape index: {}]   ;;  %s7356_s7 = inlined_call_operand.vmem [shape: bf16[8,128], index: 7, kind: input, shape index: {}]   ;;  %s7357_s9 = inlined_call_operand.vmem [shape: f32[8,4096], index: 9, kind: output, shape index: {}]  }
   0x1   :  { %v50_v0 = vld [vmem:[%s7348_s0 + $0x8] sm:$0xff]  ;;  %v52_v2 = vld [vmem:[%s7348_s0 + $0x18] sm:$0xff]  ;;  %114 = vmatprep.mubr.bf16.mxu0 %v7358_v3  ;;  %157 = vmatprep.mubr.bf16.mxu1 %v7358_v3  ;;  %v49_v6 = vld [vmem:[%s7348_s0] sm:$0xff] }
   0x2   :  { %v54_v1 = vld [vmem:[%s7348_s0 + $0x28] sm:$0xff]  ;;  %v56_v5 = vld [vmem:[%s7348_s0 + $0x38] sm:$0xff]  ;;  %v53_v7 = vld [vmem:[%s7348_s0 + $0x20] sm:$0xff]  ;;  %4764 = vset.pattern.permute.xlu0 %v7358_v3  ;;  %4765 = vset.pattern.permute.xlu1 %v7358_v3 }
   0x3   :  { %v58_v4 = vpack.c.bf16 %v54_v1, %v50_v0  ;;  %v60_v8 = vpack.c.bf16 %v56_v5, %v52_v2  ;;  %v57_v9 = vpack.c.bf16 %v53_v7, %v49_v6  ;;  %v51_v10 = vld [vmem:[%s7348_s0 + $0x10] sm:$0xff]  ;;  %v4766_v13 = vld [vmem:[%s7349_s1] sm:$0xff]   ;;  %v62_v15 = vld [vmem:[%s7350_s2 + $0x8] sm:$0xff] }
   0x4   :  { %v55_v11 = vld [vmem:[%s7348_s0 + $0x30] sm:$0xff]  ;;  %v61_v14 = vld [vmem:[%s7350_s2] sm:$0xff]  ;;  %v36_v26 = vld [vmem:[%s7354_s4 + $0x8] sm:$0xff] }
   0x5   :  { %82 = vmatprep.subr.bf16.mxu0 %v58_v4  ;;  %v59_v12 = vpack.c.bf16 %v55_v11, %v51_v10  ;;  %125 = vmatprep.subr.bf16.mxu1 %v60_v8  ;;  %v1172_v16 = vld [vmem:[%s7351_s6] sm:$0xff]  ;;  %v1174_v17 = vld [vmem:[%s7351_s6 + $0x10] sm:$0xff]  ;;  %v1173_v27 = vld [vmem:[%s7351_s6 + $0x8] sm:$0xff] }
   0x6   :  { %83 = vmatpush1.bf16.msra.mxu0 %v57_v9  ;;  %65 = vperm.xlu0 %4764, %v61_v14   ;;  %v1176_v18 = vld [vmem:[%s7351_s6 + $0x20] sm:$0xff]  ;;  %v1178_v19 = vld [vmem:[%s7351_s6 + $0x30] sm:$0xff]  ;;  %v1175_v28 = vld [vmem:[%s7351_s6 + $0x18] sm:$0xff] }
   0x7   :  { %126 = vmatpush1.bf16.msra.mxu1 %v59_v12  ;;  %v1180_v20 = vld [vmem:[%s7351_s6 + $0x40] sm:$0xff]  ;;  %v1182_v21 = vld [vmem:[%s7351_s6 + $0x50] sm:$0xff]  ;;  %v1177_v29 = vld [vmem:[%s7351_s6 + $0x28] sm:$0xff] }
   0x8   :  { %v1184_v22 = vld [vmem:[%s7351_s6 + $0x60] sm:$0xff]  ;;  %v1186_v23 = vld [vmem:[%s7351_s6 + $0x70] sm:$0xff]  ;;  %v1179_v30 = vld [vmem:[%s7351_s6 + $0x38] sm:$0xff] }
   0x9   :  { %4608 = vmatmul.mubr.msk.bf16.vlgmr.msra.gmra.mrb[0].mxu0 %vm78_vm0, %v4766_v13  ;;  %v3909_v24 = vld [vmem:[%s7352_s8] sm:$0xff]  ;;  %v1181_v31 = vld [vmem:[%s7351_s6 + $0x48] sm:$0xff]  ;;  %v1183_v32 = vld [vmem:[%s7351_s6 + $0x58] sm:$0xff] }
   0xa   :  { %4609 = vmatmul.mubr.msk.bf16.vlgmr.msra.gmra.mrb[0].mxu1 %vm78_vm0, %v4766_v13  ;;  %212 = vmatprep.mubr.bf16.mxu0 %v7358_v3  ;;  %v35_v25 = vld [vmem:[%s7354_s4] sm:$0xff]  ;;  %v1185_v33 = vld [vmem:[%s7351_s6 + $0x68] sm:$0xff]  ;;  %v1187_v34 = vld [vmem:[%s7351_s6 + $0x78] sm:$0xff] }
   0xb   :  { %70 = vperm.xlu0 %4764, %v62_v15   ;;  %255 = vmatprep.mubr.bf16.mxu1 %v7358_v3  ;;  %v5097_v57 = vld [vmem:[%s7353_s3] sm:$0xff]  }
   0xc   :  { %39 = vperm.xlu1 %4765, %v35_v25  }
   0xf   :  { %1190 = vperm.xlu0 %4764, %v1172_v16  }
  0x10   :  { %44 = vperm.xlu1 %4765, %v36_v26  }
  0x13   :  { %1200 = vperm.xlu0 %4764, %v1174_v17  }
  0x14   :  { %1195 = vperm.xlu1 %4765, %v1173_v27  }
  0x17   :  { %1210 = vperm.xlu0 %4764, %v1176_v18  }
  0x18   :  { %1205 = vperm.xlu1 %4765, %v1175_v28  }
  0x1b   :  { %1220 = vperm.xlu0 %4764, %v1178_v19  }
  0x1c   :  { %1215 = vperm.xlu1 %4765, %v1177_v29  }
  0x1f   :  { %1230 = vperm.xlu0 %4764, %v1180_v20  }
  0x20   :  { %1225 = vperm.xlu1 %4765, %v1179_v30  }
  0x23   :  { %1240 = vperm.xlu0 %4764, %v1182_v21  }
  0x24   :  { %1235 = vperm.xlu1 %4765, %v1181_v31  }
  0x27   :  { %1250 = vperm.xlu0 %4764, %v1184_v22  }
  0x28   :  { %1245 = vperm.xlu1 %4765, %v1183_v32  }
  0x2b   :  { %1260 = vperm.xlu0 %4764, %v1186_v23  }
  0x2c   :  { %1255 = vperm.xlu1 %4765, %v1185_v33  }
  0x2f   :  { %3912 = vperm.xlu0 %4764, %v3909_v24  }
  0x30   :  { %1265 = vperm.xlu1 %4765, %v1187_v34  }
  0x85   :  { %v66_v35 = vpop.permute.xlu0 %65 }
  0x8a   :  { %v71_v36 = vpop.permute.xlu0 %70 }
  0x8b   :  { %v5105_v58 = vpop.permute.xlu1 %39 }
  0x8f   :  { %v5107_v59 = vpop.permute.xlu1 %44 }
  0xdc   :  { %v116_v37 = vpop.f32.mrb[0].mxu0 }
  0xdd   :  { %v159_v38 = vpop.f32.mrb[0].mxu1  ;;  %v118_v39 = vpop.f32.mrb[1].mxu0  ;;  %v5078_v49 = vadd.f32 %v116_v37, %v66_v35 }
  0xde   :  { %v161_v40 = vpop.f32.mrb[1].mxu1  ;;  %v120_v41 = vpop.f32.mrb[2].mxu0  ;;  %v5072_v45 = vadd.f32 %v118_v39, %v66_v35  ;;  %v5084_v52 = vadd.f32 %v159_v38, %v66_v35 }
  0xdf   :  { %v5070_v42 = vadd.f32 %v120_v41, %v71_v36  ;;  %v163_v43 = vpop.f32.mrb[2].mxu1  ;;  %v122_v44 = vpop.f32.mrb[3].mxu0  ;;  %v5080_v50 = vadd.f32 %v161_v40, %v66_v35 }
  0xe0   :  { %v5074_v46 = vadd.f32 %v163_v43, %v71_v36  ;;  %v5076_v47 = vadd.f32 %v122_v44, %v71_v36  ;;  %v165_v48 = vpop.f32.mrb[3].mxu1 }
  0xe1   :  { %v5082_v51 = vadd.f32 %v165_v48, %v71_v36  ;;  %v168_v54 = vpack.c.bf16 %v5070_v42, %v5078_v49 }
  0xe2   :  { %v169_v53 = vpack.c.bf16 %v5076_v47, %v5072_v45  ;;  %v170_v56 = vpack.c.bf16 %v5074_v46, %v5084_v52 }
  0xe3   :  { %v171_v55 = vpack.c.bf16 %v5082_v51, %v5080_v50 }
  0xe4   :  { %180 = vmatprep.subr.bf16.mxu0 %v169_v53 }
  0xe5   :  { %223 = vmatprep.subr.bf16.mxu1 %v171_v55  ;;  %181 = vmatpush1.bf16.msra.mxu0 %v168_v54 }
  0xe6   :  { %224 = vmatpush1.bf16.msra.mxu1 %v170_v56 }
  0xe8   :  { %4611 = vmatmul.mubr.msk.bf16.vlgmr.msra.gmra.mrb[4].mxu0 %vm78_vm0, %v5097_v57 }
  0xe9   :  { %4612 = vmatmul.mubr.msk.bf16.vlgmr.msra.gmra.mrb[4].mxu1 %vm78_vm0, %v5097_v57  ;;  %330 = vmatprep.mubr.bf16.mxu0 %v7358_v3 }
  0xea   :  { %373 = vmatprep.mubr.bf16.mxu1 %v7358_v3 }
 0x1bb   :  { %v214_v60 = vpop.f32.mrb[4].mxu0 }
 0x1bc   :  { %v215_v61 = vadd.f32 %v214_v60, %v5105_v58  ;;  %v257_v62 = vpop.f32.mrb[4].mxu1  ;;  %v216_v63 = vpop.f32.mrb[5].mxu0 }
 0x1bd   :  { %v258_v0 = vadd.f32 %v257_v62, %v5105_v58  ;;  %v217_v1 = vadd.f32 %v216_v63, %v5105_v58  ;;  %v259_v2 = vpop.f32.mrb[5].mxu1  ;;  %v218_v4 = vpop.f32.mrb[6].mxu0 }
 0x1be   :  { %4776 = vtanh.f32 %v215_v61  ;;  %v260_v5 = vadd.f32 %v259_v2, %v5105_v58  ;;  %v219_v6 = vadd.f32 %v218_v4, %v5107_v59  ;;  %v261_v7 = vpop.f32.mrb[6].mxu1  ;;  %v220_v8 = vpop.f32.mrb[7].mxu0 }
 0x1bf   :  { %4778 = vtanh.f32 %v258_v0  ;;  %v262_v9 = vadd.f32 %v261_v7, %v5107_v59  ;;  %v263_v10 = vpop.f32.mrb[7].mxu1  ;;  %v221_v11 = vadd.f32 %v220_v8, %v5107_v59 }
 0x1c0   :  { %4780 = vtanh.f32 %v217_v1  ;;  %v264_v12 = vadd.f32 %v263_v10, %v5107_v59 }
 0x1c1   :  { %4782 = vtanh.f32 %v260_v5 }
 0x1c2   :  { %4784 = vtanh.f32 %v219_v6 }
 0x1c3   :  { %4786 = vtanh.f32 %v262_v9 }
 0x1c4   :  { %4788 = vtanh.f32 %v221_v11 }
 0x1c5   :  { %4790 = vtanh.f32 %v264_v12 }
 0x1c8   :  { %v4777_v13 = vpop.eup %4776 }
 0x1c9   :  { %v4779_v14 = vpop.eup %4778  ;;  %v274_v22 = vmul.f32 0.125, %v4777_v13 }
 0x1ca   :  { %v4781_v15 = vpop.eup %4780  ;;  %v276_v26 = vmul.f32 0.125, %v4779_v14 }
 0x1cb   :  { %v4783_v16 = vpop.eup %4782  ;;  %v275_v19 = vmul.f32 0.125, %v4781_v15  ;;  %v282_v33 = vadd.f32 %v274_v22, %v5078_v49 }
 0x1cc   :  { %v4785_v17 = vpop.eup %4784  ;;  %v277_v23 = vmul.f32 0.125, %v4783_v16  ;;  %v284_v36 = vadd.f32 %v276_v26, %v5084_v52 }
 0x1cd   :  { %v4787_v18 = vpop.eup %4786  ;;  %v278_v20 = vmul.f32 0.125, %v4785_v17  ;;  %v283_v31 = vadd.f32 %v275_v19, %v5072_v45 }
 0x1ce   :  { %v4789_v21 = vpop.eup %4788  ;;  %v280_v24 = vmul.f32 0.125, %v4787_v18  ;;  %v285_v34 = vadd.f32 %v277_v23, %v5080_v50 }
 0x1cf   :  { %v4791_v25 = vpop.eup %4790  ;;  %v279_v27 = vmul.f32 0.125, %v4789_v21  ;;  %v286_v28 = vadd.f32 %v278_v20, %v5070_v42 }
 0x1d0   :  { %v281_v29 = vmul.f32 0.125, %v4791_v25  ;;  %v288_v30 = vadd.f32 %v280_v24, %v5074_v46 }
 0x1d1   :  { %v287_v32 = vadd.f32 %v279_v27, %v5076_v47  ;;  %v5129_v39 = vpack.c.bf16 %v286_v28, %v282_v33 }
 0x1d2   :  { %v289_v35 = vadd.f32 %v281_v29, %v5082_v51  ;;  %v5132_v40 = vpack.c.bf16 %v288_v30, %v284_v36 }
 0x1d3   :  { %v5125_v37 = vpack.c.bf16 %v287_v32, %v283_v31 }
 0x1d4   :  { %v5127_v38 = vpack.c.bf16 %v289_v35, %v285_v34 }
 0x1d5   :  { %298 = vmatprep.subr.bf16.mxu0 %v5125_v37 }
 0x1d6   :  { %341 = vmatprep.subr.bf16.mxu1 %v5127_v38  ;;  %299 = vmatpush1.bf16.msra.mxu0 %v5129_v39 }
 0x1d7   :  { %342 = vmatpush1.bf16.msra.mxu1 %v5132_v40 }
 0x1d9   :  { %4613 = vmatmul.mubr.msk.bf16.vlgmr.msra.gmra.mrb[8].mxu0 %vm78_vm0, %v5097_v57 }
 0x1da   :  { %4614 = vmatmul.mubr.msk.bf16.vlgmr.msra.gmra.mrb[8].mxu1 %vm78_vm0, %v5097_v57  ;;  %448 = vmatprep.mubr.bf16.mxu0 %v7358_v3 }
 0x1db   :  { %491 = vmatprep.mubr.bf16.mxu1 %v7358_v3 }
 0x2ac   :  { %v332_v41 = vpop.f32.mrb[8].mxu0 }
 0x2ad   :  { %v333_v42 = vadd.f32 %v332_v41, %v5105_v58  ;;  %v375_v43 = vpop.f32.mrb[8].mxu1  ;;  %v334_v44 = vpop.f32.mrb[9].mxu0 }
 0x2ae   :  { %v376_v45 = vadd.f32 %v375_v43, %v5105_v58  ;;  %v335_v46 = vadd.f32 %v334_v44, %v5105_v58  ;;  %v377_v47 = vpop.f32.mrb[9].mxu1  ;;  %v336_v48 = vpop.f32.mrb[10].mxu0 }
 0x2af   :  { %4792 = vtanh.f32 %v333_v42  ;;  %v378_v49 = vadd.f32 %v377_v47, %v5105_v58  ;;  %v337_v50 = vadd.f32 %v336_v48, %v5107_v59  ;;  %v379_v51 = vpop.f32.mrb[10].mxu1  ;;  %v338_v52 = vpop.f32.mrb[11].mxu0 }
 0x2b0   :  { %4794 = vtanh.f32 %v376_v45  ;;  %v380_v53 = vadd.f32 %v379_v51, %v5107_v59  ;;  %v381_v54 = vpop.f32.mrb[11].mxu1  ;;  %v339_v55 = vadd.f32 %v338_v52, %v5107_v59 }
 0x2b1   :  { %4796 = vtanh.f32 %v335_v46  ;;  %v382_v56 = vadd.f32 %v381_v54, %v5107_v59 }
 0x2b2   :  { %4798 = vtanh.f32 %v378_v49 }
 0x2b3   :  { %4800 = vtanh.f32 %v337_v50 }
 0x2b4   :  { %4802 = vtanh.f32 %v380_v53 }
 0x2b5   :  { %4804 = vtanh.f32 %v339_v55 }
 0x2b6   :  { %4806 = vtanh.f32 %v382_v56 }
 0x2b9   :  { %v4793_v60 = vpop.eup %4792 }
 0x2ba   :  { %v4795_v61 = vpop.eup %4794  ;;  %v392_v6 = vmul.f32 0.125, %v4793_v60 }
 0x2bb   :  { %v4797_v62 = vpop.eup %4796  ;;  %v394_v10 = vmul.f32 0.125, %v4795_v61 }
 0x2bc   :  { %v4799_v63 = vpop.eup %4798  ;;  %v393_v2 = vmul.f32 0.125, %v4797_v62  ;;  %v400_v17 = vadd.f32 %v392_v6, %v282_v33 }
 0x2bd   :  { %v4801_v0 = vpop.eup %4800  ;;  %v395_v7 = vmul.f32 0.125, %v4799_v63  ;;  %v402_v20 = vadd.f32 %v394_v10, %v284_v36 }
 0x2be   :  { %v4803_v1 = vpop.eup %4802  ;;  %v396_v4 = vmul.f32 0.125, %v4801_v0  ;;  %v401_v15 = vadd.f32 %v393_v2, %v283_v31 }
 0x2bf   :  { %v4805_v5 = vpop.eup %4804  ;;  %v398_v8 = vmul.f32 0.125, %v4803_v1  ;;  %v403_v18 = vadd.f32 %v395_v7, %v285_v34 }
 0x2c0   :  { %v4807_v9 = vpop.eup %4806  ;;  %v397_v11 = vmul.f32 0.125, %v4805_v5  ;;  %v404_v12 = vadd.f32 %v396_v4, %v286_v28 }
 0x2c1   :  { %v399_v13 = vmul.f32 0.125, %v4807_v9  ;;  %v406_v14 = vadd.f32 %v398_v8, %v288_v30 }
 0x2c2   :  { %v405_v16 = vadd.f32 %v397_v11, %v287_v32  ;;  %v5155_v23 = vpack.c.bf16 %v404_v12, %v400_v17 }
 0x2c3   :  { %v407_v19 = vadd.f32 %v399_v13, %v289_v35  ;;  %v5158_v24 = vpack.c.bf16 %v406_v14, %v402_v20 }
 0x2c4   :  { %v5151_v21 = vpack.c.bf16 %v405_v16, %v401_v15 }
 0x2c5   :  { %v5153_v22 = vpack.c.bf16 %v407_v19, %v403_v18 }
 0x2c6   :  { %416 = vmatprep.subr.bf16.mxu0 %v5151_v21 }
 0x2c7   :  { %459 = vmatprep.subr.bf16.mxu1 %v5153_v22  ;;  %417 = vmatpush1.bf16.msra.mxu0 %v5155_v23 }
 0x2c8   :  { %460 = vmatpush1.bf16.msra.mxu1 %v5158_v24 }
 0x2ca   :  { %4615 = vmatmul.mubr.msk.bf16.vlgmr.msra.gmra.mrb[12].mxu0 %vm78_vm0, %v5097_v57 }
 0x2cb   :  { %4616 = vmatmul.mubr.msk.bf16.vlgmr.msra.gmra.mrb[12].mxu1 %vm78_vm0, %v5097_v57  ;;  %566 = vmatprep.mubr.bf16.mxu0 %v7358_v3 }
 0x2cc   :  { %609 = vmatprep.mubr.bf16.mxu1 %v7358_v3 }
 0x39d   :  { %v450_v25 = vpop.f32.mrb[12].mxu0 }
 0x39e   :  { %v451_v26 = vadd.f32 %v450_v25, %v5105_v58  ;;  %v493_v27 = vpop.f32.mrb[12].mxu1  ;;  %v452_v28 = vpop.f32.mrb[13].mxu0 }
 0x39f   :  { %v494_v29 = vadd.f32 %v493_v27, %v5105_v58  ;;  %v453_v30 = vadd.f32 %v452_v28, %v5105_v58  ;;  %v495_v31 = vpop.f32.mrb[13].mxu1  ;;  %v454_v32 = vpop.f32.mrb[14].mxu0 }
 0x3a0   :  { %4808 = vtanh.f32 %v451_v26  ;;  %v496_v33 = vadd.f32 %v495_v31, %v5105_v58  ;;  %v455_v34 = vadd.f32 %v454_v32, %v5107_v59  ;;  %v497_v35 = vpop.f32.mrb[14].mxu1  ;;  %v456_v36 = vpop.f32.mrb[15].mxu0 }
 0x3a1   :  { %4810 = vtanh.f32 %v494_v29  ;;  %v498_v41 = vadd.f32 %v497_v35, %v5107_v59  ;;  %v499_v42 = vpop.f32.mrb[15].mxu1  ;;  %v457_v43 = vadd.f32 %v456_v36, %v5107_v59 }
 0x3a2   :  { %4812 = vtanh.f32 %v453_v30  ;;  %v500_v44 = vadd.f32 %v499_v42, %v5107_v59 }
 0x3a3   :  { %4814 = vtanh.f32 %v496_v33 }
 0x3a4   :  { %4816 = vtanh.f32 %v455_v34 }
 0x3a5   :  { %4818 = vtanh.f32 %v498_v41 }
 0x3a6   :  { %4820 = vtanh.f32 %v457_v43 }
 0x3a7   :  { %4822 = vtanh.f32 %v500_v44 }
 0x3aa   :  { %v4809_v45 = vpop.eup %4808 }
 0x3ab   :  { %v4811_v46 = vpop.eup %4810  ;;  %v510_v54 = vmul.f32 0.125, %v4809_v45 }
 0x3ac   :  { %v4813_v47 = vpop.eup %4812  ;;  %v512_v61 = vmul.f32 0.125, %v4811_v46 }
 0x3ad   :  { %v4815_v48 = vpop.eup %4814  ;;  %v511_v51 = vmul.f32 0.125, %v4813_v47  ;;  %v518_v5 = vadd.f32 %v510_v54, %v400_v17 }
 0x3ae   :  { %v4817_v49 = vpop.eup %4816  ;;  %v513_v55 = vmul.f32 0.125, %v4815_v48  ;;  %v520_v8 = vadd.f32 %v512_v61, %v402_v20 }
 0x3af   :  { %v4819_v50 = vpop.eup %4818  ;;  %v514_v52 = vmul.f32 0.125, %v4817_v49  ;;  %v519_v2 = vadd.f32 %v511_v51, %v401_v15 }
 0x3b0   :  { %v4821_v53 = vpop.eup %4820  ;;  %v516_v56 = vmul.f32 0.125, %v4819_v50  ;;  %v521_v6 = vadd.f32 %v513_v55, %v403_v18 }
 0x3b1   :  { %v4823_v60 = vpop.eup %4822  ;;  %v515_v62 = vmul.f32 0.125, %v4821_v53  ;;  %v522_v63 = vadd.f32 %v514_v52, %v404_v12 }
 0x3b2   :  { %v517_v0 = vmul.f32 0.125, %v4823_v60  ;;  %v524_v1 = vadd.f32 %v516_v56, %v406_v14 }
 0x3b3   :  { %v523_v4 = vadd.f32 %v515_v62, %v405_v16  ;;  %v5181_v11 = vpack.c.bf16 %v522_v63, %v518_v5 }
 0x3b4   :  { %v525_v7 = vadd.f32 %v517_v0, %v407_v19  ;;  %v5184_v13 = vpack.c.bf16 %v524_v1, %v520_v8 }
 0x3b5   :  { %v5177_v9 = vpack.c.bf16 %v523_v4, %v519_v2 }
 0x3b6   :  { %v5179_v10 = vpack.c.bf16 %v525_v7, %v521_v6 }
 0x3b7   :  { %534 = vmatprep.subr.bf16.mxu0 %v5177_v9 }
 0x3b8   :  { %577 = vmatprep.subr.bf16.mxu1 %v5179_v10  ;;  %535 = vmatpush1.bf16.msra.mxu0 %v5181_v11 }
 0x3b9   :  { %578 = vmatpush1.bf16.msra.mxu1 %v5184_v13 }
 0x3bb   :  { %4617 = vmatmul.mubr.msk.bf16.vlgmr.msra.gmra.mrb[16].mxu0 %vm78_vm0, %v5097_v57 }
 0x3bc   :  { %4618 = vmatmul.mubr.msk.bf16.vlgmr.msra.gmra.mrb[16].mxu1 %vm78_vm0, %v5097_v57  ;;  %684 = vmatprep.mubr.bf16.mxu0 %v7358_v3 }
 0x3bd   :  { %727 = vmatprep.mubr.bf16.mxu1 %v7358_v3 }
 0x48e   :  { %v568_v12 = vpop.f32.mrb[16].mxu0 }
 0x48f   :  { %v569_v14 = vadd.f32 %v568_v12, %v5105_v58  ;;  %v611_v15 = vpop.f32.mrb[16].mxu1  ;;  %v570_v16 = vpop.f32.mrb[17].mxu0 }
 0x490   :  { %v612_v17 = vadd.f32 %v611_v15, %v5105_v58  ;;  %v571_v18 = vadd.f32 %v570_v16, %v5105_v58  ;;  %v613_v19 = vpop.f32.mrb[17].mxu1  ;;  %v572_v20 = vpop.f32.mrb[18].mxu0 }
 0x491   :  { %4824 = vtanh.f32 %v569_v14  ;;  %v614_v25 = vadd.f32 %v613_v19, %v5105_v58  ;;  %v573_v26 = vadd.f32 %v572_v20, %v5107_v59  ;;  %v615_v27 = vpop.f32.mrb[18].mxu1  ;;  %v574_v28 = vpop.f32.mrb[19].mxu0 }
 0x492   :  { %4826 = vtanh.f32 %v612_v17  ;;  %v616_v29 = vadd.f32 %v615_v27, %v5107_v59  ;;  %v617_v30 = vpop.f32.mrb[19].mxu1  ;;  %v575_v31 = vadd.f32 %v574_v28, %v5107_v59 }
 0x493   :  { %4828 = vtanh.f32 %v571_v18  ;;  %v618_v32 = vadd.f32 %v617_v30, %v5107_v59 }
 0x494   :  { %4830 = vtanh.f32 %v614_v25 }
 0x495   :  { %4832 = vtanh.f32 %v573_v26 }
 0x496   :  { %4834 = vtanh.f32 %v616_v29 }
 0x497   :  { %4836 = vtanh.f32 %v575_v31 }
 0x498   :  { %4838 = vtanh.f32 %v618_v32 }
 0x49b   :  { %v4825_v33 = vpop.eup %4824 }
 0x49c   :  { %v4827_v34 = vpop.eup %4826  ;;  %v628_v46 = vmul.f32 0.125, %v4825_v33 }
 0x49d   :  { %v4829_v35 = vpop.eup %4828  ;;  %v630_v50 = vmul.f32 0.125, %v4827_v34 }
 0x49e   :  { %v4831_v36 = vpop.eup %4830  ;;  %v629_v43 = vmul.f32 0.125, %v4829_v35  ;;  %v636_v60 = vadd.f32 %v628_v46, %v518_v5 }
 0x49f   :  { %v4833_v41 = vpop.eup %4832  ;;  %v631_v47 = vmul.f32 0.125, %v4831_v36  ;;  %v638_v0 = vadd.f32 %v630_v50, %v520_v8 }
 0x4a0   :  { %v4835_v42 = vpop.eup %4834  ;;  %v632_v44 = vmul.f32 0.125, %v4833_v41  ;;  %v637_v55 = vadd.f32 %v629_v43, %v519_v2 }
 0x4a1   :  { %v4837_v45 = vpop.eup %4836  ;;  %v634_v48 = vmul.f32 0.125, %v4835_v42  ;;  %v639_v61 = vadd.f32 %v631_v47, %v521_v6 }
 0x4a2   :  { %v4839_v49 = vpop.eup %4838  ;;  %v633_v51 = vmul.f32 0.125, %v4837_v45  ;;  %v640_v52 = vadd.f32 %v632_v44, %v522_v63 }
 0x4a3   :  { %v635_v53 = vmul.f32 0.125, %v4839_v49  ;;  %v642_v54 = vadd.f32 %v634_v48, %v524_v1 }
 0x4a4   :  { %v641_v56 = vadd.f32 %v633_v51, %v523_v4  ;;  %v5207_v15 = vpack.c.bf16 %v640_v52, %v636_v60 }
 0x4a5   :  { %v643_v62 = vadd.f32 %v635_v53, %v525_v7  ;;  %v5210_v16 = vpack.c.bf16 %v642_v54, %v638_v0 }
 0x4a6   :  { %v5203_v12 = vpack.c.bf16 %v641_v56, %v637_v55 }
 0x4a7   :  { %v5205_v14 = vpack.c.bf16 %v643_v62, %v639_v61 }
 0x4a8   :  { %652 = vmatprep.subr.bf16.mxu0 %v5203_v12 }
 0x4a9   :  { %695 = vmatprep.subr.bf16.mxu1 %v5205_v14  ;;  %653 = vmatpush1.bf16.msra.mxu0 %v5207_v15 }
 0x4aa   :  { %696 = vmatpush1.bf16.msra.mxu1 %v5210_v16 }
 0x4ac   :  { %4619 = vmatmul.mubr.msk.bf16.vlgmr.msra.gmra.mrb[20].mxu0 %vm78_vm0, %v5097_v57 }
 0x4ad   :  { %4620 = vmatmul.mubr.msk.bf16.vlgmr.msra.gmra.mrb[20].mxu1 %vm78_vm0, %v5097_v57  ;;  %802 = vmatprep.mubr.bf16.mxu0 %v7358_v3 }
 0x4ae   :  { %845 = vmatprep.mubr.bf16.mxu1 %v7358_v3 }
 0x57f   :  { %v686_v63 = vpop.f32.mrb[20].mxu0 }
 0x580   :  { %v687_v1 = vadd.f32 %v686_v63, %v5105_v58  ;;  %v729_v2 = vpop.f32.mrb[20].mxu1  ;;  %v688_v4 = vpop.f32.mrb[21].mxu0 }
 0x581   :  { %v730_v5 = vadd.f32 %v729_v2, %v5105_v58  ;;  %v689_v6 = vadd.f32 %v688_v4, %v5105_v58  ;;  %v731_v7 = vpop.f32.mrb[21].mxu1  ;;  %v690_v8 = vpop.f32.mrb[22].mxu0 }
 0x582   :  { %4840 = vtanh.f32 %v687_v1  ;;  %v732_v17 = vadd.f32 %v731_v7, %v5105_v58  ;;  %v691_v18 = vadd.f32 %v690_v8, %v5107_v59  ;;  %v733_v19 = vpop.f32.mrb[22].mxu1  ;;  %v692_v20 = vpop.f32.mrb[23].mxu0 }
 0x583   :  { %4842 = vtanh.f32 %v730_v5  ;;  %v734_v25 = vadd.f32 %v733_v19, %v5107_v59  ;;  %v735_v26 = vpop.f32.mrb[23].mxu1  ;;  %v693_v27 = vadd.f32 %v692_v20, %v5107_v59 }
 0x584   :  { %4844 = vtanh.f32 %v689_v6  ;;  %v736_v28 = vadd.f32 %v735_v26, %v5107_v59 }
 0x585   :  { %4846 = vtanh.f32 %v732_v17 }
 0x586   :  { %4848 = vtanh.f32 %v691_v18 }
 0x587   :  { %4850 = vtanh.f32 %v734_v25 }
 0x588   :  { %4852 = vtanh.f32 %v693_v27 }
 0x589   :  { %4854 = vtanh.f32 %v736_v28 }
 0x58c   :  { %v4841_v29 = vpop.eup %4840 }
 0x58d   :  { %v4843_v30 = vpop.eup %4842  ;;  %v746_v42 = vmul.f32 0.125, %v4841_v29 }
 0x58e   :  { %v4845_v31 = vpop.eup %4844  ;;  %v748_v46 = vmul.f32 0.125, %v4843_v30 }
 0x58f   :  { %v4847_v32 = vpop.eup %4846  ;;  %v747_v35 = vmul.f32 0.125, %v4845_v31  ;;  %v754_v63 = vadd.f32 %v746_v42, %v636_v60 }
 0x590   :  { %v4849_v33 = vpop.eup %4848  ;;  %v749_v43 = vmul.f32 0.125, %v4847_v32  ;;  %v756_v4 = vadd.f32 %v748_v46, %v638_v0 }
 0x591   :  { %v4851_v34 = vpop.eup %4850  ;;  %v750_v36 = vmul.f32 0.125, %v4849_v33  ;;  %v755_v51 = vadd.f32 %v747_v35, %v637_v55 }
 0x592   :  { %v4853_v41 = vpop.eup %4852  ;;  %v752_v44 = vmul.f32 0.125, %v4851_v34  ;;  %v757_v1 = vadd.f32 %v749_v43, %v639_v61 }
 0x593   :  { %v4855_v45 = vpop.eup %4854  ;;  %v751_v47 = vmul.f32 0.125, %v4853_v41  ;;  %v758_v48 = vadd.f32 %v750_v36, %v640_v52 }
 0x594   :  { %v753_v49 = vmul.f32 0.125, %v4855_v45  ;;  %v760_v50 = vadd.f32 %v752_v44, %v642_v54 }
 0x595   :  { %v759_v53 = vadd.f32 %v751_v47, %v641_v56  ;;  %v5233_v7 = vpack.c.bf16 %v758_v48, %v754_v63 }
 0x596   :  { %v761_v2 = vadd.f32 %v753_v49, %v643_v62  ;;  %v5236_v8 = vpack.c.bf16 %v760_v50, %v756_v4 }
 0x597   :  { %v5229_v5 = vpack.c.bf16 %v759_v53, %v755_v51 }
 0x598   :  { %v5231_v6 = vpack.c.bf16 %v761_v2, %v757_v1 }
 0x599   :  { %770 = vmatprep.subr.bf16.mxu0 %v5229_v5 }
 0x59a   :  { %813 = vmatprep.subr.bf16.mxu1 %v5231_v6  ;;  %771 = vmatpush1.bf16.msra.mxu0 %v5233_v7 }
 0x59b   :  { %814 = vmatpush1.bf16.msra.mxu1 %v5236_v8 }
 0x59d   :  { %4621 = vmatmul.mubr.msk.bf16.vlgmr.msra.gmra.mrb[24].mxu0 %vm78_vm0, %v5097_v57 }
 0x59e   :  { %4622 = vmatmul.mubr.msk.bf16.vlgmr.msra.gmra.mrb[24].mxu1 %vm78_vm0, %v5097_v57  ;;  %920 = vmatprep.mubr.bf16.mxu0 %v7358_v3 }
 0x59f   :  { %963 = vmatprep.mubr.bf16.mxu1 %v7358_v3 }
 0x670   :  { %v804_v52 = vpop.f32.mrb[24].mxu0 }
 0x671   :  { %v805_v54 = vadd.f32 %v804_v52, %v5105_v58  ;;  %v847_v55 = vpop.f32.mrb[24].mxu1  ;;  %v806_v56 = vpop.f32.mrb[25].mxu0 }
 0x672   :  { %v848_v60 = vadd.f32 %v847_v55, %v5105_v58  ;;  %v807_v61 = vadd.f32 %v806_v56, %v5105_v58  ;;  %v849_v62 = vpop.f32.mrb[25].mxu1  ;;  %v808_v0 = vpop.f32.mrb[26].mxu0 }
 0x673   :  { %4856 = vtanh.f32 %v805_v54  ;;  %v850_v17 = vadd.f32 %v849_v62, %v5105_v58  ;;  %v809_v18 = vadd.f32 %v808_v0, %v5107_v59  ;;  %v851_v19 = vpop.f32.mrb[26].mxu1  ;;  %v810_v20 = vpop.f32.mrb[27].mxu0 }
 0x674   :  { %4858 = vtanh.f32 %v848_v60  ;;  %v852_v25 = vadd.f32 %v851_v19, %v5107_v59  ;;  %v853_v26 = vpop.f32.mrb[27].mxu1  ;;  %v811_v27 = vadd.f32 %v810_v20, %v5107_v59 }
 0x675   :  { %4860 = vtanh.f32 %v807_v61  ;;  %v854_v28 = vadd.f32 %v853_v26, %v5107_v59 }
 0x676   :  { %4862 = vtanh.f32 %v850_v17 }
 0x677   :  { %4864 = vtanh.f32 %v809_v18 }
 0x678   :  { %4866 = vtanh.f32 %v852_v25 }
 0x679   :  { %4868 = vtanh.f32 %v811_v27 }
 0x67a   :  { %4870 = vtanh.f32 %v854_v28 }
 0x67d   :  { %v4857_v29 = vpop.eup %4856 }
 0x67e   :  { %v4859_v30 = vpop.eup %4858  ;;  %v864_v42 = vmul.f32 0.125, %v4857_v29 }
 0x67f   :  { %v4861_v31 = vpop.eup %4860  ;;  %v866_v46 = vmul.f32 0.125, %v4859_v30 }
 0x680   :  { %v4863_v32 = vpop.eup %4862  ;;  %v865_v35 = vmul.f32 0.125, %v4861_v31  ;;  %v872_v60 = vadd.f32 %v864_v42, %v754_v63 }
 0x681   :  { %v4865_v33 = vpop.eup %4864  ;;  %v867_v43 = vmul.f32 0.125, %v4863_v32  ;;  %v874_v0 = vadd.f32 %v866_v46, %v756_v4 }
 0x682   :  { %v4867_v34 = vpop.eup %4866  ;;  %v868_v36 = vmul.f32 0.125, %v4865_v33  ;;  %v873_v55 = vadd.f32 %v865_v35, %v755_v51 }
 0x683   :  { %v4869_v41 = vpop.eup %4868  ;;  %v870_v44 = vmul.f32 0.125, %v4867_v34  ;;  %v875_v61 = vadd.f32 %v867_v43, %v757_v1 }
 0x684   :  { %v4871_v45 = vpop.eup %4870  ;;  %v869_v47 = vmul.f32 0.125, %v4869_v41  ;;  %v876_v49 = vadd.f32 %v868_v36, %v758_v48 }
 0x685   :  { %v871_v52 = vmul.f32 0.125, %v4871_v45  ;;  %v878_v54 = vadd.f32 %v870_v44, %v760_v50 }
 0x686   :  { %v877_v56 = vadd.f32 %v869_v47, %v759_v53  ;;  %v5259_v19 = vpack.c.bf16 %v876_v49, %v872_v60 }
 0x687   :  { %v879_v62 = vadd.f32 %v871_v52, %v761_v2  ;;  %v5262_v20 = vpack.c.bf16 %v878_v54, %v874_v0 }
 0x688   :  { %v5255_v17 = vpack.c.bf16 %v877_v56, %v873_v55 }
 0x689   :  { %v5257_v18 = vpack.c.bf16 %v879_v62, %v875_v61 }
 0x68a   :  { %888 = vmatprep.subr.bf16.mxu0 %v5255_v17 }
 0x68b   :  { %931 = vmatprep.subr.bf16.mxu1 %v5257_v18  ;;  %889 = vmatpush1.bf16.msra.mxu0 %v5259_v19 }
 0x68c   :  { %932 = vmatpush1.bf16.msra.mxu1 %v5262_v20 }
 0x68e   :  { %4623 = vmatmul.mubr.msk.bf16.vlgmr.msra.gmra.mrb[28].mxu0 %vm78_vm0, %v5097_v57 }
 0x68f   :  { %4624 = vmatmul.mubr.msk.bf16.vlgmr.msra.gmra.mrb[28].mxu1 %vm78_vm0, %v5097_v57  ;;  %1038 = vmatprep.mubr.bf16.mxu0 %v7358_v3 }
 0x690   :  { %1081 = vmatprep.mubr.bf16.mxu1 %v7358_v3 }
 0x761   :  { %v922_v48 = vpop.f32.mrb[28].mxu0 }
 0x762   :  { %v923_v50 = vadd.f32 %v922_v48, %v5105_v58  ;;  %v965_v51 = vpop.f32.mrb[28].mxu1  ;;  %v924_v53 = vpop.f32.mrb[29].mxu0 }
 0x763   :  { %v966_v63 = vadd.f32 %v965_v51, %v5105_v58  ;;  %v925_v1 = vadd.f32 %v924_v53, %v5105_v58  ;;  %v967_v2 = vpop.f32.mrb[29].mxu1  ;;  %v926_v4 = vpop.f32.mrb[30].mxu0 }
 0x764   :  { %4872 = vtanh.f32 %v923_v50  ;;  %v968_v25 = vadd.f32 %v967_v2, %v5105_v58  ;;  %v927_v26 = vadd.f32 %v926_v4, %v5107_v59  ;;  %v969_v27 = vpop.f32.mrb[30].mxu1  ;;  %v928_v28 = vpop.f32.mrb[31].mxu0 }
 0x765   :  { %4874 = vtanh.f32 %v966_v63  ;;  %v970_v29 = vadd.f32 %v969_v27, %v5107_v59  ;;  %v971_v30 = vpop.f32.mrb[31].mxu1  ;;  %v929_v31 = vadd.f32 %v928_v28, %v5107_v59 }
 0x766   :  { %4876 = vtanh.f32 %v925_v1  ;;  %v972_v32 = vadd.f32 %v971_v30, %v5107_v59 }
 0x767   :  { %4878 = vtanh.f32 %v968_v25 }
 0x768   :  { %4880 = vtanh.f32 %v927_v26 }
 0x769   :  { %4882 = vtanh.f32 %v970_v29 }
 0x76a   :  { %4884 = vtanh.f32 %v929_v31 }
 0x76b   :  { %4886 = vtanh.f32 %v972_v32 }
 0x76e   :  { %v4873_v33 = vpop.eup %4872 }
 0x76f   :  { %v4875_v34 = vpop.eup %4874  ;;  %v982_v46 = vmul.f32 0.125, %v4873_v33 }
 0x770   :  { %v4877_v35 = vpop.eup %4876  ;;  %v984_v50 = vmul.f32 0.125, %v4875_v34 }
 0x771   :  { %v4879_v36 = vpop.eup %4878  ;;  %v983_v43 = vmul.f32 0.125, %v4877_v35  ;;  %v5289_v25 = vadd.f32 %v982_v46, %v872_v60 }
 0x772   :  { %v4881_v41 = vpop.eup %4880  ;;  %v985_v47 = vmul.f32 0.125, %v4879_v36  ;;  %v5295_v28 = vadd.f32 %v984_v50, %v874_v0 }
 0x773   :  { %v4883_v42 = vpop.eup %4882  ;;  %v986_v44 = vmul.f32 0.125, %v4881_v41  ;;  %v5285_v2 = vadd.f32 %v983_v43, %v873_v55 }
 0x774   :  { %v4885_v45 = vpop.eup %4884  ;;  %v988_v52 = vmul.f32 0.125, %v4883_v42  ;;  %v5291_v26 = vadd.f32 %v985_v47, %v875_v61 }
 0x775   :  { %v4887_v48 = vpop.eup %4886  ;;  %v987_v51 = vmul.f32 0.125, %v4885_v45  ;;  %v5281_v53 = vadd.f32 %v986_v44, %v876_v49 }
 0x776   :  { %v989_v63 = vmul.f32 0.125, %v4887_v48  ;;  %v5283_v1 = vadd.f32 %v988_v52, %v878_v54 }
 0x777   :  { %v5287_v4 = vadd.f32 %v987_v51, %v877_v56  ;;  %v5307_v54 = vpack.c.bf16 %v5281_v53, %v5289_v25 }
 0x778   :  { %v5293_v27 = vadd.f32 %v989_v63, %v879_v62  ;;  %v5312_v55 = vpack.c.bf16 %v5283_v1, %v5295_v28  ;;  %v5557_v62 = vpop.permute.xlu1 %1195 }
 0x779   :  { %v5299_v29 = vpack.c.bf16 %v5287_v4, %v5285_v2 }
 0x77a   :  { %v5303_v49 = vpack.c.bf16 %v5293_v27, %v5291_v26 }
 0x77b   :  { %1006 = vmatprep.subr.bf16.mxu0 %v5299_v29 }
 0x77c   :  { %1049 = vmatprep.subr.bf16.mxu1 %v5303_v49  ;;  %1007 = vmatpush1.bf16.msra.mxu0 %v5307_v54 }
 0x77d   :  { %1050 = vmatpush1.bf16.msra.mxu1 %v5312_v55  ;;  %1332 = vmatprep.subr.bf16.mxu0 %v5125_v37  ;;  %v5332_v37 = vld [vmem:[%s7355_s5] sm:$0xff]  }
 0x77e   :  { %1445 = vmatprep.subr.bf16.mxu1 %v5127_v38  ;;  %v5358_v38 = vld [vmem:[%s7355_s5 + $0x10] sm:$0xff]  }
 0x77f   :  { %4625 = vmatmul.mubr.msk.bf16.vlgmr.msra.gmra.mrb[32].mxu0 %vm78_vm0, %v5097_v57 }
 0x780   :  { %4626 = vmatmul.mubr.msk.bf16.vlgmr.msra.gmra.mrb[32].mxu1 %vm78_vm0, %v5097_v57  ;;  %1333 = vmatpush1.bf16.msra.mxu0 %v5129_v39  ;;  %v5347_v57 = vld [vmem:[%s7355_s5 + $0x8] sm:$0xff]   ;;  %v5369_v39 = vld [vmem:[%s7355_s5 + $0x18] sm:$0xff]  }
 0x781   :  { %1446 = vmatpush1.bf16.msra.mxu1 %v5132_v40  ;;  %1558 = vmatprep.subr.bf16.mxu0 %v5151_v21  ;;  %v5380_v40 = vld [vmem:[%s7355_s5 + $0x20] sm:$0xff]   ;;  %v5391_v21 = vld [vmem:[%s7355_s5 + $0x28] sm:$0xff]  }
 0x782   :  { %1671 = vmatprep.subr.bf16.mxu1 %v5153_v22  ;;  %1364 = vmatprep.mubr.bf16.mxu0 %v7358_v3  ;;  %v5402_v22 = vld [vmem:[%s7355_s5 + $0x30] sm:$0xff]  }
 0x783   :  { %1477 = vmatprep.mubr.bf16.mxu1 %v7358_v3 }
 0x787   :  { %4635 = vmatmul.mubr.msk.bf16.vlgmr.msra.gmra.mrb[36].mxu0 %vm78_vm0, %v5332_v37 }
 0x788   :  { %4643 = vmatmul.mubr.msk.bf16.vlgmr.msra.gmra.mrb[36].mxu1 %vm78_vm0, %v5332_v37  ;;  %1559 = vmatpush1.bf16.msra.mxu0 %v5155_v23  ;;  %v5413_v23 = vld [vmem:[%s7355_s5 + $0x38] sm:$0xff]  }
 0x789   :  { %1672 = vmatpush1.bf16.msra.mxu1 %v5158_v24  ;;  %1784 = vmatprep.subr.bf16.mxu0 %v5177_v9 }
 0x78a   :  { %1897 = vmatprep.subr.bf16.mxu1 %v5179_v10  ;;  %1374 = vmatprep.mubr.bf16.mxu0 %v7358_v3 }
 0x78b   :  { %1487 = vmatprep.mubr.bf16.mxu1 %v7358_v3 }
 0x78f   :  { %4636 = vmatmul.mubr.msk.bf16.gmra.mrb[40].mxu0 %vm78_vm0, %v5347_v57 }
 0x790   :  { %4644 = vmatmul.mubr.msk.bf16.gmra.mrb[40].mxu1 %vm78_vm0, %v5347_v57  ;;  %1384 = vmatprep.mubr.bf16.mxu0 %v7358_v3 }
 0x791   :  { %1497 = vmatprep.mubr.bf16.mxu1 %v7358_v3 }
 0x797   :  { %4637 = vmatmul.mubr.msk.bf16.gmra.mrb[44].mxu0 %vm78_vm0, %v5358_v38 }
 0x798   :  { %4645 = vmatmul.mubr.msk.bf16.gmra.mrb[44].mxu1 %vm78_vm0, %v5358_v38  ;;  %1394 = vmatprep.mubr.bf16.mxu0 %v7358_v3 }
 0x799   :  { %1507 = vmatprep.mubr.bf16.mxu1 %v7358_v3 }
 0x79f   :  { %4638 = vmatmul.mubr.msk.bf16.gmra.mrb[48].mxu0 %vm78_vm0, %v5369_v39 }
 0x7a0   :  { %4646 = vmatmul.mubr.msk.bf16.gmra.mrb[48].mxu1 %vm78_vm0, %v5369_v39  ;;  %1404 = vmatprep.mubr.bf16.mxu0 %v7358_v3 }
 0x7a1   :  { %1517 = vmatprep.mubr.bf16.mxu1 %v7358_v3 }
 0x7a7   :  { %4639 = vmatmul.mubr.msk.bf16.gmra.mrb[52].mxu0 %vm78_vm0, %v5380_v40 }
 0x7a8   :  { %4647 = vmatmul.mubr.msk.bf16.gmra.mrb[52].mxu1 %vm78_vm0, %v5380_v40  ;;  %1414 = vmatprep.mubr.bf16.mxu0 %v7358_v3 }
 0x7a9   :  { %1527 = vmatprep.mubr.bf16.mxu1 %v7358_v3 }
 0x7af   :  { %4640 = vmatmul.mubr.msk.bf16.gmra.mrb[56].mxu0 %vm78_vm0, %v5391_v21 }
 0x7b0   :  { %4648 = vmatmul.mubr.msk.bf16.gmra.mrb[56].mxu1 %vm78_vm0, %v5391_v21  ;;  %1424 = vmatprep.mubr.bf16.mxu0 %v7358_v3 }
 0x7b1   :  { %1537 = vmatprep.mubr.bf16.mxu1 %v7358_v3 }
 0x7b7   :  { %4641 = vmatmul.mubr.msk.bf16.gmra.mrb[60].mxu0 %vm78_vm0, %v5402_v22 }
 0x7b8   :  { %4649 = vmatmul.mubr.msk.bf16.gmra.mrb[60].mxu1 %vm78_vm0, %v5402_v22  ;;  %1434 = vmatprep.mubr.bf16.mxu0 %v7358_v3 }
 0x7b9   :  { %1547 = vmatprep.mubr.bf16.mxu1 %v7358_v3 }
 0x7bf   :  { %4642 = vmatmul.mubr.msk.bf16.gmra.mrb[64].mxu0 %vm78_vm0, %v5413_v23 }
 0x7c0   :  { %4650 = vmatmul.mubr.msk.bf16.gmra.mrb[64].mxu1 %vm78_vm0, %v5413_v23  ;;  %1590 = vmatprep.mubr.bf16.mxu0 %v7358_v3 }
 0x7c1   :  { %1703 = vmatprep.mubr.bf16.mxu1 %v7358_v3 }
 0x7c7   :  { %4651 = vmatmul.mubr.msk.bf16.vlgmr.msra.gmra.mrb[68].mxu0 %vm78_vm0, %v5332_v37 }
 0x7c8   :  { %4659 = vmatmul.mubr.msk.bf16.vlgmr.msra.gmra.mrb[68].mxu1 %vm78_vm0, %v5332_v37  ;;  %1785 = vmatpush1.bf16.msra.mxu0 %v5181_v11 }
 0x7c9   :  { %1898 = vmatpush1.bf16.msra.mxu1 %v5184_v13  ;;  %2010 = vmatprep.subr.bf16.mxu0 %v5203_v12 }
 0x7ca   :  { %2123 = vmatprep.subr.bf16.mxu1 %v5205_v14  ;;  %1600 = vmatprep.mubr.bf16.mxu0 %v7358_v3 }
 0x7cb   :  { %1713 = vmatprep.mubr.bf16.mxu1 %v7358_v3 }
 0x7cf   :  { %4652 = vmatmul.mubr.msk.bf16.gmra.mrb[72].mxu0 %vm78_vm0, %v5347_v57 }
 0x7d0   :  { %4660 = vmatmul.mubr.msk.bf16.gmra.mrb[72].mxu1 %vm78_vm0, %v5347_v57  ;;  %1610 = vmatprep.mubr.bf16.mxu0 %v7358_v3 }
 0x7d1   :  { %1723 = vmatprep.mubr.bf16.mxu1 %v7358_v3 }
 0x7d7   :  { %4653 = vmatmul.mubr.msk.bf16.gmra.mrb[76].mxu0 %vm78_vm0, %v5358_v38 }
 0x7d8   :  { %4661 = vmatmul.mubr.msk.bf16.gmra.mrb[76].mxu1 %vm78_vm0, %v5358_v38  ;;  %1620 = vmatprep.mubr.bf16.mxu0 %v7358_v3 }
 0x7d9   :  { %1733 = vmatprep.mubr.bf16.mxu1 %v7358_v3 }
 0x7df   :  { %4654 = vmatmul.mubr.msk.bf16.gmra.mrb[80].mxu0 %vm78_vm0, %v5369_v39 }
 0x7e0   :  { %4662 = vmatmul.mubr.msk.bf16.gmra.mrb[80].mxu1 %vm78_vm0, %v5369_v39  ;;  %1630 = vmatprep.mubr.bf16.mxu0 %v7358_v3 }
 0x7e1   :  { %1743 = vmatprep.mubr.bf16.mxu1 %v7358_v3 }
 0x7e7   :  { %4655 = vmatmul.mubr.msk.bf16.gmra.mrb[84].mxu0 %vm78_vm0, %v5380_v40 }
 0x7e8   :  { %4663 = vmatmul.mubr.msk.bf16.gmra.mrb[84].mxu1 %vm78_vm0, %v5380_v40  ;;  %1640 = vmatprep.mubr.bf16.mxu0 %v7358_v3 }
 0x7e9   :  { %1753 = vmatprep.mubr.bf16.mxu1 %v7358_v3 }
 0x7ef   :  { %4656 = vmatmul.mubr.msk.bf16.gmra.mrb[88].mxu0 %vm78_vm0, %v5391_v21 }
 0x7f0   :  { %4664 = vmatmul.mubr.msk.bf16.gmra.mrb[88].mxu1 %vm78_vm0, %v5391_v21  ;;  %1650 = vmatprep.mubr.bf16.mxu0 %v7358_v3 }
 0x7f1   :  { %1763 = vmatprep.mubr.bf16.mxu1 %v7358_v3 }
 0x7f7   :  { %4657 = vmatmul.mubr.msk.bf16.gmra.mrb[92].mxu0 %vm78_vm0, %v5402_v22 }
 0x7f8   :  { %4665 = vmatmul.mubr.msk.bf16.gmra.mrb[92].mxu1 %vm78_vm0, %v5402_v22  ;;  %1660 = vmatprep.mubr.bf16.mxu0 %v7358_v3 }
 0x7f9   :  { %1773 = vmatprep.mubr.bf16.mxu1 %v7358_v3 }
 0x7ff   :  { %4658 = vmatmul.mubr.msk.bf16.gmra.mrb[96].mxu0 %vm78_vm0, %v5413_v23 }
 0x800   :  { %4666 = vmatmul.mubr.msk.bf16.gmra.mrb[96].mxu1 %vm78_vm0, %v5413_v23  ;;  %1816 = vmatprep.mubr.bf16.mxu0 %v7358_v3 }
 0x801   :  { %1929 = vmatprep.mubr.bf16.mxu1 %v7358_v3 }
 0x807   :  { %4667 = vmatmul.mubr.msk.bf16.vlgmr.msra.gmra.mrb[100].mxu0 %vm78_vm0, %v5332_v37 }
 0x808   :  { %4675 = vmatmul.mubr.msk.bf16.vlgmr.msra.gmra.mrb[100].mxu1 %vm78_vm0, %v5332_v37  ;;  %2011 = vmatpush1.bf16.msra.mxu0 %v5207_v15 }
 0x809   :  { %2124 = vmatpush1.bf16.msra.mxu1 %v5210_v16  ;;  %2236 = vmatprep.subr.bf16.mxu0 %v5229_v5 }
 0x80a   :  { %2349 = vmatprep.subr.bf16.mxu1 %v5231_v6  ;;  %1826 = vmatprep.mubr.bf16.mxu0 %v7358_v3 }
 0x80b   :  { %1939 = vmatprep.mubr.bf16.mxu1 %v7358_v3 }
 0x80f   :  { %4668 = vmatmul.mubr.msk.bf16.gmra.mrb[104].mxu0 %vm78_vm0, %v5347_v57 }
 0x810   :  { %4676 = vmatmul.mubr.msk.bf16.gmra.mrb[104].mxu1 %vm78_vm0, %v5347_v57  ;;  %1836 = vmatprep.mubr.bf16.mxu0 %v7358_v3 }
 0x811   :  { %1949 = vmatprep.mubr.bf16.mxu1 %v7358_v3 }
 0x817   :  { %4669 = vmatmul.mubr.msk.bf16.gmra.mrb[108].mxu0 %vm78_vm0, %v5358_v38 }
 0x818   :  { %4677 = vmatmul.mubr.msk.bf16.gmra.mrb[108].mxu1 %vm78_vm0, %v5358_v38  ;;  %1846 = vmatprep.mubr.bf16.mxu0 %v7358_v3 }
 0x819   :  { %1959 = vmatprep.mubr.bf16.mxu1 %v7358_v3 }
 0x81f   :  { %4670 = vmatmul.mubr.msk.bf16.gmra.mrb[112].mxu0 %vm78_vm0, %v5369_v39 }
 0x820   :  { %4678 = vmatmul.mubr.msk.bf16.gmra.mrb[112].mxu1 %vm78_vm0, %v5369_v39  ;;  %1856 = vmatprep.mubr.bf16.mxu0 %v7358_v3 }
 0x821   :  { %1969 = vmatprep.mubr.bf16.mxu1 %v7358_v3 }
 0x827   :  { %4671 = vmatmul.mubr.msk.bf16.gmra.mrb[116].mxu0 %vm78_vm0, %v5380_v40 }
 0x828   :  { %4679 = vmatmul.mubr.msk.bf16.gmra.mrb[116].mxu1 %vm78_vm0, %v5380_v40  ;;  %1866 = vmatprep.mubr.bf16.mxu0 %v7358_v3 }
 0x829   :  { %1979 = vmatprep.mubr.bf16.mxu1 %v7358_v3 }
 0x82f   :  { %4672 = vmatmul.mubr.msk.bf16.gmra.mrb[120].mxu0 %vm78_vm0, %v5391_v21 }
 0x830   :  { %4680 = vmatmul.mubr.msk.bf16.gmra.mrb[120].mxu1 %vm78_vm0, %v5391_v21  ;;  %1876 = vmatprep.mubr.bf16.mxu0 %v7358_v3 }
 0x831   :  { %1989 = vmatprep.mubr.bf16.mxu1 %v7358_v3 }
 0x837   :  { %4673 = vmatmul.mubr.msk.bf16.gmra.mrb[124].mxu0 %vm78_vm0, %v5402_v22 }
 0x838   :  { %4681 = vmatmul.mubr.msk.bf16.gmra.mrb[124].mxu1 %vm78_vm0, %v5402_v22  ;;  %1886 = vmatprep.mubr.bf16.mxu0 %v7358_v3 }
 0x839   :  { %1999 = vmatprep.mubr.bf16.mxu1 %v7358_v3 }
 0x83f   :  { %4674 = vmatmul.mubr.msk.bf16.gmra.mrb[128].mxu0 %vm78_vm0, %v5413_v23 }
 0x840   :  { %4682 = vmatmul.mubr.msk.bf16.gmra.mrb[128].mxu1 %vm78_vm0, %v5413_v23  ;;  %2042 = vmatprep.mubr.bf16.mxu0 %v7358_v3 }
 0x841   :  { %2155 = vmatprep.mubr.bf16.mxu1 %v7358_v3 }
 0x847   :  { %4683 = vmatmul.mubr.msk.bf16.vlgmr.msra.gmra.mrb[132].mxu0 %vm78_vm0, %v5332_v37 }
 0x848   :  { %4691 = vmatmul.mubr.msk.bf16.vlgmr.msra.gmra.mrb[132].mxu1 %vm78_vm0, %v5332_v37  ;;  %2237 = vmatpush1.bf16.msra.mxu0 %v5233_v7 }
 0x849   :  { %2350 = vmatpush1.bf16.msra.mxu1 %v5236_v8  ;;  %2462 = vmatprep.subr.bf16.mxu0 %v5255_v17 }
 0x84a   :  { %2575 = vmatprep.subr.bf16.mxu1 %v5257_v18  ;;  %2052 = vmatprep.mubr.bf16.mxu0 %v7358_v3 }
 0x84b   :  { %2165 = vmatprep.mubr.bf16.mxu1 %v7358_v3 }
 0x84f   :  { %4684 = vmatmul.mubr.msk.bf16.gmra.mrb[136].mxu0 %vm78_vm0, %v5347_v57 }
 0x850   :  { %4692 = vmatmul.mubr.msk.bf16.gmra.mrb[136].mxu1 %vm78_vm0, %v5347_v57  ;;  %2062 = vmatprep.mubr.bf16.mxu0 %v7358_v3 }
 0x851   :  { %2175 = vmatprep.mubr.bf16.mxu1 %v7358_v3 }
 0x852   :  { %v1040_v24 = vpop.f32.mrb[32].mxu0 }
 0x853   :  { %v1041_v9 = vadd.f32 %v1040_v24, %v5105_v58  ;;  %v1083_v10 = vpop.f32.mrb[32].mxu1  ;;  %v1042_v11 = vpop.f32.mrb[33].mxu0 }
 0x854   :  { %v1084_v13 = vadd.f32 %v1083_v10, %v5105_v58  ;;  %v1043_v12 = vadd.f32 %v1042_v11, %v5105_v58  ;;  %v1085_v14 = vpop.f32.mrb[33].mxu1  ;;  %v1044_v15 = vpop.f32.mrb[34].mxu0 }
 0x855   :  { %4888 = vtanh.f32 %v1041_v9  ;;  %v1086_v16 = vadd.f32 %v1085_v14, %v5105_v58  ;;  %v1045_v5 = vadd.f32 %v1044_v15, %v5107_v59  ;;  %v1087_v6 = vpop.f32.mrb[34].mxu1  ;;  %v1046_v7 = vpop.f32.mrb[35].mxu0 }
 0x856   :  { %4890 = vtanh.f32 %v1084_v13  ;;  %v1088_v8 = vadd.f32 %v1087_v6, %v5107_v59  ;;  %v1089_v56 = vpop.f32.mrb[35].mxu1  ;;  %v1047_v60 = vadd.f32 %v1046_v7, %v5107_v59  ;;  %v5554_v58 = vpop.permute.xlu0 %1190 }
 0x857   :  { %4892 = vtanh.f32 %v1043_v12  ;;  %4685 = vmatmul.mubr.msk.bf16.gmra.mrb[140].mxu0 %vm78_vm0, %v5358_v38  ;;  %v1090_v61 = vadd.f32 %v1089_v56, %v5107_v59 }
 0x858   :  { %4894 = vtanh.f32 %v1086_v16  ;;  %4693 = vmatmul.mubr.msk.bf16.gmra.mrb[140].mxu1 %vm78_vm0, %v5358_v38  ;;  %2072 = vmatprep.mubr.bf16.mxu0 %v7358_v3 }
 0x859   :  { %4896 = vtanh.f32 %v1045_v5  ;;  %2185 = vmatprep.mubr.bf16.mxu1 %v7358_v3  ;;  %v5577_v5 = vpop.permute.xlu1 %1205 }
 0x85a   :  { %4898 = vtanh.f32 %v1088_v8  ;;  %v1366_v0 = vpop.f32.mrb[36].mxu0  ;;  %v5572_v11 = vpop.permute.xlu0 %1200 }
 0x85b   :  { %4900 = vtanh.f32 %v1047_v60  ;;  %v1367_v17 = vadd.f32 %v1366_v0, %v5554_v58  ;;  %v1479_v18 = vpop.f32.mrb[36].mxu1  ;;  %v1368_v30 = vpop.f32.mrb[37].mxu0 }
 0x85c   :  { %4902 = vtanh.f32 %v1090_v61  ;;  %v1480_v59 = vadd.f32 %v1479_v18, %v5554_v58  ;;  %v1369_v31 = vadd.f32 %v1368_v30, %v5554_v58  ;;  %v1481_v32 = vpop.f32.mrb[37].mxu1  ;;  %v1370_v33 = vpop.f32.mrb[38].mxu0 }
 0x85d   :  { %v1482_v34 = vadd.f32 %v1481_v32, %v5554_v58  ;;  %v1371_v35 = vadd.f32 %v1370_v33, %v5557_v62  ;;  %v1483_v36 = vpop.f32.mrb[38].mxu1  ;;  %v1372_v41 = vpop.f32.mrb[39].mxu0  ;;  %v3140_v46 = vmax.f32 %v1367_v17, 0.0 }
 0x85e   :  { %v1484_v42 = vadd.f32 %v1483_v36, %v5557_v62  ;;  %v1373_v43 = vadd.f32 %v1372_v41, %v5557_v62  ;;  %v1485_v44 = vpop.f32.mrb[39].mxu1  ;;  %v3142_v47 = vmax.f32 %v1480_v59, 0.0  ;;  %v3141_v63 = vmax.f32 %v1369_v31, 0.0 }
 0x85f   :  { %v4889_v45 = vpop.eup %4888  ;;  %v3172_v52 = vmax.f32 %v1371_v35, 0.0  ;;  %v1486_v48 = vadd.f32 %v1485_v44, %v5557_v62  ;;  %4686 = vmatmul.mubr.msk.bf16.gmra.mrb[144].mxu0 %vm78_vm0, %v5369_v39  ;;  %v3143_v12 = vmax.f32 %v1482_v34, 0.0 }
 0x860   :  { %v4891_v50 = vpop.eup %4890  ;;  %v1100_v51 = vmul.f32 0.125, %v4889_v45  ;;  %v3174_v24 = vmax.f32 %v1484_v42, 0.0  ;;  %v3173_v9 = vmax.f32 %v1373_v43, 0.0  ;;  %4694 = vmatmul.mubr.msk.bf16.gmra.mrb[144].mxu1 %vm78_vm0, %v5369_v39  ;;  %2082 = vmatprep.mubr.bf16.mxu0 %v7358_v3 }
 0x861   :  { %v4893_v10 = vpop.eup %4892  ;;  %v1102_v13 = vmul.f32 0.125, %v4891_v50  ;;  %v5574_v14 = vpack.c.bf16 %v3172_v52, %v3140_v46  ;;  %v3175_v15 = vmax.f32 %v1486_v48, 0.0  ;;  %2195 = vmatprep.mubr.bf16.mxu1 %v7358_v3 }
 0x862   :  { %v4895_v16 = vpop.eup %4894  ;;  %v1101_v6 = vmul.f32 0.125, %v4893_v10  ;;  %v5579_v7 = vpack.c.bf16 %v3174_v24, %v3142_v47  ;;  %v1376_v8 = vpop.f32.mrb[40].mxu0  ;;  %v5581_v56 = vpack.c.bf16 %v3173_v9, %v3141_v63  ;;  %v5584_v61 = vadd.f32 %v1100_v51, %v5289_v25 }
 0x863   :  { %v4897_v60 = vpop.eup %4896  ;;  %v5587_v0 = vadd.f32 %v1102_v13, %v5295_v28  ;;  %v1377_v17 = vadd.f32 %v1376_v8, %v5572_v11  ;;  %v1489_v18 = vpop.f32.mrb[40].mxu1  ;;  %v5590_v59 = vpack.c.bf16 %v3175_v15, %v3143_v12  ;;  %v1103_v32 = vmul.f32 0.125, %v4895_v16 }
 0x864   :  { %v1378_v30 = vpop.f32.mrb[41].mxu0  ;;  %v4899_v31 = vpop.eup %4898  ;;  %v1104_v33 = vmul.f32 0.125, %v4897_v60  ;;  %v1490_v34 = vadd.f32 %v1489_v18, %v5572_v11  ;;  %v5597_v46 = vadd.f32 %v1101_v6, %v5285_v2 }
 0x865   :  { %v1379_v35 = vadd.f32 %v1378_v30, %v5572_v11  ;;  %v1491_v36 = vpop.f32.mrb[41].mxu1  ;;  %v1380_v41 = vpop.f32.mrb[42].mxu0  ;;  %v1106_v42 = vmul.f32 0.125, %v4899_v31  ;;  %v3204_v50 = vmax.f32 %v1377_v17, 0.0  ;;  %v5622_v8 = vadd.f32 %v1103_v32, %v5291_v26 }
 0x866   :  { %v4901_v25 = vpop.eup %4900  ;;  %v1492_v28 = vadd.f32 %v1491_v36, %v5572_v11  ;;  %v1381_v43 = vadd.f32 %v1380_v41, %v5577_v5  ;;  %v1493_v44 = vpop.f32.mrb[42].mxu1  ;;  %v5600_v52 = vadd.f32 %v1104_v33, %v5281_v53  ;;  %v3206_v51 = vmax.f32 %v1490_v34, 0.0 }
 0x867   :  { %v1382_v45 = vpop.f32.mrb[43].mxu0  ;;  %v4903_v47 = vpop.eup %4902  ;;  %v1105_v48 = vmul.f32 0.125, %v4901_v25  ;;  %v5603_v24 = vadd.f32 %v1106_v42, %v5283_v1  ;;  %v3205_v10 = vmax.f32 %v1379_v35, 0.0  ;;  %4687 = vmatmul.mubr.msk.bf16.gmra.mrb[148].mxu0 %vm78_vm0, %v5380_v40  ;;  %v1494_v2 = vadd.f32 %v1493_v44, %v5577_v5 }
 0x868   :  { %v1495_v63 = vpop.f32.mrb[43].mxu1  ;;  %v1107_v9 = vmul.f32 0.125, %v4903_v47  ;;  %v3236_v13 = vmax.f32 %v1381_v43, 0.0  ;;  %v3207_v12 = vmax.f32 %v1492_v28, 0.0  ;;  %v1383_v15 = vadd.f32 %v1382_v45, %v5577_v5  ;;  %4695 = vmatmul.mubr.msk.bf16.gmra.mrb[148].mxu1 %vm78_vm0, %v5380_v40  ;;  %2092 = vmatprep.mubr.bf16.mxu0 %v7358_v3  ;;  %v5613_v1 = vpop.permute.xlu0 %1210 }
 0x869   :  { %v1496_v53 = vadd.f32 %v1495_v63, %v5577_v5  ;;  %2205 = vmatprep.mubr.bf16.mxu1 %v7358_v3  ;;  %v5619_v6 = vadd.f32 %v1105_v48, %v5287_v4  ;;  %v5627_v17 = vpop.permute.xlu1 %1215  ;;  %v3238_v18 = vmax.f32 %v1494_v2, 0.0 }
 0x86a   :  { %v5615_v16 = vpack.c.bf16 %v3236_v13, %v3204_v50  ;;  %v5625_v60 = vadd.f32 %v1107_v9, %v5293_v27  ;;  %v3237_v30 = vmax.f32 %v1383_v15, 0.0  ;;  %v1386_v33 = vpop.f32.mrb[44].mxu0 }
 0x86b   :  { %v3239_v31 = vmax.f32 %v1496_v53, 0.0  ;;  %v1387_v35 = vadd.f32 %v1386_v33, %v5613_v1  ;;  %v1499_v36 = vpop.f32.mrb[44].mxu1  ;;  %v1388_v4 = vpop.f32.mrb[45].mxu0  ;;  %v5638_v41 = vpack.c.bf16 %v3238_v18, %v3206_v51 }
 0x86c   :  { %v1500_v25 = vadd.f32 %v1499_v36, %v5613_v1  ;;  %v1389_v42 = vadd.f32 %v1388_v4, %v5613_v1  ;;  %v1501_v28 = vpop.f32.mrb[45].mxu1  ;;  %v1390_v43 = vpop.f32.mrb[46].mxu0  ;;  %v5642_v44 = vpack.c.bf16 %v3237_v30, %v3205_v10 }
 0x86d   :  { %v1502_v45 = vadd.f32 %v1501_v28, %v5613_v1  ;;  %v1391_v47 = vadd.f32 %v1390_v43, %v5627_v17  ;;  %v1503_v48 = vpop.f32.mrb[46].mxu1  ;;  %v1392_v50 = vpop.f32.mrb[47].mxu0  ;;  %v5646_v63 = vpack.c.bf16 %v3239_v31, %v3207_v12  ;;  %v3268_v2 = vmax.f32 %v1387_v35, 0.0 }
 0x86e   :  { %v1504_v9 = vadd.f32 %v1503_v48, %v5627_v17  ;;  %v1393_v51 = vadd.f32 %v1392_v50, %v5627_v17  ;;  %v1505_v13 = vpop.f32.mrb[47].mxu1  ;;  %v3270_v10 = vmax.f32 %v1500_v25, 0.0  ;;  %v3269_v18 = vmax.f32 %v1389_v42, 0.0  ;;  %v5656_v12 = vpop.permute.xlu0 %1220 }
 0x86f   :  { %v3300_v15 = vmax.f32 %v1391_v47, 0.0  ;;  %v1506_v53 = vadd.f32 %v1505_v13, %v5627_v17  ;;  %4688 = vmatmul.mubr.msk.bf16.gmra.mrb[152].mxu0 %vm78_vm0, %v5391_v21  ;;  %7374 = vst [vmem:[#allocation3_spill] sm:$0xff] %v5656_v12  ;;  %v3271_v31 = vmax.f32 %v1502_v45, 0.0  ;;  %v5661_v4 = vpop.permute.xlu1 %1225 }
 0x870   :  { %v3302_v30 = vmax.f32 %v1504_v9, 0.0  ;;  %v3301_v33 = vmax.f32 %v1393_v51, 0.0  ;;  %4696 = vmatmul.mubr.msk.bf16.gmra.mrb[152].mxu1 %vm78_vm0, %v5391_v21  ;;  %2102 = vmatprep.mubr.bf16.mxu0 %v7358_v3  ;;  %7375 = vst [vmem:[#allocation4_spill] sm:$0xff] %v5661_v4 }
 0x871   :  { %v5658_v36 = vpack.c.bf16 %v3300_v15, %v3268_v2  ;;  %v3303_v35 = vmax.f32 %v1506_v53, 0.0  ;;  %2215 = vmatprep.mubr.bf16.mxu1 %v7358_v3 }
 0x872   :  { %v5663_v28 = vpack.c.bf16 %v3302_v30, %v3270_v10  ;;  %v1396_v25 = vpop.f32.mrb[48].mxu0  ;;  %v5665_v42 = vpack.c.bf16 %v3301_v33, %v3269_v18 }
 0x873   :  { %v1397_v43 = vadd.f32 %v1396_v25, %v5656_v12  ;;  %v1509_v21 = vpop.f32.mrb[48].mxu1  ;;  %v1398_v47 = vpop.f32.mrb[49].mxu0  ;;  %v5668_v48 = vpack.c.bf16 %v3303_v35, %v3271_v31 }
 0x874   :  { %v1510_v45 = vadd.f32 %v1509_v21, %v5656_v12  ;;  %v1399_v50 = vadd.f32 %v1398_v47, %v5656_v12  ;;  %v1511_v9 = vpop.f32.mrb[49].mxu1  ;;  %v1400_v51 = vpop.f32.mrb[50].mxu0 }
 0x875   :  { %v1512_v13 = vadd.f32 %v1511_v9, %v5656_v12  ;;  %v1401_v2 = vadd.f32 %v1400_v51, %v5661_v4  ;;  %v1513_v15 = vpop.f32.mrb[50].mxu1  ;;  %v1402_v53 = vpop.f32.mrb[51].mxu0  ;;  %v3332_v33 = vmax.f32 %v1397_v43, 0.0 }
 0x876   :  { %v1514_v10 = vadd.f32 %v1513_v15, %v5661_v4  ;;  %v1403_v18 = vadd.f32 %v1402_v53, %v5661_v4  ;;  %v1515_v30 = vpop.f32.mrb[51].mxu1  ;;  %v3334_v25 = vmax.f32 %v1510_v45, 0.0  ;;  %v3333_v21 = vmax.f32 %v1399_v50, 0.0  ;;  %v5682_v51 = vpop.permute.xlu0 %1230 }
 0x877   :  { %v3364_v31 = vmax.f32 %v1401_v2, 0.0  ;;  %v1516_v35 = vadd.f32 %v1515_v30, %v5661_v4  ;;  %4689 = vmatmul.mubr.msk.bf16.gmra.mrb[156].mxu0 %vm78_vm0, %v5402_v22  ;;  %7376 = vst [vmem:[#allocation5_spill] sm:$0xff] %v5682_v51  ;;  %v3335_v15 = vmax.f32 %v1512_v13, 0.0  ;;  %v5687_v2 = vpop.permute.xlu1 %1235 }
 0x878   :  { %v3366_v47 = vmax.f32 %v1514_v10, 0.0  ;;  %v3365_v9 = vmax.f32 %v1403_v18, 0.0  ;;  %4697 = vmatmul.mubr.msk.bf16.gmra.mrb[156].mxu1 %vm78_vm0, %v5402_v22  ;;  %2112 = vmatprep.mubr.bf16.mxu0 %v7358_v3  ;;  %7378 = vst [vmem:[#allocation7_spill] sm:$0xff] %v5687_v2 }
 0x879   :  { %v5684_v53 = vpack.c.bf16 %v3364_v31, %v3332_v33  ;;  %v3367_v43 = vmax.f32 %v1516_v35, 0.0  ;;  %2225 = vmatprep.mubr.bf16.mxu1 %v7358_v3 }
 0x87a   :  { %v5689_v30 = vpack.c.bf16 %v3366_v47, %v3334_v25  ;;  %v1406_v45 = vpop.f32.mrb[52].mxu0  ;;  %v5691_v50 = vpack.c.bf16 %v3365_v9, %v3333_v21 }
 0x87b   :  { %7377 = vst [vmem:[#allocation6_spill] sm:$0xff] %v5684_v53  ;;  %v1407_v10 = vadd.f32 %v1406_v45, %v5682_v51  ;;  %v1519_v22 = vpop.f32.mrb[52].mxu1  ;;  %v1408_v18 = vpop.f32.mrb[53].mxu0  ;;  %v5694_v32 = vpack.c.bf16 %v3367_v43, %v3335_v15 }
 0x87c   :  { %7379 = vst [vmem:[#allocation8_spill] sm:$0xff] %v5689_v30  ;;  %v1520_v13 = vadd.f32 %v1519_v22, %v5682_v51  ;;  %v1409_v33 = vadd.f32 %v1408_v18, %v5682_v51  ;;  %v1521_v31 = vpop.f32.mrb[53].mxu1  ;;  %v1410_v35 = vpop.f32.mrb[54].mxu0 }
 0x87d   :  { %v1522_v34 = vadd.f32 %v1521_v31, %v5682_v51  ;;  %v1411_v25 = vadd.f32 %v1410_v35, %v5687_v2  ;;  %v1523_v47 = vpop.f32.mrb[54].mxu1  ;;  %v1412_v27 = vpop.f32.mrb[55].mxu0  ;;  %v3396_v26 = vmax.f32 %v1407_v10, 0.0  ;;  %v7380_v35 = vmov 0  }
 0x87e   :  { %v1524_v21 = vadd.f32 %v1523_v47, %v5687_v2  ;;  %v1413_v9 = vadd.f32 %v1412_v27, %v5687_v2  ;;  %v1525_v45 = vpop.f32.mrb[55].mxu1  ;;  %v3398_v22 = vmax.f32 %v1520_v13, 0.0  ;;  %v3397_v18 = vmax.f32 %v1409_v33, 0.0  ;;  %v5708_v47 = vpop.permute.xlu0 %1240 }
 0x87f   :  { %v3428_v15 = vmax.f32 %v1411_v25, 0.0  ;;  %v1526_v43 = vadd.f32 %v1525_v45, %v5687_v2  ;;  %4690 = vmatmul.mubr.msk.bf16.gmra.mrb[160].mxu0 %vm78_vm0, %v5413_v23  ;;  %7381 = vst [vmem:[#allocation9_spill] sm:$0xff] %v5708_v47  ;;  %v3399_v27 = vmax.f32 %v1522_v34, 0.0  ;;  %v5713_v25 = vpop.permute.xlu1 %1245 }
 0x880   :  { %v3430_v3 = vmax.f32 %v1524_v21, 0.0  ;;  %v3429_v31 = vmax.f32 %v1413_v9, 0.0  ;;  %4698 = vmatmul.mubr.msk.bf16.gmra.mrb[160].mxu1 %vm78_vm0, %v5413_v23  ;;  %2268 = vmatprep.mubr.bf16.mxu0 %v7380_v35  ;;  %7383 = vst [vmem:[#allocation11_spill] sm:$0xff] %v5713_v25 }
 0x881   :  { %v5710_v30 = vpack.c.bf16 %v3428_v15, %v3396_v26  ;;  %v3431_v10 = vmax.f32 %v1526_v43, 0.0  ;;  %2381 = vmatprep.mubr.bf16.mxu1 %v7380_v35 }
 0x882   :  { %v5715_v45 = vpack.c.bf16 %v3430_v3, %v3398_v22  ;;  %v1416_v13 = vpop.f32.mrb[56].mxu0  ;;  %v5717_v33 = vpack.c.bf16 %v3429_v31, %v3397_v18 }
 0x883   :  { %7382 = vst [vmem:[#allocation10_spill] sm:$0xff] %v5710_v30  ;;  %v1417_v21 = vadd.f32 %v1416_v13, %v5708_v47  ;;  %v1529_v23 = vpop.f32.mrb[56].mxu1  ;;  %v1418_v9 = vpop.f32.mrb[57].mxu0  ;;  %v5720_v53 = vpack.c.bf16 %v3431_v10, %v3399_v27 }
 0x884   :  { %7384 = vst [vmem:[#allocation12_spill] sm:$0xff] %v5715_v45  ;;  %7385 = vst [vmem:[#allocation13_spill] sm:$0xff] %v5717_v33  ;;  %v1530_v34 = vadd.f32 %v1529_v23, %v5708_v47  ;;  %v1419_v26 = vadd.f32 %v1418_v9, %v5708_v47  ;;  %v1531_v15 = vpop.f32.mrb[57].mxu1  ;;  %v1420_v43 = vpop.f32.mrb[58].mxu0 }
 0x885   :  { %7386 = vst [vmem:[#allocation14_spill] sm:$0xff] %v5720_v53  ;;  %v1532_v30 = vadd.f32 %v1531_v15, %v5708_v47  ;;  %v1421_v3 = vadd.f32 %v1420_v43, %v5713_v25  ;;  %v1533_v22 = vpop.f32.mrb[58].mxu1  ;;  %v1422_v45 = vpop.f32.mrb[59].mxu0  ;;  %v3460_v33 = vmax.f32 %v1417_v21, 0.0 }
 0x886   :  { %v1534_v18 = vadd.f32 %v1533_v22, %v5713_v25  ;;  %v1423_v31 = vadd.f32 %v1422_v45, %v5713_v25  ;;  %v1535_v13 = vpop.f32.mrb[59].mxu1  ;;  %v3462_v23 = vmax.f32 %v1530_v34, 0.0  ;;  %v3461_v9 = vmax.f32 %v1419_v26, 0.0  ;;  %v5734_v43 = vpop.permute.xlu0 %1250 }
 0x887   :  { %v3492_v27 = vmax.f32 %v1421_v3, 0.0  ;;  %v1536_v10 = vadd.f32 %v1535_v13, %v5713_v25  ;;  %4699 = vmatmul.mubr.msk.bf16.vlgmr.msra.gmra.mrb[164].mxu0 %vm78_vm0, %v5332_v37  ;;  %7387 = vst [vmem:[#allocation15_spill] sm:$0xff] %v5734_v43  ;;  %v3463_v45 = vmax.f32 %v1532_v30, 0.0  ;;  %v5740_v3 = vpop.permute.xlu1 %1255 }
 0x888   :  { %v3494_v53 = vmax.f32 %v1534_v18, 0.0  ;;  %v3493_v15 = vmax.f32 %v1423_v31, 0.0  ;;  %4707 = vmatmul.mubr.msk.bf16.vlgmr.msra.gmra.mrb[164].mxu1 %vm78_vm0, %v5332_v37  ;;  %2463 = vmatpush1.bf16.msra.mxu0 %v5259_v19 }
 0x889   :  { %v5736_v22 = vpack.c.bf16 %v3492_v27, %v3460_v33  ;;  %v3495_v21 = vmax.f32 %v1536_v10, 0.0  ;;  %2576 = vmatpush1.bf16.msra.mxu1 %v5262_v20  ;;  %2688 = vmatprep.subr.bf16.mxu0 %v5299_v29 }
 0x88a   :  { %v5742_v34 = vpack.c.bf16 %v3494_v53, %v3462_v23  ;;  %2801 = vmatprep.subr.bf16.mxu1 %v5303_v49  ;;  %v1426_v26 = vpop.f32.mrb[60].mxu0  ;;  %2278 = vmatprep.mubr.bf16.mxu0 %v7380_v35  ;;  %v5746_v19 = vpack.c.bf16 %v3493_v15, %v3461_v9 }
 0x88b   :  { %7388 = vst [vmem:[#allocation16_spill] sm:$0xff] %v5736_v22  ;;  %v1427_v37 = vadd.f32 %v1426_v26, %v5734_v43  ;;  %v1539_v30 = vpop.f32.mrb[60].mxu1  ;;  %v1428_v33 = vpop.f32.mrb[61].mxu0  ;;  %2391 = vmatprep.mubr.bf16.mxu1 %v7380_v35  ;;  %v5750_v20 = vpack.c.bf16 %v3495_v21, %v3463_v45 }
 0x88c   :  { %7389 = vst [vmem:[#allocation17_spill] sm:$0xff] %v5742_v34  ;;  %v1540_v29 = vadd.f32 %v1539_v30, %v5734_v43  ;;  %v1429_v53 = vadd.f32 %v1428_v33, %v5734_v43  ;;  %v1541_v18 = vpop.f32.mrb[61].mxu1  ;;  %v1430_v31 = vpop.f32.mrb[62].mxu0 }
 0x88d   :  { %7390 = vst [vmem:[#allocation18_spill] sm:$0xff] %v5750_v20  ;;  %v1542_v49 = vadd.f32 %v1541_v18, %v5734_v43  ;;  %v1431_v13 = vadd.f32 %v1430_v31, %v5740_v3  ;;  %v1543_v27 = vpop.f32.mrb[62].mxu1  ;;  %v1432_v10 = vpop.f32.mrb[63].mxu0  ;;  %v3524_v26 = vmax.f32 %v1427_v37, 0.0 }
 0x88e   :  { %v1544_v23 = vadd.f32 %v1543_v27, %v5740_v3  ;;  %v1433_v9 = vadd.f32 %v1432_v10, %v5740_v3  ;;  %v1545_v15 = vpop.f32.mrb[63].mxu1  ;;  %v3526_v30 = vmax.f32 %v1540_v29, 0.0  ;;  %v3525_v33 = vmax.f32 %v1429_v53, 0.0  ;;  %v5764_v31 = vpop.permute.xlu0 %1260 }
 0x88f   :  { %v3556_v45 = vmax.f32 %v1431_v13, 0.0  ;;  %v1546_v21 = vadd.f32 %v1545_v15, %v5740_v3  ;;  %4700 = vmatmul.mubr.msk.bf16.gmra.mrb[168].mxu0 %vm78_vm0, %v5347_v57  ;;  %v3527_v27 = vmax.f32 %v1542_v49, 0.0  ;;  %v5769_v13 = vpop.permute.xlu1 %1265 }
 0x890   :  { %v3558_v34 = vmax.f32 %v1544_v23, 0.0  ;;  %v3557_v18 = vmax.f32 %v1433_v9, 0.0  ;;  %4708 = vmatmul.mubr.msk.bf16.gmra.mrb[168].mxu1 %vm78_vm0, %v5347_v57  ;;  %2288 = vmatprep.mubr.bf16.mxu0 %v7380_v35 }
 0x891   :  { %v5766_v10 = vpack.c.bf16 %v3556_v45, %v3524_v26  ;;  %v3559_v37 = vmax.f32 %v1546_v21, 0.0  ;;  %2401 = vmatprep.mubr.bf16.mxu1 %v7380_v35 }
 0x892   :  { %v5771_v15 = vpack.c.bf16 %v3558_v34, %v3526_v30  ;;  %v1436_v29 = vpop.f32.mrb[64].mxu0  ;;  %v5773_v53 = vpack.c.bf16 %v3557_v18, %v3525_v33 }
 0x893   :  { %7391 = vst [vmem:[#allocation19_spill] sm:$0xff] %v5766_v10  ;;  %v1437_v23 = vadd.f32 %v1436_v29, %v5764_v31  ;;  %v1549_v57 = vpop.f32.mrb[64].mxu1  ;;  %v1438_v9 = vpop.f32.mrb[65].mxu0  ;;  %v5776_v22 = vpack.c.bf16 %v3559_v37, %v3527_v27 }
 0x894   :  { %7392 = vst [vmem:[#allocation20_spill] sm:$0xff] %v5771_v15  ;;  %7393 = vst [vmem:[#allocation21_spill] sm:$0xff] %v5773_v53  ;;  %v1550_v49 = vadd.f32 %v1549_v57, %v5764_v31  ;;  %v1439_v26 = vadd.f32 %v1438_v9, %v5764_v31  ;;  %v1551_v45 = vpop.f32.mrb[65].mxu1  ;;  %v1440_v21 = vpop.f32.mrb[66].mxu0 }
 0x895   :  { %7394 = vst [vmem:[#allocation22_spill] sm:$0xff] %v5776_v22  ;;  %v1552_v10 = vadd.f32 %v1551_v45, %v5764_v31  ;;  %v1441_v34 = vadd.f32 %v1440_v21, %v5769_v13  ;;  %v1553_v30 = vpop.f32.mrb[66].mxu1  ;;  %v1442_v15 = vpop.f32.mrb[67].mxu0  ;;  %v3588_v53 = vmax.f32 %v1437_v23, 0.0 }
 0x896   :  { %v1554_v33 = vadd.f32 %v1553_v30, %v5769_v13  ;;  %v1443_v18 = vadd.f32 %v1442_v15, %v5769_v13  ;;  %v1555_v29 = vpop.f32.mrb[67].mxu1  ;;  %v3590_v57 = vmax.f32 %v1550_v49, 0.0  ;;  %v3589_v9 = vmax.f32 %v1439_v26, 0.0 }
 0x897   :  { %v3620_v27 = vmax.f32 %v1441_v34, 0.0  ;;  %v1556_v37 = vadd.f32 %v1555_v29, %v5769_v13  ;;  %4701 = vmatmul.mubr.msk.bf16.gmra.mrb[172].mxu0 %vm78_vm0, %v5358_v38  ;;  %v3591_v21 = vmax.f32 %v1552_v10, 0.0 }
 0x898   :  { %v3622_v22 = vmax.f32 %v1554_v33, 0.0  ;;  %v3621_v45 = vmax.f32 %v1443_v18, 0.0  ;;  %4709 = vmatmul.mubr.msk.bf16.gmra.mrb[172].mxu1 %vm78_vm0, %v5358_v38  ;;  %2298 = vmatprep.mubr.bf16.mxu0 %v7380_v35 }
 0x899   :  { %v5790_v30 = vpack.c.bf16 %v3620_v27, %v3588_v53  ;;  %v3623_v15 = vmax.f32 %v1556_v37, 0.0  ;;  %2411 = vmatprep.mubr.bf16.mxu1 %v7380_v35 }
 0x89a   :  { %v5793_v23 = vpack.c.bf16 %v3622_v22, %v3590_v57  ;;  %v1592_v34 = vpop.f32.mrb[68].mxu0  ;;  %v5795_v29 = vpack.c.bf16 %v3621_v45, %v3589_v9 }
 0x89b   :  { %7395 = vst [vmem:[#allocation23_spill] sm:$0xff] %v5790_v30  ;;  %v1593_v49 = vadd.f32 %v1592_v34, %v5554_v58  ;;  %v1705_v26 = vpop.f32.mrb[68].mxu1  ;;  %v1594_v33 = vpop.f32.mrb[69].mxu0  ;;  %v5798_v18 = vpack.c.bf16 %v3623_v15, %v3591_v21 }
 0x89c   :  { %7396 = vst [vmem:[#allocation24_spill] sm:$0xff] %v5793_v23  ;;  %7397 = vst [vmem:[#allocation25_spill] sm:$0xff] %v5795_v29  ;;  %v1706_v38 = vadd.f32 %v1705_v26, %v5554_v58  ;;  %v1595_v10 = vadd.f32 %v1594_v33, %v5554_v58  ;;  %v1707_v53 = vpop.f32.mrb[69].mxu1  ;;  %v1596_v27 = vpop.f32.mrb[70].mxu0 }
 0x89d   :  { %7398 = vst [vmem:[#allocation26_spill] sm:$0xff] %v5798_v18  ;;  %v1708_v37 = vadd.f32 %v1707_v53, %v5554_v58  ;;  %v1597_v22 = vadd.f32 %v1596_v27, %v5557_v62  ;;  %v1709_v57 = vpop.f32.mrb[70].mxu1  ;;  %v1598_v23 = vpop.f32.mrb[71].mxu0  ;;  %v3144_v30 = vmax.f32 %v1593_v49, 0.0 }
 0x89e   :  { %v1710_v9 = vadd.f32 %v1709_v57, %v5557_v62  ;;  %v1599_v45 = vadd.f32 %v1598_v23, %v5557_v62  ;;  %v1711_v34 = vpop.f32.mrb[71].mxu1  ;;  %v3146_v26 = vmax.f32 %v1706_v38, 0.0  ;;  %v3145_v33 = vmax.f32 %v1595_v10, 0.0 }
 0x89f   :  { %v3176_v21 = vmax.f32 %v1597_v22, 0.0  ;;  %v1712_v15 = vadd.f32 %v1711_v34, %v5557_v62  ;;  %4702 = vmatmul.mubr.msk.bf16.gmra.mrb[176].mxu0 %vm78_vm0, %v5369_v39  ;;  %v3147_v27 = vmax.f32 %v1708_v37, 0.0 }
 0x8a0   :  { %v3178_v18 = vmax.f32 %v1710_v9, 0.0  ;;  %v3177_v53 = vmax.f32 %v1599_v45, 0.0  ;;  %4710 = vmatmul.mubr.msk.bf16.gmra.mrb[176].mxu1 %vm78_vm0, %v5369_v39  ;;  %2308 = vmatprep.mubr.bf16.mxu0 %v7380_v35 }
 0x8a1   :  { %v5812_v57 = vpack.c.bf16 %v3176_v21, %v3144_v30  ;;  %v3179_v23 = vmax.f32 %v1712_v15, 0.0  ;;  %2421 = vmatprep.mubr.bf16.mxu1 %v7380_v35 }
 0x8a2   :  { %v5815_v49 = vpack.c.bf16 %v3178_v18, %v3146_v26  ;;  %v5817_v22 = vpack.c.bf16 %v3177_v53, %v3145_v33  ;;  %v1602_v34 = vpop.f32.mrb[72].mxu0 }
 0x8a3   :  { %7399 = vst [vmem:[#allocation27_spill] sm:$0xff] %v5812_v57  ;;  %v5819_v38 = vpack.c.bf16 %v3179_v23, %v3147_v27  ;;  %v1603_v10 = vadd.f32 %v1602_v34, %v5572_v11  ;;  %v1715_v9 = vpop.f32.mrb[72].mxu1  ;;  %v1604_v45 = vpop.f32.mrb[73].mxu0 }
 0x8a4   :  { %7400 = vst [vmem:[#allocation28_spill] sm:$0xff] %v5815_v49  ;;  %7401 = vst [vmem:[#allocation29_spill] sm:$0xff] %v5817_v22  ;;  %v1716_v39 = vadd.f32 %v1715_v9, %v5572_v11  ;;  %v1605_v37 = vadd.f32 %v1604_v45, %v5572_v11  ;;  %v1717_v30 = vpop.f32.mrb[73].mxu1  ;;  %v1606_v21 = vpop.f32.mrb[74].mxu0 }
 0x8a5   :  { %7402 = vst [vmem:[#allocation30_spill] sm:$0xff] %v5819_v38  ;;  %v1718_v15 = vadd.f32 %v1717_v30, %v5572_v11  ;;  %v1607_v18 = vadd.f32 %v1606_v21, %v5577_v5  ;;  %v1719_v26 = vpop.f32.mrb[74].mxu1  ;;  %v1608_v33 = vpop.f32.mrb[75].mxu0  ;;  %v3208_v34 = vmax.f32 %v1603_v10, 0.0 }
 0x8a6   :  { %v1720_v53 = vadd.f32 %v1719_v26, %v5577_v5  ;;  %v1609_v27 = vadd.f32 %v1608_v33, %v5577_v5  ;;  %v1721_v23 = vpop.f32.mrb[75].mxu1  ;;  %v3210_v9 = vmax.f32 %v1716_v39, 0.0  ;;  %v3209_v45 = vmax.f32 %v1605_v37, 0.0 }
 0x8a7   :  { %v3240_v49 = vmax.f32 %v1607_v18, 0.0  ;;  %v1722_v57 = vadd.f32 %v1721_v23, %v5577_v5  ;;  %4703 = vmatmul.mubr.msk.bf16.gmra.mrb[180].mxu0 %vm78_vm0, %v5380_v40  ;;  %v3211_v21 = vmax.f32 %v1718_v15, 0.0 }
 0x8a8   :  { %v3242_v38 = vmax.f32 %v1720_v53, 0.0  ;;  %v3241_v30 = vmax.f32 %v1609_v27, 0.0  ;;  %4711 = vmatmul.mubr.msk.bf16.gmra.mrb[180].mxu1 %vm78_vm0, %v5380_v40  ;;  %2318 = vmatprep.mubr.bf16.mxu0 %v7380_v35 }
 0x8a9   :  { %v5834_v26 = vpack.c.bf16 %v3240_v49, %v3208_v34  ;;  %v3243_v33 = vmax.f32 %v1722_v57, 0.0  ;;  %2431 = vmatprep.mubr.bf16.mxu1 %v7380_v35 }
 0x8aa   :  { %v5837_v10 = vpack.c.bf16 %v3242_v38, %v3210_v9  ;;  %v5839_v18 = vpack.c.bf16 %v3241_v30, %v3209_v45  ;;  %v1612_v23 = vpop.f32.mrb[76].mxu0 }
 0x8ab   :  { %7403 = vst [vmem:[#allocation31_spill] sm:$0xff] %v5834_v26  ;;  %v5841_v39 = vpack.c.bf16 %v3243_v33, %v3211_v21  ;;  %v1613_v37 = vadd.f32 %v1612_v23, %v5613_v1  ;;  %v1725_v53 = vpop.f32.mrb[76].mxu1  ;;  %v1614_v27 = vpop.f32.mrb[77].mxu0 }
 0x8ac   :  { %7404 = vst [vmem:[#allocation32_spill] sm:$0xff] %v5837_v10  ;;  %7405 = vst [vmem:[#allocation33_spill] sm:$0xff] %v5839_v18  ;;  %v1726_v40 = vadd.f32 %v1725_v53, %v5613_v1  ;;  %v1615_v15 = vadd.f32 %v1614_v27, %v5613_v1  ;;  %v1727_v49 = vpop.f32.mrb[77].mxu1  ;;  %v1616_v34 = vpop.f32.mrb[78].mxu0  ;;  %v5854_v53 = vld [vmem:[%s7355_s5 + $0x28] sm:$0xff]  }
 0x8ad   :  { %7406 = vst [vmem:[#allocation34_spill] sm:$0xff] %v5841_v39  ;;  %v1728_v57 = vadd.f32 %v1727_v49, %v5613_v1  ;;  %v1617_v38 = vadd.f32 %v1616_v34, %v5627_v17  ;;  %v1729_v9 = vpop.f32.mrb[78].mxu1  ;;  %v1618_v45 = vpop.f32.mrb[79].mxu0  ;;  %v3272_v23 = vmax.f32 %v1613_v37, 0.0 }
 0x8ae   :  { %v1730_v30 = vadd.f32 %v1729_v9, %v5627_v17  ;;  %v1619_v21 = vadd.f32 %v1618_v45, %v5627_v17  ;;  %v1731_v33 = vpop.f32.mrb[79].mxu1  ;;  %v3274_v27 = vmax.f32 %v1726_v40, 0.0  ;;  %v3273_v49 = vmax.f32 %v1615_v15, 0.0 }
 0x8af   :  { %v3304_v10 = vmax.f32 %v1617_v38, 0.0  ;;  %v1732_v26 = vadd.f32 %v1731_v33, %v5627_v17  ;;  %4704 = vmatmul.mubr.msk.bf16.gmra.mrb[184].mxu0 %vm78_vm0, %v5854_v53  ;;  %v3275_v37 = vmax.f32 %v1728_v57, 0.0 }
 0x8b0   :  { %v3306_v34 = vmax.f32 %v1730_v30, 0.0  ;;  %v3305_v39 = vmax.f32 %v1619_v21, 0.0  ;;  %4712 = vmatmul.mubr.msk.bf16.gmra.mrb[184].mxu1 %vm78_vm0, %v5854_v53  ;;  %2328 = vmatprep.mubr.bf16.mxu0 %v7380_v35 }
 0x8b1   :  { %v5861_v38 = vpack.c.bf16 %v3304_v10, %v3272_v23  ;;  %v3307_v9 = vmax.f32 %v1732_v26, 0.0  ;;  %2441 = vmatprep.mubr.bf16.mxu1 %v7380_v35 }
 0x8b2   :  { %v5864_v45 = vpack.c.bf16 %v3306_v34, %v3274_v27  ;;  %v5866_v33 = vpack.c.bf16 %v3305_v39, %v3273_v49  ;;  %v1622_v18 = vpop.f32.mrb[80].mxu0 }
 0x8b3   :  { %7407 = vst [vmem:[#allocation35_spill] sm:$0xff] %v5861_v38  ;;  %v5868_v40 = vpack.c.bf16 %v3307_v9, %v3275_v37  ;;  %v1623_v15 = vadd.f32 %v1622_v18, %v5656_v12  ;;  %v1735_v30 = vpop.f32.mrb[80].mxu1  ;;  %v1624_v21 = vpop.f32.mrb[81].mxu0 }
 0x8b4   :  { %7408 = vst [vmem:[#allocation36_spill] sm:$0xff] %v5864_v45  ;;  %7409 = vst [vmem:[#allocation37_spill] sm:$0xff] %v5866_v33  ;;  %v1736_v22 = vadd.f32 %v1735_v30, %v5656_v12  ;;  %v1625_v57 = vadd.f32 %v1624_v21, %v5656_v12  ;;  %v1737_v10 = vpop.f32.mrb[81].mxu1  ;;  %v1626_v23 = vpop.f32.mrb[82].mxu0  ;;  %v5881_v30 = vld [vmem:[%s7355_s5 + $0x30] sm:$0xff]  }
 0x8b5   :  { %7410 = vst [vmem:[#allocation38_spill] sm:$0xff] %v5868_v40  ;;  %v1738_v26 = vadd.f32 %v1737_v10, %v5656_v12  ;;  %v1627_v27 = vadd.f32 %v1626_v23, %v5661_v4  ;;  %v1739_v34 = vpop.f32.mrb[82].mxu1  ;;  %v1628_v39 = vpop.f32.mrb[83].mxu0  ;;  %v3336_v18 = vmax.f32 %v1623_v15, 0.0 }
 0x8b6   :  { %v1740_v49 = vadd.f32 %v1739_v34, %v5661_v4  ;;  %v1629_v37 = vadd.f32 %v1628_v39, %v5661_v4  ;;  %v1741_v9 = vpop.f32.mrb[83].mxu1  ;;  %v3338_v21 = vmax.f32 %v1736_v22, 0.0  ;;  %v3337_v10 = vmax.f32 %v1625_v57, 0.0 }
 0x8b7   :  { %v3368_v45 = vmax.f32 %v1627_v27, 0.0  ;;  %v1742_v38 = vadd.f32 %v1741_v9, %v5661_v4  ;;  %4705 = vmatmul.mubr.msk.bf16.gmra.mrb[188].mxu0 %vm78_vm0, %v5881_v30  ;;  %v3339_v15 = vmax.f32 %v1738_v26, 0.0 }
 0x8b8   :  { %v3370_v23 = vmax.f32 %v1740_v49, 0.0  ;;  %v3369_v40 = vmax.f32 %v1629_v37, 0.0  ;;  %4713 = vmatmul.mubr.msk.bf16.gmra.mrb[188].mxu1 %vm78_vm0, %v5881_v30  ;;  %2338 = vmatprep.mubr.bf16.mxu0 %v7380_v35 }
 0x8b9   :  { %v5888_v27 = vpack.c.bf16 %v3368_v45, %v3336_v18  ;;  %v3371_v34 = vmax.f32 %v1742_v38, 0.0  ;;  %2451 = vmatprep.mubr.bf16.mxu1 %v7380_v35 }
 0x8ba   :  { %v5891_v39 = vpack.c.bf16 %v3370_v23, %v3338_v21  ;;  %v5893_v9 = vpack.c.bf16 %v3369_v40, %v3337_v10  ;;  %v1632_v33 = vpop.f32.mrb[84].mxu0 }
 0x8bb   :  { %7411 = vst [vmem:[#allocation39_spill] sm:$0xff] %v5888_v27  ;;  %v5895_v22 = vpack.c.bf16 %v3371_v34, %v3339_v15  ;;  %v1633_v57 = vadd.f32 %v1632_v33, %v5682_v51  ;;  %v1745_v49 = vpop.f32.mrb[84].mxu1  ;;  %v1634_v37 = vpop.f32.mrb[85].mxu0 }
 0x8bc   :  { %7412 = vst [vmem:[#allocation40_spill] sm:$0xff] %v5891_v39  ;;  %7413 = vst [vmem:[#allocation41_spill] sm:$0xff] %v5893_v9  ;;  %v1746_v29 = vadd.f32 %v1745_v49, %v5682_v51  ;;  %v1635_v26 = vadd.f32 %v1634_v37, %v5682_v51  ;;  %v1747_v45 = vpop.f32.mrb[85].mxu1  ;;  %v1636_v18 = vpop.f32.mrb[86].mxu0  ;;  %v5908_v49 = vld [vmem:[%s7355_s5 + $0x38] sm:$0xff]  }
 0x8bd   :  { %7414 = vst [vmem:[#allocation42_spill] sm:$0xff] %v5895_v22  ;;  %v1748_v38 = vadd.f32 %v1747_v45, %v5682_v51  ;;  %v1637_v21 = vadd.f32 %v1636_v18, %v5687_v2  ;;  %v1749_v23 = vpop.f32.mrb[86].mxu1  ;;  %v1638_v40 = vpop.f32.mrb[87].mxu0  ;;  %v3400_v33 = vmax.f32 %v1633_v57, 0.0 }
 0x8be   :  { %v1750_v10 = vadd.f32 %v1749_v23, %v5687_v2  ;;  %v1639_v15 = vadd.f32 %v1638_v40, %v5687_v2  ;;  %v1751_v34 = vpop.f32.mrb[87].mxu1  ;;  %v3402_v37 = vmax.f32 %v1746_v29, 0.0  ;;  %v3401_v45 = vmax.f32 %v1635_v26, 0.0 }
 0x8bf   :  { %v3432_v39 = vmax.f32 %v1637_v21, 0.0  ;;  %v1752_v27 = vadd.f32 %v1751_v34, %v5687_v2  ;;  %4706 = vmatmul.mubr.msk.bf16.gmra.mrb[192].mxu0 %vm78_vm0, %v5908_v49  ;;  %v3403_v57 = vmax.f32 %v1748_v38, 0.0 }
 0x8c0   :  { %v3434_v18 = vmax.f32 %v1750_v10, 0.0  ;;  %v3433_v22 = vmax.f32 %v1639_v15, 0.0  ;;  %4714 = vmatmul.mubr.msk.bf16.gmra.mrb[192].mxu1 %vm78_vm0, %v5908_v49  ;;  %2494 = vmatprep.mubr.bf16.mxu0 %v7380_v35 }
 0x8c1   :  { %v5915_v21 = vpack.c.bf16 %v3432_v39, %v3400_v33  ;;  %v3435_v23 = vmax.f32 %v1752_v27, 0.0  ;;  %2607 = vmatprep.mubr.bf16.mxu1 %v7380_v35 }
 0x8c2   :  { %v5918_v40 = vpack.c.bf16 %v3434_v18, %v3402_v37  ;;  %v5920_v34 = vpack.c.bf16 %v3433_v22, %v3401_v45  ;;  %v1642_v9 = vpop.f32.mrb[88].mxu0 }
 0x8c3   :  { %7415 = vst [vmem:[#allocation43_spill] sm:$0xff] %v5915_v21  ;;  %v5922_v29 = vpack.c.bf16 %v3435_v23, %v3403_v57  ;;  %v1643_v26 = vadd.f32 %v1642_v9, %v5708_v47  ;;  %v1755_v10 = vpop.f32.mrb[88].mxu1  ;;  %v1644_v15 = vpop.f32.mrb[89].mxu0 }
 0x8c4   :  { %7416 = vst [vmem:[#allocation44_spill] sm:$0xff] %v5918_v40  ;;  %v1756_v20 = vadd.f32 %v1755_v10, %v5708_v47  ;;  %v1645_v38 = vadd.f32 %v1644_v15, %v5708_v47  ;;  %v1757_v39 = vpop.f32.mrb[89].mxu1  ;;  %v1646_v33 = vpop.f32.mrb[90].mxu0  ;;  %v5935_v10 = vld [vmem:[%s7355_s5] sm:$0xff]  }
 0x8c5   :  { %7417 = vst [vmem:[#allocation45_spill] sm:$0xff] %v5922_v29  ;;  %v1758_v27 = vadd.f32 %v1757_v39, %v5708_v47  ;;  %v1647_v37 = vadd.f32 %v1646_v33, %v5713_v25  ;;  %v1759_v18 = vpop.f32.mrb[90].mxu1  ;;  %v1648_v22 = vpop.f32.mrb[91].mxu0  ;;  %v3464_v9 = vmax.f32 %v1643_v26, 0.0 }
 0x8c6   :  { %v1760_v45 = vadd.f32 %v1759_v18, %v5713_v25  ;;  %v1649_v57 = vadd.f32 %v1648_v22, %v5713_v25  ;;  %v1761_v23 = vpop.f32.mrb[91].mxu1  ;;  %v3466_v15 = vmax.f32 %v1756_v20, 0.0  ;;  %v3465_v39 = vmax.f32 %v1645_v38, 0.0 }
 0x8c7   :  { %v3496_v40 = vmax.f32 %v1647_v37, 0.0  ;;  %v1762_v21 = vadd.f32 %v1761_v23, %v5713_v25  ;;  %4715 = vmatmul.mubr.msk.bf16.vlgmr.msra.gmra.mrb[196].mxu0 %vm78_vm0, %v5935_v10  ;;  %v3467_v26 = vmax.f32 %v1758_v27, 0.0  ;;  %v7419_v22 = vpack.c.bf16 %v5619_v6, %v5597_v46 }
 0x8c8   :  { %v3498_v33 = vmax.f32 %v1760_v45, 0.0  ;;  %v3497_v29 = vmax.f32 %v1649_v57, 0.0  ;;  %4723 = vmatmul.mubr.msk.bf16.vlgmr.msra.gmra.mrb[196].mxu1 %vm78_vm0, %v5935_v10  ;;  %2689 = vmatpush1.bf16.msra.mxu0 %v5307_v54  ;;  %v7422_v38 = vpack.c.bf16 %v5625_v60, %v5622_v8 }
 0x8c9   :  { %v5942_v37 = vpack.c.bf16 %v3496_v40, %v3464_v9  ;;  %v3499_v18 = vmax.f32 %v1762_v21, 0.0  ;;  %2802 = vmatpush1.bf16.msra.mxu1 %v5312_v55  ;;  %2914 = vmatprep.subr.bf16.mxu0 %v7419_v22 }
 0x8ca   :  { %v5948_v23 = vpack.c.bf16 %v3498_v33, %v3466_v15  ;;  %v5950_v20 = vpack.c.bf16 %v3497_v29, %v3465_v39  ;;  %3027 = vmatprep.subr.bf16.mxu1 %v7422_v38  ;;  %v1652_v45 = vpop.f32.mrb[92].mxu0  ;;  %2504 = vmatprep.mubr.bf16.mxu0 %v7380_v35  ;;  %v5970_v38 = vld [vmem:[%s7355_s5 + $0x8] sm:$0xff]  }
 0x8cb   :  { %7418 = vst [vmem:[#allocation46_spill] sm:$0xff] %v5942_v37  ;;  %v5956_v54 = vpack.c.bf16 %v3499_v18, %v3467_v26  ;;  %v1653_v21 = vadd.f32 %v1652_v45, %v5734_v43  ;;  %v1765_v55 = vpop.f32.mrb[92].mxu1  ;;  %v1654_v40 = vpop.f32.mrb[93].mxu0  ;;  %2617 = vmatprep.mubr.bf16.mxu1 %v7380_v35 }
 0x8cc   :  { %7420 = vst [vmem:[#allocation47_spill] sm:$0xff] %v5948_v23  ;;  %7421 = vst [vmem:[#allocation48_spill] sm:$0xff] %v5950_v20  ;;  %v1766_v46 = vadd.f32 %v1765_v55, %v5734_v43  ;;  %v1655_v6 = vadd.f32 %v1654_v40, %v5734_v43  ;;  %v1767_v29 = vpop.f32.mrb[93].mxu1  ;;  %v1656_v27 = vpop.f32.mrb[94].mxu0 }
 0x8cd   :  { %7423 = vst [vmem:[#allocation49_spill] sm:$0xff] %v5956_v54  ;;  %v1768_v8 = vadd.f32 %v1767_v29, %v5734_v43  ;;  %v1657_v60 = vadd.f32 %v1656_v27, %v5740_v3  ;;  %v1769_v57 = vpop.f32.mrb[94].mxu1  ;;  %v1658_v9 = vpop.f32.mrb[95].mxu0  ;;  %v3528_v26 = vmax.f32 %v1653_v21, 0.0 }
 0x8ce   :  { %v1770_v15 = vadd.f32 %v1769_v57, %v5740_v3  ;;  %v1659_v39 = vadd.f32 %v1658_v9, %v5740_v3  ;;  %v1771_v33 = vpop.f32.mrb[95].mxu1  ;;  %v3530_v45 = vmax.f32 %v1766_v46, 0.0  ;;  %v3529_v55 = vmax.f32 %v1655_v6, 0.0 }
 0x8cf   :  { %v3560_v18 = vmax.f32 %v1657_v60, 0.0  ;;  %v1772_v22 = vadd.f32 %v1771_v33, %v5740_v3  ;;  %4716 = vmatmul.mubr.msk.bf16.gmra.mrb[200].mxu0 %vm78_vm0, %v5970_v38  ;;  %v3531_v21 = vmax.f32 %v1768_v8, 0.0 }
 0x8d0   :  { %v3562_v40 = vmax.f32 %v1770_v15, 0.0  ;;  %v3561_v29 = vmax.f32 %v1659_v39, 0.0  ;;  %4724 = vmatmul.mubr.msk.bf16.gmra.mrb[200].mxu1 %vm78_vm0, %v5970_v38  ;;  %2514 = vmatprep.mubr.bf16.mxu0 %v7380_v35 }
 0x8d1   :  { %v5977_v27 = vpack.c.bf16 %v3560_v18, %v3528_v26  ;;  %v3563_v60 = vmax.f32 %v1772_v22, 0.0  ;;  %2627 = vmatprep.mubr.bf16.mxu1 %v7380_v35 }
 0x8d2   :  { %v5980_v57 = vpack.c.bf16 %v3562_v40, %v3530_v45  ;;  %v5982_v9 = vpack.c.bf16 %v3561_v29, %v3529_v55  ;;  %v1662_v33 = vpop.f32.mrb[96].mxu0 }
 0x8d3   :  { %7424 = vst [vmem:[#allocation50_spill] sm:$0xff] %v5977_v27  ;;  %v5984_v46 = vpack.c.bf16 %v3563_v60, %v3531_v21  ;;  %v1663_v6 = vadd.f32 %v1662_v33, %v5764_v31  ;;  %v1775_v15 = vpop.f32.mrb[96].mxu1  ;;  %v1664_v39 = vpop.f32.mrb[97].mxu0 }
 0x8d4   :  { %7425 = vst [vmem:[#allocation51_spill] sm:$0xff] %v5980_v57  ;;  %7426 = vst [vmem:[#allocation52_spill] sm:$0xff] %v5982_v9  ;;  %v1776_v23 = vadd.f32 %v1775_v15, %v5764_v31  ;;  %v1665_v8 = vadd.f32 %v1664_v39, %v5764_v31  ;;  %v1777_v26 = vpop.f32.mrb[97].mxu1  ;;  %v1666_v18 = vpop.f32.mrb[98].mxu0  ;;  %v5997_v15 = vld [vmem:[%s7355_s5 + $0x10] sm:$0xff]  }
 0x8d5   :  { %7427 = vst [vmem:[#allocation53_spill] sm:$0xff] %v5984_v46  ;;  %v1778_v22 = vadd.f32 %v1777_v26, %v5764_v31  ;;  %v1667_v45 = vadd.f32 %v1666_v18, %v5769_v13  ;;  %v1779_v40 = vpop.f32.mrb[98].mxu1  ;;  %v1668_v55 = vpop.f32.mrb[99].mxu0  ;;  %v3592_v33 = vmax.f32 %v1663_v6, 0.0 }
 0x8d6   :  { %v1780_v29 = vadd.f32 %v1779_v40, %v5769_v13  ;;  %v1669_v21 = vadd.f32 %v1668_v55, %v5769_v13  ;;  %v1781_v60 = vpop.f32.mrb[99].mxu1  ;;  %v3594_v39 = vmax.f32 %v1776_v23, 0.0  ;;  %v3593_v26 = vmax.f32 %v1665_v8, 0.0 }
 0x8d7   :  { %v3624_v57 = vmax.f32 %v1667_v45, 0.0  ;;  %v1782_v27 = vadd.f32 %v1781_v60, %v5769_v13  ;;  %4717 = vmatmul.mubr.msk.bf16.gmra.mrb[204].mxu0 %vm78_vm0, %v5997_v15  ;;  %v3595_v6 = vmax.f32 %v1778_v22, 0.0 }
 0x8d8   :  { %v3626_v18 = vmax.f32 %v1780_v29, 0.0  ;;  %v3625_v46 = vmax.f32 %v1669_v21, 0.0  ;;  %4725 = vmatmul.mubr.msk.bf16.gmra.mrb[204].mxu1 %vm78_vm0, %v5997_v15  ;;  %2524 = vmatprep.mubr.bf16.mxu0 %v7380_v35 }
 0x8d9   :  { %v6004_v45 = vpack.c.bf16 %v3624_v57, %v3592_v33  ;;  %v3627_v40 = vmax.f32 %v1782_v27, 0.0  ;;  %2637 = vmatprep.mubr.bf16.mxu1 %v7380_v35 }
 0x8da   :  { %v6007_v55 = vpack.c.bf16 %v3626_v18, %v3594_v39  ;;  %v6009_v60 = vpack.c.bf16 %v3625_v46, %v3593_v26  ;;  %v1818_v9 = vpop.f32.mrb[100].mxu0 }
 0x8db   :  { %7428 = vst [vmem:[#allocation54_spill] sm:$0xff] %v6004_v45  ;;  %v6011_v23 = vpack.c.bf16 %v3627_v40, %v3595_v6  ;;  %v1819_v8 = vadd.f32 %v1818_v9, %v5554_v58  ;;  %v1931_v29 = vpop.f32.mrb[100].mxu1  ;;  %v1820_v21 = vpop.f32.mrb[101].mxu0 }
 0x8dc   :  { %7429 = vst [vmem:[#allocation55_spill] sm:$0xff] %v6007_v55  ;;  %7430 = vst [vmem:[#allocation56_spill] sm:$0xff] %v6009_v60  ;;  %v1932_v37 = vadd.f32 %v1931_v29, %v5554_v58  ;;  %v1821_v22 = vadd.f32 %v1820_v21, %v5554_v58  ;;  %v1933_v57 = vpop.f32.mrb[101].mxu1  ;;  %v1822_v33 = vpop.f32.mrb[102].mxu0  ;;  %v6024_v29 = vld [vmem:[%s7355_s5 + $0x18] sm:$0xff]  }
 0x8dd   :  { %7431 = vst [vmem:[#allocation57_spill] sm:$0xff] %v6011_v23  ;;  %v1934_v27 = vadd.f32 %v1933_v57, %v5554_v58  ;;  %v1823_v39 = vadd.f32 %v1822_v33, %v5557_v62  ;;  %v1935_v18 = vpop.f32.mrb[102].mxu1  ;;  %v1824_v46 = vpop.f32.mrb[103].mxu0  ;;  %v3148_v9 = vmax.f32 %v1819_v8, 0.0 }
 0x8de   :  { %v1936_v26 = vadd.f32 %v1935_v18, %v5557_v62  ;;  %v1825_v6 = vadd.f32 %v1824_v46, %v5557_v62  ;;  %v1937_v40 = vpop.f32.mrb[103].mxu1  ;;  %v3150_v21 = vmax.f32 %v1932_v37, 0.0  ;;  %v3149_v57 = vmax.f32 %v1821_v22, 0.0 }
 0x8df   :  { %v3180_v55 = vmax.f32 %v1823_v39, 0.0  ;;  %v1938_v45 = vadd.f32 %v1937_v40, %v5557_v62  ;;  %4718 = vmatmul.mubr.msk.bf16.gmra.mrb[208].mxu0 %vm78_vm0, %v6024_v29  ;;  %v3151_v8 = vmax.f32 %v1934_v27, 0.0 }
 0x8e0   :  { %v3182_v33 = vmax.f32 %v1936_v26, 0.0  ;;  %v3181_v23 = vmax.f32 %v1825_v6, 0.0  ;;  %4726 = vmatmul.mubr.msk.bf16.gmra.mrb[208].mxu1 %vm78_vm0, %v6024_v29  ;;  %2534 = vmatprep.mubr.bf16.mxu0 %v7380_v35 }
 0x8e1   :  { %v6031_v39 = vpack.c.bf16 %v3180_v55, %v3148_v9  ;;  %v3183_v18 = vmax.f32 %v1938_v45, 0.0  ;;  %2647 = vmatprep.mubr.bf16.mxu1 %v7380_v35 }
 0x8e2   :  { %v6034_v46 = vpack.c.bf16 %v3182_v33, %v3150_v21  ;;  %v6036_v40 = vpack.c.bf16 %v3181_v23, %v3149_v57  ;;  %v1828_v60 = vpop.f32.mrb[104].mxu0 }
 0x8e3   :  { %7432 = vst [vmem:[#allocation58_spill] sm:$0xff] %v6031_v39  ;;  %v6038_v37 = vpack.c.bf16 %v3183_v18, %v3151_v8  ;;  %v1829_v22 = vadd.f32 %v1828_v60, %v5572_v11  ;;  %v1941_v26 = vpop.f32.mrb[104].mxu1  ;;  %v1830_v6 = vpop.f32.mrb[105].mxu0 }
 0x8e4   :  { %7433 = vst [vmem:[#allocation59_spill] sm:$0xff] %v6034_v46  ;;  %7434 = vst [vmem:[#allocation60_spill] sm:$0xff] %v6036_v40  ;;  %v1942_v54 = vadd.f32 %v1941_v26, %v5572_v11  ;;  %v1831_v27 = vadd.f32 %v1830_v6, %v5572_v11  ;;  %v1943_v55 = vpop.f32.mrb[105].mxu1  ;;  %v1832_v9 = vpop.f32.mrb[106].mxu0  ;;  %v6051_v26 = vld [vmem:[%s7355_s5 + $0x20] sm:$0xff]  }
 0x8e5   :  { %7435 = vst [vmem:[#allocation61_spill] sm:$0xff] %v6038_v37  ;;  %v1944_v45 = vadd.f32 %v1943_v55, %v5572_v11  ;;  %v1833_v21 = vadd.f32 %v1832_v9, %v5577_v5  ;;  %v1945_v33 = vpop.f32.mrb[106].mxu1  ;;  %v1834_v23 = vpop.f32.mrb[107].mxu0  ;;  %v3212_v60 = vmax.f32 %v1829_v22, 0.0 }
 0x8e6   :  { %v1946_v57 = vadd.f32 %v1945_v33, %v5577_v5  ;;  %v1835_v8 = vadd.f32 %v1834_v23, %v5577_v5  ;;  %v1947_v18 = vpop.f32.mrb[107].mxu1  ;;  %v3214_v6 = vmax.f32 %v1942_v54, 0.0  ;;  %v3213_v55 = vmax.f32 %v1831_v27, 0.0 }
 0x8e7   :  { %v3244_v46 = vmax.f32 %v1833_v21, 0.0  ;;  %v1948_v39 = vadd.f32 %v1947_v18, %v5577_v5  ;;  %4719 = vmatmul.mubr.msk.bf16.gmra.mrb[212].mxu0 %vm78_vm0, %v6051_v26  ;;  %v3215_v22 = vmax.f32 %v1944_v45, 0.0 }
 0x8e8   :  { %v3246_v9 = vmax.f32 %v1946_v57, 0.0  ;;  %v3245_v37 = vmax.f32 %v1835_v8, 0.0  ;;  %4727 = vmatmul.mubr.msk.bf16.gmra.mrb[212].mxu1 %vm78_vm0, %v6051_v26  ;;  %2544 = vmatprep.mubr.bf16.mxu0 %v7380_v35 }
 0x8e9   :  { %v6058_v21 = vpack.c.bf16 %v3244_v46, %v3212_v60  ;;  %v3247_v33 = vmax.f32 %v1948_v39, 0.0  ;;  %2657 = vmatprep.mubr.bf16.mxu1 %v7380_v35 }
 0x8ea   :  { %v6061_v23 = vpack.c.bf16 %v3246_v9, %v3214_v6  ;;  %v6063_v18 = vpack.c.bf16 %v3245_v37, %v3213_v55  ;;  %v1838_v40 = vpop.f32.mrb[108].mxu0 }
 0x8eb   :  { %7436 = vst [vmem:[#allocation62_spill] sm:$0xff] %v6058_v21  ;;  %v6065_v54 = vpack.c.bf16 %v3247_v33, %v3215_v22  ;;  %v1839_v27 = vadd.f32 %v1838_v40, %v5613_v1  ;;  %v1951_v57 = vpop.f32.mrb[108].mxu1  ;;  %v1840_v8 = vpop.f32.mrb[109].mxu0 }
 0x8ec   :  { %7437 = vst [vmem:[#allocation63_spill] sm:$0xff] %v6061_v23  ;;  %v1952_v20 = vadd.f32 %v1951_v57, %v5613_v1  ;;  %v1841_v45 = vadd.f32 %v1840_v8, %v5613_v1  ;;  %v1953_v46 = vpop.f32.mrb[109].mxu1  ;;  %v1842_v60 = vpop.f32.mrb[110].mxu0 }
 0x8ed   :  { %7438 = vst [vmem:[#allocation64_spill] sm:$0xff] %v6065_v54  ;;  %v1954_v39 = vadd.f32 %v1953_v46, %v5613_v1  ;;  %v1843_v6 = vadd.f32 %v1842_v60, %v5627_v17  ;;  %v1955_v9 = vpop.f32.mrb[110].mxu1  ;;  %v1844_v37 = vpop.f32.mrb[111].mxu0  ;;  %v3276_v40 = vmax.f32 %v1839_v27, 0.0 }
 0x8ee   :  { %v1956_v55 = vadd.f32 %v1955_v9, %v5627_v17  ;;  %v1845_v22 = vadd.f32 %v1844_v37, %v5627_v17  ;;  %v1957_v33 = vpop.f32.mrb[111].mxu1  ;;  %v3278_v57 = vmax.f32 %v1952_v20, 0.0  ;;  %v3277_v8 = vmax.f32 %v1841_v45, 0.0 }
 0x8ef   :  { %v3308_v23 = vmax.f32 %v1843_v6, 0.0  ;;  %v1958_v21 = vadd.f32 %v1957_v33, %v5627_v17  ;;  %4720 = vmatmul.mubr.msk.bf16.gmra.mrb[216].mxu0 %vm78_vm0, %v5854_v53  ;;  %v3279_v60 = vmax.f32 %v1954_v39, 0.0 }
 0x8f0   :  { %v3310_v54 = vmax.f32 %v1956_v55, 0.0  ;;  %v3309_v46 = vmax.f32 %v1845_v22, 0.0  ;;  %4728 = vmatmul.mubr.msk.bf16.gmra.mrb[216].mxu1 %vm78_vm0, %v5854_v53  ;;  %2554 = vmatprep.mubr.bf16.mxu0 %v7380_v35 }
 0x8f1   :  { %v6080_v9 = vpack.c.bf16 %v3308_v23, %v3276_v40  ;;  %v3311_v37 = vmax.f32 %v1958_v21, 0.0  ;;  %2667 = vmatprep.mubr.bf16.mxu1 %v7380_v35 }
 0x8f2   :  { %v6083_v27 = vpack.c.bf16 %v3310_v54, %v3278_v57  ;;  %v6085_v6 = vpack.c.bf16 %v3309_v46, %v3277_v8  ;;  %v1848_v33 = vpop.f32.mrb[112].mxu0 }
 0x8f3   :  { %7439 = vst [vmem:[#allocation65_spill] sm:$0xff] %v6080_v9  ;;  %v6087_v20 = vpack.c.bf16 %v3311_v37, %v3279_v60  ;;  %v1849_v45 = vadd.f32 %v1848_v33, %v5656_v12  ;;  %v1961_v55 = vpop.f32.mrb[112].mxu1  ;;  %v1850_v22 = vpop.f32.mrb[113].mxu0 }
 0x8f4   :  { %7440 = vst [vmem:[#allocation66_spill] sm:$0xff] %v6083_v27  ;;  %v1962_v53 = vadd.f32 %v1961_v55, %v5656_v12  ;;  %v1851_v39 = vadd.f32 %v1850_v22, %v5656_v12  ;;  %v1963_v23 = vpop.f32.mrb[113].mxu1  ;;  %v1852_v40 = vpop.f32.mrb[114].mxu0 }
 0x8f5   :  { %7441 = vst [vmem:[#allocation67_spill] sm:$0xff] %v6087_v20  ;;  %v1964_v21 = vadd.f32 %v1963_v23, %v5656_v12  ;;  %v1853_v54 = vadd.f32 %v1852_v40, %v5661_v4  ;;  %v1965_v57 = vpop.f32.mrb[114].mxu1  ;;  %v1854_v8 = vpop.f32.mrb[115].mxu0  ;;  %v3340_v33 = vmax.f32 %v1849_v45, 0.0 }
 0x8f6   :  { %v1966_v46 = vadd.f32 %v1965_v57, %v5661_v4  ;;  %v1855_v60 = vadd.f32 %v1854_v8, %v5661_v4  ;;  %v1967_v37 = vpop.f32.mrb[115].mxu1  ;;  %v3342_v55 = vmax.f32 %v1962_v53, 0.0  ;;  %v3341_v22 = vmax.f32 %v1851_v39, 0.0 }
 0x8f7   :  { %v3372_v27 = vmax.f32 %v1853_v54, 0.0  ;;  %v1968_v9 = vadd.f32 %v1967_v37, %v5661_v4  ;;  %4721 = vmatmul.mubr.msk.bf16.gmra.mrb[220].mxu0 %vm78_vm0, %v5881_v30  ;;  %v3343_v40 = vmax.f32 %v1964_v21, 0.0 }
 0x8f8   :  { %v3374_v20 = vmax.f32 %v1966_v46, 0.0  ;;  %v3373_v23 = vmax.f32 %v1855_v60, 0.0  ;;  %4729 = vmatmul.mubr.msk.bf16.gmra.mrb[220].mxu1 %vm78_vm0, %v5881_v30  ;;  %2564 = vmatprep.mubr.bf16.mxu0 %v7380_v35 }
 0x8f9   :  { %v6102_v57 = vpack.c.bf16 %v3372_v27, %v3340_v33  ;;  %v3375_v8 = vmax.f32 %v1968_v9, 0.0  ;;  %2677 = vmatprep.mubr.bf16.mxu1 %v7380_v35 }
 0x8fa   :  { %v6105_v45 = vpack.c.bf16 %v3374_v20, %v3342_v55  ;;  %v6107_v54 = vpack.c.bf16 %v3373_v23, %v3341_v22  ;;  %v1858_v37 = vpop.f32.mrb[116].mxu0 }
 0x8fb   :  { %7442 = vst [vmem:[#allocation68_spill] sm:$0xff] %v6102_v57  ;;  %v6109_v53 = vpack.c.bf16 %v3375_v8, %v3343_v40  ;;  %v1859_v39 = vadd.f32 %v1858_v37, %v5682_v51  ;;  %v1971_v46 = vpop.f32.mrb[116].mxu1  ;;  %v1860_v60 = vpop.f32.mrb[117].mxu0 }
 0x8fc   :  { %7443 = vst [vmem:[#allocation69_spill] sm:$0xff] %v6105_v45  ;;  %v1972_v30 = vadd.f32 %v1971_v46, %v5682_v51  ;;  %v1861_v21 = vadd.f32 %v1860_v60, %v5682_v51  ;;  %v1973_v27 = vpop.f32.mrb[117].mxu1  ;;  %v1862_v33 = vpop.f32.mrb[118].mxu0 }
 0x8fd   :  { %7444 = vst [vmem:[#allocation70_spill] sm:$0xff] %v6109_v53  ;;  %v1974_v9 = vadd.f32 %v1973_v27, %v5682_v51  ;;  %v1863_v20 = vadd.f32 %v1862_v33, %v5687_v2  ;;  %v1975_v55 = vpop.f32.mrb[118].mxu1  ;;  %v1864_v22 = vpop.f32.mrb[119].mxu0  ;;  %v3404_v37 = vmax.f32 %v1859_v39, 0.0 }
 0x8fe   :  { %v1976_v23 = vadd.f32 %v1975_v55, %v5687_v2  ;;  %v1865_v40 = vadd.f32 %v1864_v22, %v5687_v2  ;;  %v1977_v8 = vpop.f32.mrb[119].mxu1  ;;  %v3406_v46 = vmax.f32 %v1972_v30, 0.0  ;;  %v3405_v60 = vmax.f32 %v1861_v21, 0.0 }
 0x8ff   :  { %v3436_v45 = vmax.f32 %v1863_v20, 0.0  ;;  %v1978_v57 = vadd.f32 %v1977_v8, %v5687_v2  ;;  %4722 = vmatmul.mubr.msk.bf16.gmra.mrb[224].mxu0 %vm78_vm0, %v5908_v49  ;;  %v3407_v33 = vmax.f32 %v1974_v9, 0.0 }
 0x900   :  { %v3438_v53 = vmax.f32 %v1976_v23, 0.0  ;;  %v3437_v27 = vmax.f32 %v1865_v40, 0.0  ;;  %4730 = vmatmul.mubr.msk.bf16.gmra.mrb[224].mxu1 %vm78_vm0, %v5908_v49  ;;  %2720 = vmatprep.mubr.bf16.mxu0 %v7380_v35 }
 0x901   :  { %v6124_v55 = vpack.c.bf16 %v3436_v45, %v3404_v37  ;;  %v3439_v22 = vmax.f32 %v1978_v57, 0.0  ;;  %2833 = vmatprep.mubr.bf16.mxu1 %v7380_v35 }
 0x902   :  { %v6127_v39 = vpack.c.bf16 %v3438_v53, %v3406_v46  ;;  %v6129_v20 = vpack.c.bf16 %v3437_v27, %v3405_v60  ;;  %v1868_v8 = vpop.f32.mrb[120].mxu0 }
 0x903   :  { %7445 = vst [vmem:[#allocation71_spill] sm:$0xff] %v6124_v55  ;;  %v6131_v30 = vpack.c.bf16 %v3439_v22, %v3407_v33  ;;  %v1869_v21 = vadd.f32 %v1868_v8, %v5708_v47  ;;  %v1981_v23 = vpop.f32.mrb[120].mxu1  ;;  %v1870_v40 = vpop.f32.mrb[121].mxu0 }
 0x904   :  { %7446 = vst [vmem:[#allocation72_spill] sm:$0xff] %v6127_v39  ;;  %v1982_v49 = vadd.f32 %v1981_v23, %v5708_v47  ;;  %v1871_v9 = vadd.f32 %v1870_v40, %v5708_v47  ;;  %v1983_v45 = vpop.f32.mrb[121].mxu1  ;;  %v1872_v37 = vpop.f32.mrb[122].mxu0 }
 0x905   :  { %7447 = vst [vmem:[#allocation73_spill] sm:$0xff] %v6131_v30  ;;  %v1984_v57 = vadd.f32 %v1983_v45, %v5708_v47  ;;  %v1873_v53 = vadd.f32 %v1872_v37, %v5713_v25  ;;  %v1985_v46 = vpop.f32.mrb[122].mxu1  ;;  %v1874_v60 = vpop.f32.mrb[123].mxu0  ;;  %v3468_v8 = vmax.f32 %v1869_v21, 0.0  ;;  %v7448_v37 = vpack.c.bf16 %v5600_v52, %v5584_v61 }
 0x906   :  { %v1986_v27 = vadd.f32 %v1985_v46, %v5713_v25  ;;  %v1875_v33 = vadd.f32 %v1874_v60, %v5713_v25  ;;  %v1987_v22 = vpop.f32.mrb[123].mxu1  ;;  %v3470_v23 = vmax.f32 %v1982_v49, 0.0  ;;  %v3469_v40 = vmax.f32 %v1871_v9, 0.0 }
 0x907   :  { %v3500_v39 = vmax.f32 %v1873_v53, 0.0  ;;  %v1988_v55 = vadd.f32 %v1987_v22, %v5713_v25  ;;  %4731 = vmatmul.mubr.msk.bf16.vlgmr.msra.gmra.mrb[228].mxu0 %vm78_vm0, %v5935_v10  ;;  %v3471_v46 = vmax.f32 %v1984_v57, 0.0  ;;  %v7449_v53 = vpack.c.bf16 %v5603_v24, %v5587_v0 }
 0x908   :  { %v3502_v30 = vmax.f32 %v1986_v27, 0.0  ;;  %v3501_v45 = vmax.f32 %v1875_v33, 0.0  ;;  %4739 = vmatmul.mubr.msk.bf16.vlgmr.msra.gmra.mrb[228].mxu1 %vm78_vm0, %v5935_v10  ;;  %2915 = vmatpush1.bf16.msra.mxu0 %v7448_v37 }
 0x909   :  { %v6148_v60 = vpack.c.bf16 %v3500_v39, %v3468_v8  ;;  %v3503_v21 = vmax.f32 %v1988_v55, 0.0  ;;  %3028 = vmatpush1.bf16.msra.mxu1 %v7449_v53  ;;  %3915 = vmatprep.subr.bf16.mxu0 %v5581_v56 }
 0x90a   :  { %v6154_v49 = vpack.c.bf16 %v3502_v30, %v3470_v23  ;;  %v6156_v9 = vpack.c.bf16 %v3501_v45, %v3469_v40  ;;  %3956 = vmatprep.subr.bf16.mxu1 %v5590_v59  ;;  %v1878_v10 = vpop.f32.mrb[124].mxu0  ;;  %2730 = vmatprep.mubr.bf16.mxu0 %v7380_v35 }
 0x90b   :  { %v6160_v61 = vpack.c.bf16 %v3503_v21, %v3471_v46  ;;  %v1879_v52 = vadd.f32 %v1878_v10, %v5734_v43  ;;  %v1991_v55 = vpop.f32.mrb[124].mxu1  ;;  %v1880_v39 = vpop.f32.mrb[125].mxu0  ;;  %2843 = vmatprep.mubr.bf16.mxu1 %v7380_v35 }
 0x90c   :  { %v1992_v0 = vadd.f32 %v1991_v55, %v5734_v43  ;;  %v1881_v56 = vadd.f32 %v1880_v39, %v5734_v43  ;;  %v1993_v24 = vpop.f32.mrb[125].mxu1  ;;  %v1882_v30 = vpop.f32.mrb[126].mxu0 }
 0x90d   :  { %v1994_v57 = vadd.f32 %v1993_v24, %v5734_v43  ;;  %v1883_v59 = vadd.f32 %v1882_v30, %v5740_v3  ;;  %v1995_v27 = vpop.f32.mrb[126].mxu1  ;;  %v1884_v33 = vpop.f32.mrb[127].mxu0  ;;  %v3532_v40 = vmax.f32 %v1879_v52, 0.0 }
 0x90e   :  { %v1996_v22 = vadd.f32 %v1995_v27, %v5740_v3  ;;  %v1885_v8 = vadd.f32 %v1884_v33, %v5740_v3  ;;  %v1997_v23 = vpop.f32.mrb[127].mxu1  ;;  %v3534_v46 = vmax.f32 %v1992_v0, 0.0  ;;  %v3533_v21 = vmax.f32 %v1881_v56, 0.0 }
 0x90f   :  { %v3564_v45 = vmax.f32 %v1883_v59, 0.0  ;;  %v1998_v37 = vadd.f32 %v1997_v23, %v5740_v3  ;;  %4732 = vmatmul.mubr.msk.bf16.gmra.mrb[232].mxu0 %vm78_vm0, %v5970_v38  ;;  %v3535_v55 = vmax.f32 %v1994_v57, 0.0 }
 0x910   :  { %v3566_v53 = vmax.f32 %v1996_v22, 0.0  ;;  %v3565_v10 = vmax.f32 %v1885_v8, 0.0  ;;  %4740 = vmatmul.mubr.msk.bf16.gmra.mrb[232].mxu1 %vm78_vm0, %v5970_v38  ;;  %2740 = vmatprep.mubr.bf16.mxu0 %v7380_v35 }
 0x911   :  { %v6176_v39 = vpack.c.bf16 %v3564_v45, %v3532_v40  ;;  %v3567_v24 = vmax.f32 %v1998_v37, 0.0  ;;  %2853 = vmatprep.mubr.bf16.mxu1 %v7380_v35 }
 0x912   :  { %v6179_v52 = vpack.c.bf16 %v3566_v53, %v3534_v46  ;;  %v6181_v30 = vpack.c.bf16 %v3565_v10, %v3533_v21  ;;  %v1888_v59 = vpop.f32.mrb[128].mxu0 }
 0x913   :  { %v6183_v0 = vpack.c.bf16 %v3567_v24, %v3535_v55  ;;  %v1889_v56 = vadd.f32 %v1888_v59, %v5764_v31  ;;  %v2001_v27 = vpop.f32.mrb[128].mxu1  ;;  %v1890_v33 = vpop.f32.mrb[129].mxu0 }
 0x914   :  { %7450 = vst [vmem:[#allocation74_spill] sm:$0xff] %v6179_v52  ;;  %v2002_v38 = vadd.f32 %v2001_v27, %v5764_v31  ;;  %v1891_v57 = vadd.f32 %v1890_v33, %v5764_v31  ;;  %v2003_v22 = vpop.f32.mrb[129].mxu1  ;;  %v1892_v8 = vpop.f32.mrb[130].mxu0 }
 0x915   :  { %v2004_v23 = vadd.f32 %v2003_v22, %v5764_v31  ;;  %v1893_v40 = vadd.f32 %v1892_v8, %v5769_v13  ;;  %v2005_v45 = vpop.f32.mrb[130].mxu1  ;;  %v1894_v37 = vpop.f32.mrb[131].mxu0  ;;  %v3596_v10 = vmax.f32 %v1889_v56, 0.0 }
 0x916   :  { %v2006_v46 = vadd.f32 %v2005_v45, %v5769_v13  ;;  %v1895_v21 = vadd.f32 %v1894_v37, %v5769_v13  ;;  %v2007_v53 = vpop.f32.mrb[131].mxu1  ;;  %v3598_v59 = vmax.f32 %v2002_v38, 0.0  ;;  %v3597_v27 = vmax.f32 %v1891_v57, 0.0 }
 0x917   :  { %v3628_v55 = vmax.f32 %v1893_v40, 0.0  ;;  %v2008_v24 = vadd.f32 %v2007_v53, %v5769_v13  ;;  %4733 = vmatmul.mubr.msk.bf16.gmra.mrb[236].mxu0 %vm78_vm0, %v5997_v15  ;;  %v3599_v8 = vmax.f32 %v2004_v23, 0.0 }
 0x918   :  { %v3630_v33 = vmax.f32 %v2006_v46, 0.0  ;;  %v3629_v22 = vmax.f32 %v1895_v21, 0.0  ;;  %4741 = vmatmul.mubr.msk.bf16.gmra.mrb[236].mxu1 %vm78_vm0, %v5997_v15  ;;  %2750 = vmatprep.mubr.bf16.mxu0 %v7380_v35 }
 0x919   :  { %v6198_v45 = vpack.c.bf16 %v3628_v55, %v3596_v10  ;;  %v3631_v37 = vmax.f32 %v2008_v24, 0.0  ;;  %2863 = vmatprep.mubr.bf16.mxu1 %v7380_v35 }
 0x91a   :  { %v6201_v56 = vpack.c.bf16 %v3630_v33, %v3598_v59  ;;  %v6203_v40 = vpack.c.bf16 %v3629_v22, %v3597_v27  ;;  %v2044_v53 = vpop.f32.mrb[132].mxu0 }
 0x91b   :  { %7451 = vst [vmem:[#allocation75_spill] sm:$0xff] %v6198_v45  ;;  %v6205_v38 = vpack.c.bf16 %v3631_v37, %v3599_v8  ;;  %v2045_v57 = vadd.f32 %v2044_v53, %v5554_v58  ;;  %v2157_v46 = vpop.f32.mrb[132].mxu1  ;;  %v2046_v21 = vpop.f32.mrb[133].mxu0 }
 0x91c   :  { %7452 = vst [vmem:[#allocation76_spill] sm:$0xff] %v6201_v56  ;;  %7453 = vst [vmem:[#allocation77_spill] sm:$0xff] %v6203_v40  ;;  %v2158_v15 = vadd.f32 %v2157_v46, %v5554_v58  ;;  %v2047_v23 = vadd.f32 %v2046_v21, %v5554_v58  ;;  %v2159_v10 = vpop.f32.mrb[133].mxu1  ;;  %v2048_v55 = vpop.f32.mrb[134].mxu0 }
 0x91d   :  { %7454 = vst [vmem:[#allocation78_spill] sm:$0xff] %v6205_v38  ;;  %v2160_v24 = vadd.f32 %v2159_v10, %v5554_v58  ;;  %v2049_v59 = vadd.f32 %v2048_v55, %v5557_v62  ;;  %v2161_v33 = vpop.f32.mrb[134].mxu1  ;;  %v2050_v27 = vpop.f32.mrb[135].mxu0  ;;  %v3152_v53 = vmax.f32 %v2045_v57, 0.0 }
 0x91e   :  { %v2162_v22 = vadd.f32 %v2161_v33, %v5557_v62  ;;  %v2051_v8 = vadd.f32 %v2050_v27, %v5557_v62  ;;  %v2163_v37 = vpop.f32.mrb[135].mxu1  ;;  %v3154_v46 = vmax.f32 %v2158_v15, 0.0  ;;  %v3153_v21 = vmax.f32 %v2047_v23, 0.0 }
 0x91f   :  { %v3184_v56 = vmax.f32 %v2049_v59, 0.0  ;;  %v2164_v45 = vadd.f32 %v2163_v37, %v5557_v62  ;;  %4734 = vmatmul.mubr.msk.bf16.gmra.mrb[240].mxu0 %vm78_vm0, %v6024_v29  ;;  %v3155_v55 = vmax.f32 %v2160_v24, 0.0 }
 0x920   :  { %v3186_v38 = vmax.f32 %v2162_v22, 0.0  ;;  %v3185_v10 = vmax.f32 %v2051_v8, 0.0  ;;  %4742 = vmatmul.mubr.msk.bf16.gmra.mrb[240].mxu1 %vm78_vm0, %v6024_v29  ;;  %2760 = vmatprep.mubr.bf16.mxu0 %v7380_v35 }
 0x921   :  { %v6220_v33 = vpack.c.bf16 %v3184_v56, %v3152_v53  ;;  %v3187_v27 = vmax.f32 %v2164_v45, 0.0  ;;  %2873 = vmatprep.mubr.bf16.mxu1 %v7380_v35 }
 0x922   :  { %v6223_v57 = vpack.c.bf16 %v3186_v38, %v3154_v46  ;;  %v6225_v59 = vpack.c.bf16 %v3185_v10, %v3153_v21  ;;  %v2054_v37 = vpop.f32.mrb[136].mxu0 }
 0x923   :  { %7455 = vst [vmem:[#allocation79_spill] sm:$0xff] %v6220_v33  ;;  %v6227_v15 = vpack.c.bf16 %v3187_v27, %v3155_v55  ;;  %v2055_v23 = vadd.f32 %v2054_v37, %v5572_v11  ;;  %v2167_v22 = vpop.f32.mrb[136].mxu1  ;;  %v2056_v8 = vpop.f32.mrb[137].mxu0 }
 0x924   :  { %7456 = vst [vmem:[#allocation80_spill] sm:$0xff] %v6223_v57  ;;  %7457 = vst [vmem:[#allocation81_spill] sm:$0xff] %v6225_v59  ;;  %v2168_v29 = vadd.f32 %v2167_v22, %v5572_v11  ;;  %v2057_v24 = vadd.f32 %v2056_v8, %v5572_v11  ;;  %v2169_v56 = vpop.f32.mrb[137].mxu1  ;;  %v2058_v53 = vpop.f32.mrb[138].mxu0 }
 0x925   :  { %7458 = vst [vmem:[#allocation82_spill] sm:$0xff] %v6227_v15  ;;  %v2170_v45 = vadd.f32 %v2169_v56, %v5572_v11  ;;  %v2059_v38 = vadd.f32 %v2058_v53, %v5577_v5  ;;  %v2171_v46 = vpop.f32.mrb[138].mxu1  ;;  %v2060_v21 = vpop.f32.mrb[139].mxu0  ;;  %v3216_v37 = vmax.f32 %v2055_v23, 0.0 }
 0x926   :  { %v2172_v10 = vadd.f32 %v2171_v46, %v5577_v5  ;;  %v2061_v55 = vadd.f32 %v2060_v21, %v5577_v5  ;;  %v2173_v27 = vpop.f32.mrb[139].mxu1  ;;  %v3218_v22 = vmax.f32 %v2168_v29, 0.0  ;;  %v3217_v8 = vmax.f32 %v2057_v24, 0.0 }
 0x927   :  { %v3248_v57 = vmax.f32 %v2059_v38, 0.0  ;;  %v2174_v33 = vadd.f32 %v2173_v27, %v5577_v5  ;;  %4735 = vmatmul.mubr.msk.bf16.gmra.mrb[244].mxu0 %vm78_vm0, %v6051_v26  ;;  %v3219_v53 = vmax.f32 %v2170_v45, 0.0 }
 0x928   :  { %v3250_v15 = vmax.f32 %v2172_v10, 0.0  ;;  %v3249_v56 = vmax.f32 %v2061_v55, 0.0  ;;  %4743 = vmatmul.mubr.msk.bf16.gmra.mrb[244].mxu1 %vm78_vm0, %v6051_v26  ;;  %2770 = vmatprep.mubr.bf16.mxu0 %v7380_v35 }
 0x929   :  { %v6242_v46 = vpack.c.bf16 %v3248_v57, %v3216_v37  ;;  %v3251_v21 = vmax.f32 %v2174_v33, 0.0  ;;  %2883 = vmatprep.mubr.bf16.mxu1 %v7380_v35 }
 0x92a   :  { %v6245_v23 = vpack.c.bf16 %v3250_v15, %v3218_v22  ;;  %v6247_v38 = vpack.c.bf16 %v3249_v56, %v3217_v8  ;;  %v2064_v27 = vpop.f32.mrb[140].mxu0 }
 0x92b   :  { %7459 = vst [vmem:[#allocation83_spill] sm:$0xff] %v6242_v46  ;;  %v6249_v29 = vpack.c.bf16 %v3251_v21, %v3219_v53  ;;  %v2065_v24 = vadd.f32 %v2064_v27, %v5613_v1  ;;  %v2177_v10 = vpop.f32.mrb[140].mxu1  ;;  %v2066_v55 = vpop.f32.mrb[141].mxu0 }
 0x92c   :  { %7460 = vst [vmem:[#allocation84_spill] sm:$0xff] %v6245_v23  ;;  %7461 = vst [vmem:[#allocation85_spill] sm:$0xff] %v6247_v38  ;;  %v2178_v26 = vadd.f32 %v2177_v10, %v5613_v1  ;;  %v2067_v45 = vadd.f32 %v2066_v55, %v5613_v1  ;;  %v2179_v57 = vpop.f32.mrb[141].mxu1  ;;  %v2068_v37 = vpop.f32.mrb[142].mxu0  ;;  %v6262_v10 = vld [vmem:[%s7355_s5 + $0x28] sm:$0xff]  }
 0x92d   :  { %7462 = vst [vmem:[#allocation86_spill] sm:$0xff] %v6249_v29  ;;  %v2180_v33 = vadd.f32 %v2179_v57, %v5613_v1  ;;  %v2069_v15 = vadd.f32 %v2068_v37, %v5627_v17  ;;  %v2181_v22 = vpop.f32.mrb[142].mxu1  ;;  %v2070_v8 = vpop.f32.mrb[143].mxu0  ;;  %v3280_v27 = vmax.f32 %v2065_v24, 0.0 }
 0x92e   :  { %v2182_v56 = vadd.f32 %v2181_v22, %v5627_v17  ;;  %v2071_v53 = vadd.f32 %v2070_v8, %v5627_v17  ;;  %v2183_v21 = vpop.f32.mrb[143].mxu1  ;;  %v3282_v55 = vmax.f32 %v2178_v26, 0.0  ;;  %v3281_v57 = vmax.f32 %v2067_v45, 0.0 }
 0x92f   :  { %v3312_v23 = vmax.f32 %v2069_v15, 0.0  ;;  %v2184_v46 = vadd.f32 %v2183_v21, %v5627_v17  ;;  %4736 = vmatmul.mubr.msk.bf16.gmra.mrb[248].mxu0 %vm78_vm0, %v6262_v10  ;;  %v3283_v24 = vmax.f32 %v2180_v33, 0.0 }
 0x930   :  { %v3314_v37 = vmax.f32 %v2182_v56, 0.0  ;;  %v3313_v29 = vmax.f32 %v2071_v53, 0.0  ;;  %4744 = vmatmul.mubr.msk.bf16.gmra.mrb[248].mxu1 %vm78_vm0, %v6262_v10  ;;  %2780 = vmatprep.mubr.bf16.mxu0 %v7380_v35 }
 0x931   :  { %v6269_v15 = vpack.c.bf16 %v3312_v23, %v3280_v27  ;;  %v3315_v22 = vmax.f32 %v2184_v46, 0.0  ;;  %2893 = vmatprep.mubr.bf16.mxu1 %v7380_v35 }
 0x932   :  { %v6272_v8 = vpack.c.bf16 %v3314_v37, %v3282_v55  ;;  %v6274_v21 = vpack.c.bf16 %v3313_v29, %v3281_v57  ;;  %v2074_v38 = vpop.f32.mrb[144].mxu0 }
 0x933   :  { %7463 = vst [vmem:[#allocation87_spill] sm:$0xff] %v6269_v15  ;;  %v6276_v26 = vpack.c.bf16 %v3315_v22, %v3283_v24  ;;  %v2075_v45 = vadd.f32 %v2074_v38, %v5656_v12  ;;  %v2187_v56 = vpop.f32.mrb[144].mxu1  ;;  %v2076_v53 = vpop.f32.mrb[145].mxu0 }
 0x934   :  { %7464 = vst [vmem:[#allocation88_spill] sm:$0xff] %v6272_v8  ;;  %7465 = vst [vmem:[#allocation89_spill] sm:$0xff] %v6274_v21  ;;  %v2188_v59 = vadd.f32 %v2187_v56, %v5656_v12  ;;  %v2077_v33 = vadd.f32 %v2076_v53, %v5656_v12  ;;  %v2189_v23 = vpop.f32.mrb[145].mxu1  ;;  %v2078_v27 = vpop.f32.mrb[146].mxu0  ;;  %v6289_v56 = vld [vmem:[%s7355_s5 + $0x30] sm:$0xff]  }
 0x935   :  { %7466 = vst [vmem:[#allocation90_spill] sm:$0xff] %v6276_v26  ;;  %v2190_v46 = vadd.f32 %v2189_v23, %v5656_v12  ;;  %v2079_v55 = vadd.f32 %v2078_v27, %v5661_v4  ;;  %v2191_v37 = vpop.f32.mrb[146].mxu1  ;;  %v2080_v29 = vpop.f32.mrb[147].mxu0  ;;  %v3344_v38 = vmax.f32 %v2075_v45, 0.0 }
 0x936   :  { %v2192_v57 = vadd.f32 %v2191_v37, %v5661_v4  ;;  %v2081_v24 = vadd.f32 %v2080_v29, %v5661_v4  ;;  %v2193_v22 = vpop.f32.mrb[147].mxu1  ;;  %v3346_v53 = vmax.f32 %v2188_v59, 0.0  ;;  %v3345_v23 = vmax.f32 %v2077_v33, 0.0 }
 0x937   :  { %v3376_v8 = vmax.f32 %v2079_v55, 0.0  ;;  %v2194_v15 = vadd.f32 %v2193_v22, %v5661_v4  ;;  %4737 = vmatmul.mubr.msk.bf16.gmra.mrb[252].mxu0 %vm78_vm0, %v6289_v56  ;;  %v3347_v45 = vmax.f32 %v2190_v46, 0.0 }
 0x938   :  { %v3378_v27 = vmax.f32 %v2192_v57, 0.0  ;;  %v3377_v26 = vmax.f32 %v2081_v24, 0.0  ;;  %4745 = vmatmul.mubr.msk.bf16.gmra.mrb[252].mxu1 %vm78_vm0, %v6289_v56  ;;  %2790 = vmatprep.mubr.bf16.mxu0 %v7380_v35 }
 0x939   :  { %v6296_v55 = vpack.c.bf16 %v3376_v8, %v3344_v38  ;;  %v3379_v37 = vmax.f32 %v2194_v15, 0.0  ;;  %2903 = vmatprep.mubr.bf16.mxu1 %v7380_v35 }
 0x93a   :  { %v6299_v29 = vpack.c.bf16 %v3378_v27, %v3346_v53  ;;  %v6301_v22 = vpack.c.bf16 %v3377_v26, %v3345_v23  ;;  %v2084_v21 = vpop.f32.mrb[148].mxu0 }
 0x93b   :  { %7467 = vst [vmem:[#allocation91_spill] sm:$0xff] %v6296_v55  ;;  %v6303_v59 = vpack.c.bf16 %v3379_v37, %v3347_v45  ;;  %v2085_v33 = vadd.f32 %v2084_v21, %v5682_v51  ;;  %v2197_v57 = vpop.f32.mrb[148].mxu1  ;;  %v2086_v24 = vpop.f32.mrb[149].mxu0 }
 0x93c   :  { %7468 = vst [vmem:[#allocation92_spill] sm:$0xff] %v6299_v29  ;;  %7469 = vst [vmem:[#allocation93_spill] sm:$0xff] %v6301_v22  ;;  %v2198_v40 = vadd.f32 %v2197_v57, %v5682_v51  ;;  %v2087_v46 = vadd.f32 %v2086_v24, %v5682_v51  ;;  %v2199_v8 = vpop.f32.mrb[149].mxu1  ;;  %v2088_v38 = vpop.f32.mrb[150].mxu0  ;;  %v6316_v57 = vld [vmem:[%s7355_s5 + $0x38] sm:$0xff]  }
 0x93d   :  { %7470 = vst [vmem:[#allocation94_spill] sm:$0xff] %v6303_v59  ;;  %v2200_v15 = vadd.f32 %v2199_v8, %v5682_v51  ;;  %v2089_v53 = vadd.f32 %v2088_v38, %v5687_v2  ;;  %v2201_v27 = vpop.f32.mrb[150].mxu1  ;;  %v2090_v26 = vpop.f32.mrb[151].mxu0  ;;  %v3408_v21 = vmax.f32 %v2085_v33, 0.0 }
 0x93e   :  { %v2202_v23 = vadd.f32 %v2201_v27, %v5687_v2  ;;  %v2091_v45 = vadd.f32 %v2090_v26, %v5687_v2  ;;  %v2203_v37 = vpop.f32.mrb[151].mxu1  ;;  %v3410_v24 = vmax.f32 %v2198_v40, 0.0  ;;  %v3409_v8 = vmax.f32 %v2087_v46, 0.0 }
 0x93f   :  { %v3440_v29 = vmax.f32 %v2089_v53, 0.0  ;;  %v2204_v55 = vadd.f32 %v2203_v37, %v5687_v2  ;;  %4738 = vmatmul.mubr.msk.bf16.gmra.mrb[0].mxu0 %vm78_vm0, %v6316_v57  ;;  %v3411_v33 = vmax.f32 %v2200_v15, 0.0 }
 0x940   :  { %v3442_v38 = vmax.f32 %v2202_v23, 0.0  ;;  %v3441_v59 = vmax.f32 %v2091_v45, 0.0  ;;  %4746 = vmatmul.mubr.msk.bf16.gmra.mrb[0].mxu1 %vm78_vm0, %v6316_v57  ;;  %2946 = vmatprep.mubr.bf16.mxu0 %v7380_v35 }
 0x941   :  { %v6323_v53 = vpack.c.bf16 %v3440_v29, %v3408_v21  ;;  %v3443_v27 = vmax.f32 %v2204_v55, 0.0  ;;  %3059 = vmatprep.mubr.bf16.mxu1 %v7380_v35 }
 0x942   :  { %v6326_v26 = vpack.c.bf16 %v3442_v38, %v3410_v24  ;;  %v6328_v37 = vpack.c.bf16 %v3441_v59, %v3409_v8  ;;  %v2094_v22 = vpop.f32.mrb[152].mxu0 }
 0x943   :  { %7471 = vst [vmem:[#allocation95_spill] sm:$0xff] %v6323_v53  ;;  %v6330_v40 = vpack.c.bf16 %v3443_v27, %v3411_v33  ;;  %v2095_v46 = vadd.f32 %v2094_v22, %v5708_v47  ;;  %v2207_v23 = vpop.f32.mrb[152].mxu1  ;;  %v2096_v45 = vpop.f32.mrb[153].mxu0 }
 0x944   :  { %7472 = vst [vmem:[#allocation96_spill] sm:$0xff] %v6326_v26  ;;  %v2208_v52 = vadd.f32 %v2207_v23, %v5708_v47  ;;  %v2097_v15 = vadd.f32 %v2096_v45, %v5708_v47  ;;  %v2209_v29 = vpop.f32.mrb[153].mxu1  ;;  %v2098_v21 = vpop.f32.mrb[154].mxu0  ;;  %v4915_v23 = vld [vmem:[%s7355_s5] sm:$0xff]  }
 0x945   :  { %7473 = vst [vmem:[#allocation97_spill] sm:$0xff] %v6330_v40  ;;  %v2210_v55 = vadd.f32 %v2209_v29, %v5708_v47  ;;  %v2099_v24 = vadd.f32 %v2098_v21, %v5713_v25  ;;  %v2211_v38 = vpop.f32.mrb[154].mxu1  ;;  %v2100_v59 = vpop.f32.mrb[155].mxu0  ;;  %v3472_v22 = vmax.f32 %v2095_v46, 0.0 }
 0x946   :  { %v2212_v8 = vadd.f32 %v2211_v38, %v5713_v25  ;;  %v2101_v33 = vadd.f32 %v2100_v59, %v5713_v25  ;;  %v2213_v27 = vpop.f32.mrb[155].mxu1  ;;  %v3474_v45 = vmax.f32 %v2208_v52, 0.0  ;;  %v3473_v29 = vmax.f32 %v2097_v15, 0.0 }
 0x947   :  { %v3504_v26 = vmax.f32 %v2099_v24, 0.0  ;;  %v2214_v53 = vadd.f32 %v2213_v27, %v5713_v25  ;;  %4747 = vmatmul.mubr.msk.bf16.vlgmr.msra.gmra.mrb[4].mxu0 %vm78_vm0, %v4915_v23  ;;  %v3475_v38 = vmax.f32 %v2210_v55, 0.0 }
 0x948   :  { %v3506_v21 = vmax.f32 %v2212_v8, 0.0  ;;  %v3505_v40 = vmax.f32 %v2101_v33, 0.0  ;;  %4755 = vmatmul.mubr.msk.bf16.vlgmr.msra.gmra.mrb[4].mxu1 %vm78_vm0, %v4915_v23  ;;  %3916 = vmatpush1.bf16.msra.mxu0 %v5574_v14 }
 0x949   :  { %v6346_v59 = vpack.c.bf16 %v3504_v26, %v3472_v22  ;;  %v3507_v46 = vmax.f32 %v2214_v53, 0.0  ;;  %3957 = vmatpush1.bf16.msra.mxu1 %v5579_v7  ;;  %3917 = vmatprep.subr.bf16.mxu0 %v5642_v44 }
 0x94a   :  { %v6350_v24 = vpack.c.bf16 %v3506_v21, %v3474_v45  ;;  %v6352_v27 = vpack.c.bf16 %v3505_v40, %v3473_v29  ;;  %3958 = vmatprep.subr.bf16.mxu1 %v5646_v63  ;;  %v2104_v52 = vpop.f32.mrb[156].mxu0  ;;  %2956 = vmatprep.mubr.bf16.mxu0 %v7380_v35 }
 0x94b   :  { %v6356_v15 = vpack.c.bf16 %v3507_v46, %v3475_v38  ;;  %v2105_v14 = vadd.f32 %v2104_v52, %v5734_v43  ;;  %v2217_v26 = vpop.f32.mrb[156].mxu1  ;;  %v2106_v55 = vpop.f32.mrb[157].mxu0  ;;  %3069 = vmatprep.mubr.bf16.mxu1 %v7380_v35 }
 0x94c   :  { %v2218_v7 = vadd.f32 %v2217_v26, %v5734_v43  ;;  %v2107_v44 = vadd.f32 %v2106_v55, %v5734_v43  ;;  %v2219_v53 = vpop.f32.mrb[157].mxu1  ;;  %3918 = vmatpush1.bf16.msra.mxu0 %v5615_v16  ;;  %v2108_v40 = vpop.f32.mrb[158].mxu0 }
 0x94d   :  { %v2220_v63 = vadd.f32 %v2219_v53, %v5734_v43  ;;  %3959 = vmatpush1.bf16.msra.mxu1 %v5638_v41  ;;  %v2109_v8 = vadd.f32 %v2108_v40, %v5740_v3  ;;  %v2221_v33 = vpop.f32.mrb[158].mxu1  ;;  %3919 = vmatprep.subr.bf16.mxu0 %v5665_v42  ;;  %v2110_v22 = vpop.f32.mrb[159].mxu0  ;;  %v3536_v21 = vmax.f32 %v2105_v14, 0.0  ;;  %v4916_v41 = vld [vmem:[%s7355_s5 + $0x8] sm:$0xff]  }
 0x94e   :  { %v2222_v23 = vadd.f32 %v2221_v33, %v5740_v3  ;;  %3960 = vmatprep.subr.bf16.mxu1 %v5668_v48  ;;  %v2111_v45 = vadd.f32 %v2110_v22, %v5740_v3  ;;  %v2223_v29 = vpop.f32.mrb[159].mxu1  ;;  %v3538_v46 = vmax.f32 %v2218_v7, 0.0  ;;  %v3537_v42 = vmax.f32 %v2107_v44, 0.0  ;;  %v7474_v22 = vld [vmem:[#allocation6_spill] sm:$0xff] }
 0x94f   :  { %v3568_v16 = vmax.f32 %v2109_v8, 0.0  ;;  %v2224_v38 = vadd.f32 %v2223_v29, %v5740_v3  ;;  %4748 = vmatmul.mubr.msk.bf16.gmra.mrb[8].mxu0 %vm78_vm0, %v4916_v41  ;;  %v3539_v48 = vmax.f32 %v2220_v63, 0.0 }
 0x950   :  { %v3570_v52 = vmax.f32 %v2222_v23, 0.0  ;;  %v3569_v26 = vmax.f32 %v2111_v45, 0.0  ;;  %4756 = vmatmul.mubr.msk.bf16.gmra.mrb[8].mxu1 %vm78_vm0, %v4916_v41  ;;  %3920 = vmatpush1.bf16.msra.mxu0 %v5658_v36  ;;  %v7475_v45 = vld [vmem:[#allocation8_spill] sm:$0xff] }
 0x951   :  { %v6377_v55 = vpack.c.bf16 %v3568_v16, %v3536_v21  ;;  %v3571_v14 = vmax.f32 %v2224_v38, 0.0  ;;  %3961 = vmatpush1.bf16.msra.mxu1 %v5663_v28  ;;  %3921 = vmatprep.subr.bf16.mxu0 %v5691_v50  ;;  %v7476_v16 = vld [vmem:[#allocation13_spill] sm:$0xff] }
 0x952   :  { %v6381_v53 = vpack.c.bf16 %v3570_v52, %v3538_v46  ;;  %v6383_v40 = vpack.c.bf16 %v3569_v26, %v3537_v42  ;;  %3962 = vmatprep.subr.bf16.mxu1 %v5694_v32  ;;  %v2114_v7 = vpop.f32.mrb[160].mxu0  ;;  %2966 = vmatprep.mubr.bf16.mxu0 %v7380_v35  ;;  %v7477_v46 = vld [vmem:[#allocation14_spill] sm:$0xff] }
 0x953   :  { %v6387_v44 = vpack.c.bf16 %v3571_v14, %v3539_v48  ;;  %v2115_v36 = vadd.f32 %v2114_v7, %v5764_v31  ;;  %v2227_v63 = vpop.f32.mrb[160].mxu1  ;;  %v2116_v8 = vpop.f32.mrb[161].mxu0  ;;  %3079 = vmatprep.mubr.bf16.mxu1 %v7380_v35  ;;  %v4917_v7 = vld [vmem:[%s7355_s5 + $0x10] sm:$0xff]  }
 0x954   :  { %v2228_v28 = vadd.f32 %v2227_v63, %v5764_v31  ;;  %v2117_v50 = vadd.f32 %v2116_v8, %v5764_v31  ;;  %v2229_v33 = vpop.f32.mrb[161].mxu1  ;;  %3922 = vmatpush1.bf16.msra.mxu0 %v7474_v22  ;;  %v2118_v23 = vpop.f32.mrb[162].mxu0 }
 0x955   :  { %v2230_v32 = vadd.f32 %v2229_v33, %v5764_v31  ;;  %3963 = vmatpush1.bf16.msra.mxu1 %v7475_v45  ;;  %v2119_v29 = vadd.f32 %v2118_v23, %v5769_v13  ;;  %v2231_v21 = vpop.f32.mrb[162].mxu1  ;;  %3923 = vmatprep.subr.bf16.mxu0 %v7476_v16  ;;  %v2120_v38 = vpop.f32.mrb[163].mxu0  ;;  %v3600_v26 = vmax.f32 %v2115_v36, 0.0  ;;  %v7478_v23 = vld [vmem:[#allocation10_spill] sm:$0xff] }
 0x956   :  { %v2232_v41 = vadd.f32 %v2231_v21, %v5769_v13  ;;  %3964 = vmatprep.subr.bf16.mxu1 %v7477_v46  ;;  %v2121_v42 = vadd.f32 %v2120_v38, %v5769_v13  ;;  %v2233_v52 = vpop.f32.mrb[163].mxu1  ;;  %v3602_v63 = vmax.f32 %v2228_v28, 0.0  ;;  %v3601_v8 = vmax.f32 %v2117_v50, 0.0  ;;  %v7482_v28 = vld [vmem:[#allocation18_spill] sm:$0xff] }
 0x957   :  { %v3632_v48 = vmax.f32 %v2119_v29, 0.0  ;;  %v2234_v14 = vadd.f32 %v2233_v52, %v5769_v13  ;;  %4749 = vmatmul.mubr.msk.bf16.gmra.mrb[12].mxu0 %vm78_vm0, %v4917_v7  ;;  %v3603_v45 = vmax.f32 %v2230_v32, 0.0  ;;  %v7480_v29 = vld [vmem:[#allocation12_spill] sm:$0xff] }
 0x958   :  { %v3634_v33 = vmax.f32 %v2232_v41, 0.0  ;;  %v3633_v22 = vmax.f32 %v2121_v42, 0.0  ;;  %4757 = vmatmul.mubr.msk.bf16.gmra.mrb[12].mxu1 %vm78_vm0, %v4917_v7  ;;  %3924 = vmatpush1.bf16.msra.mxu0 %v7478_v23 }
 0x959   :  { %v6408_v21 = vpack.c.bf16 %v3632_v48, %v3600_v26  ;;  %v3635_v36 = vmax.f32 %v2234_v14, 0.0  ;;  %3965 = vmatpush1.bf16.msra.mxu1 %v7480_v29  ;;  %3925 = vmatprep.subr.bf16.mxu0 %v5746_v19  ;;  %v7483_v48 = vld [vmem:[#allocation16_spill] sm:$0xff] }
 0x95a   :  { %v6412_v16 = vpack.c.bf16 %v3634_v33, %v3602_v63  ;;  %v6414_v38 = vpack.c.bf16 %v3633_v22, %v3601_v8  ;;  %3966 = vmatprep.subr.bf16.mxu1 %v7482_v28  ;;  %v2270_v50 = vpop.f32.mrb[164].mxu0  ;;  %2976 = vmatprep.mubr.bf16.mxu0 %v7380_v35  ;;  %v7484_v63 = vld [vmem:[#allocation17_spill] sm:$0xff] }
 0x95b   :  { %7479 = vst [vmem:[#allocation6_spill] sm:$0xff] %v6408_v21  ;;  %v6418_v41 = vpack.c.bf16 %v3635_v36, %v3603_v45  ;;  %v2271_v32 = vadd.f32 %v2270_v50, %v5554_v58  ;;  %v2383_v46 = vpop.f32.mrb[164].mxu1  ;;  %v2272_v42 = vpop.f32.mrb[165].mxu0  ;;  %3089 = vmatprep.mubr.bf16.mxu1 %v7380_v35  ;;  %v7485_v22 = vld [vmem:[#allocation21_spill] sm:$0xff]  ;;  %v7486_v36 = vld [vmem:[#allocation22_spill] sm:$0xff] }
 0x95c   :  { %7481 = vst [vmem:[#allocation8_spill] sm:$0xff] %v6412_v16  ;;  %v2384_v52 = vadd.f32 %v2383_v46, %v5554_v58  ;;  %v2273_v19 = vadd.f32 %v2272_v42, %v5554_v58  ;;  %v2385_v26 = vpop.f32.mrb[165].mxu1  ;;  %3926 = vmatpush1.bf16.msra.mxu0 %v7483_v48  ;;  %v2274_v14 = vpop.f32.mrb[166].mxu0 }
 0x95d   :  { %v2386_v7 = vadd.f32 %v2385_v26, %v5554_v58  ;;  %3967 = vmatpush1.bf16.msra.mxu1 %v7484_v63  ;;  %v2275_v8 = vadd.f32 %v2274_v14, %v5557_v62  ;;  %v2387_v33 = vpop.f32.mrb[166].mxu1  ;;  %3927 = vmatprep.subr.bf16.mxu0 %v7485_v22  ;;  %v2276_v23 = vpop.f32.mrb[167].mxu0  ;;  %v3156_v50 = vmax.f32 %v2271_v32, 0.0  ;;  %v4918_v26 = vld [vmem:[%s7355_s5 + $0x18] sm:$0xff]  }
 0x95e   :  { %v2388_v45 = vadd.f32 %v2387_v33, %v5557_v62  ;;  %3968 = vmatprep.subr.bf16.mxu1 %v7486_v36  ;;  %v2277_v29 = vadd.f32 %v2276_v23, %v5557_v62  ;;  %v2389_v28 = vpop.f32.mrb[167].mxu1  ;;  %v3158_v48 = vmax.f32 %v2384_v52, 0.0  ;;  %v3157_v14 = vmax.f32 %v2273_v19, 0.0  ;;  %v7487_v33 = vld [vmem:[#allocation19_spill] sm:$0xff]  ;;  %v7492_v52 = vld [vmem:[#allocation26_spill] sm:$0xff] }
 0x95f   :  { %v3188_v46 = vmax.f32 %v2275_v8, 0.0  ;;  %v2390_v42 = vadd.f32 %v2389_v28, %v5557_v62  ;;  %4750 = vmatmul.mubr.msk.bf16.gmra.mrb[16].mxu0 %vm78_vm0, %v4918_v26  ;;  %v3159_v23 = vmax.f32 %v2386_v7, 0.0  ;;  %v7489_v8 = vld [vmem:[#allocation20_spill] sm:$0xff]  ;;  %v7490_v28 = vld [vmem:[#allocation25_spill] sm:$0xff] }
 0x960   :  { %v3190_v63 = vmax.f32 %v2388_v45, 0.0  ;;  %v3189_v22 = vmax.f32 %v2277_v29, 0.0  ;;  %4758 = vmatmul.mubr.msk.bf16.gmra.mrb[16].mxu1 %vm78_vm0, %v4918_v26  ;;  %3928 = vmatpush1.bf16.msra.mxu0 %v7487_v33 }
 0x961   :  { %v6439_v36 = vpack.c.bf16 %v3188_v46, %v3156_v50  ;;  %v3191_v32 = vmax.f32 %v2390_v42, 0.0  ;;  %3969 = vmatpush1.bf16.msra.mxu1 %v7489_v8  ;;  %3929 = vmatprep.subr.bf16.mxu0 %v7490_v28 }
 0x962   :  { %v6443_v16 = vpack.c.bf16 %v3190_v63, %v3158_v48  ;;  %v6445_v21 = vpack.c.bf16 %v3189_v22, %v3157_v14  ;;  %3970 = vmatprep.subr.bf16.mxu1 %v7492_v52  ;;  %v2280_v19 = vpop.f32.mrb[168].mxu0  ;;  %2986 = vmatprep.mubr.bf16.mxu0 %v7380_v35  ;;  %v7494_v48 = vld [vmem:[#allocation23_spill] sm:$0xff]  ;;  %v7495_v22 = vld [vmem:[#allocation24_spill] sm:$0xff]  ;;  %v7497_v52 = vld [vmem:[#allocation30_spill] sm:$0xff] }
 0x963   :  { %7488 = vst [vmem:[#allocation13_spill] sm:$0xff] %v6439_v36  ;;  %v6449_v45 = vpack.c.bf16 %v3191_v32, %v3159_v23  ;;  %v2281_v7 = vadd.f32 %v2280_v19, %v5572_v11  ;;  %v2393_v29 = vpop.f32.mrb[168].mxu1  ;;  %v2282_v50 = vpop.f32.mrb[169].mxu0  ;;  %3099 = vmatprep.mubr.bf16.mxu1 %v7380_v35  ;;  %v7496_v32 = vld [vmem:[#allocation29_spill] sm:$0xff] }
 0x964   :  { %7491 = vst [vmem:[#allocation14_spill] sm:$0xff] %v6443_v16  ;;  %v2394_v46 = vadd.f32 %v2393_v29, %v5572_v11  ;;  %v2283_v42 = vadd.f32 %v2282_v50, %v5572_v11  ;;  %v2395_v26 = vpop.f32.mrb[169].mxu1  ;;  %3930 = vmatpush1.bf16.msra.mxu0 %v7494_v48  ;;  %v2284_v14 = vpop.f32.mrb[170].mxu0 }
 0x965   :  { %7493 = vst [vmem:[#allocation10_spill] sm:$0xff] %v6449_v45  ;;  %v2396_v63 = vadd.f32 %v2395_v26, %v5572_v11  ;;  %3971 = vmatpush1.bf16.msra.mxu1 %v7495_v22  ;;  %v2285_v33 = vadd.f32 %v2284_v14, %v5577_v5  ;;  %v2397_v23 = vpop.f32.mrb[170].mxu1  ;;  %3997 = vmatprep.subr.bf16.mxu0 %v7496_v32  ;;  %v2286_v8 = vpop.f32.mrb[171].mxu0  ;;  %v3220_v50 = vmax.f32 %v2281_v7, 0.0  ;;  %v4919_v26 = vld [vmem:[%s7355_s5 + $0x20] sm:$0xff]  }
 0x966   :  { %v2398_v28 = vadd.f32 %v2397_v23, %v5577_v5  ;;  %4038 = vmatprep.subr.bf16.mxu1 %v7497_v52  ;;  %v2287_v19 = vadd.f32 %v2286_v8, %v5577_v5  ;;  %v2399_v29 = vpop.f32.mrb[171].mxu1  ;;  %v3222_v14 = vmax.f32 %v2394_v46, 0.0  ;;  %v3221_v22 = vmax.f32 %v2283_v42, 0.0 }
 0x967   :  { %v3252_v48 = vmax.f32 %v2285_v33, 0.0  ;;  %v2400_v16 = vadd.f32 %v2399_v29, %v5577_v5  ;;  %4751 = vmatmul.mubr.msk.bf16.gmra.mrb[20].mxu0 %vm78_vm0, %v4919_v26  ;;  %v3223_v23 = vmax.f32 %v2396_v63, 0.0 }
 0x968   :  { %v3254_v32 = vmax.f32 %v2398_v28, 0.0  ;;  %v3253_v36 = vmax.f32 %v2287_v19, 0.0  ;;  %4759 = vmatmul.mubr.msk.bf16.gmra.mrb[20].mxu1 %vm78_vm0, %v4919_v26  ;;  %2996 = vmatprep.mubr.bf16.mxu0 %v7380_v35 }
 0x969   :  { %v6470_v8 = vpack.c.bf16 %v3252_v48, %v3220_v50  ;;  %v3255_v7 = vmax.f32 %v2400_v16, 0.0  ;;  %3109 = vmatprep.mubr.bf16.mxu1 %v7380_v35 }
 0x96a   :  { %v6473_v33 = vpack.c.bf16 %v3254_v32, %v3222_v14  ;;  %v6475_v52 = vpack.c.bf16 %v3253_v36, %v3221_v22  ;;  %v2290_v29 = vpop.f32.mrb[172].mxu0 }
 0x96b   :  { %7498 = vst [vmem:[#allocation12_spill] sm:$0xff] %v6470_v8  ;;  %v6477_v45 = vpack.c.bf16 %v3255_v7, %v3223_v23  ;;  %v2291_v46 = vadd.f32 %v2290_v29, %v5613_v1  ;;  %v2403_v42 = vpop.f32.mrb[172].mxu1  ;;  %v2292_v28 = vpop.f32.mrb[173].mxu0 }
 0x96c   :  { %7499 = vst [vmem:[#allocation18_spill] sm:$0xff] %v6473_v33  ;;  %7500 = vst [vmem:[#allocation16_spill] sm:$0xff] %v6475_v52  ;;  %v2404_v19 = vadd.f32 %v2403_v42, %v5613_v1  ;;  %v2293_v63 = vadd.f32 %v2292_v28, %v5613_v1  ;;  %v2405_v50 = vpop.f32.mrb[173].mxu1  ;;  %v2294_v48 = vpop.f32.mrb[174].mxu0 }
 0x96d   :  { %7501 = vst [vmem:[#allocation17_spill] sm:$0xff] %v6477_v45  ;;  %v2406_v16 = vadd.f32 %v2405_v50, %v5613_v1  ;;  %v2295_v26 = vadd.f32 %v2294_v48, %v5627_v17  ;;  %v2407_v14 = vpop.f32.mrb[174].mxu1  ;;  %v2296_v36 = vpop.f32.mrb[175].mxu0  ;;  %v3284_v7 = vmax.f32 %v2291_v46, 0.0 }
 0x96e   :  { %v2408_v22 = vadd.f32 %v2407_v14, %v5627_v17  ;;  %v2297_v32 = vadd.f32 %v2296_v36, %v5627_v17  ;;  %v2409_v23 = vpop.f32.mrb[175].mxu1  ;;  %v3286_v42 = vmax.f32 %v2404_v19, 0.0  ;;  %v3285_v28 = vmax.f32 %v2293_v63, 0.0 }
 0x96f   :  { %v3316_v29 = vmax.f32 %v2295_v26, 0.0  ;;  %v2410_v33 = vadd.f32 %v2409_v23, %v5627_v17  ;;  %4752 = vmatmul.mubr.msk.bf16.gmra.mrb[24].mxu0 %vm78_vm0, %v6262_v10  ;;  %v3287_v48 = vmax.f32 %v2406_v16, 0.0 }
 0x970   :  { %v3318_v8 = vmax.f32 %v2408_v22, 0.0  ;;  %v3317_v50 = vmax.f32 %v2297_v32, 0.0  ;;  %4760 = vmatmul.mubr.msk.bf16.gmra.mrb[24].mxu1 %vm78_vm0, %v6262_v10  ;;  %3006 = vmatprep.mubr.bf16.mxu0 %v7380_v35 }
 0x971   :  { %v6492_v14 = vpack.c.bf16 %v3316_v29, %v3284_v7  ;;  %v3319_v36 = vmax.f32 %v2410_v33, 0.0  ;;  %3119 = vmatprep.mubr.bf16.mxu1 %v7380_v35 }
 0x972   :  { %v6495_v46 = vpack.c.bf16 %v3318_v8, %v3286_v42  ;;  %v6497_v26 = vpack.c.bf16 %v3317_v50, %v3285_v28  ;;  %v2300_v23 = vpop.f32.mrb[176].mxu0 }
 0x973   :  { %7502 = vst [vmem:[#allocation21_spill] sm:$0xff] %v6492_v14  ;;  %v6499_v19 = vpack.c.bf16 %v3319_v36, %v3287_v48  ;;  %v2301_v63 = vadd.f32 %v2300_v23, %v5656_v12  ;;  %v2413_v22 = vpop.f32.mrb[176].mxu1  ;;  %v2302_v32 = vpop.f32.mrb[177].mxu0 }
 0x974   :  { %7503 = vst [vmem:[#allocation22_spill] sm:$0xff] %v6495_v46  ;;  %7504 = vst [vmem:[#allocation19_spill] sm:$0xff] %v6497_v26  ;;  %v2414_v10 = vadd.f32 %v2413_v22, %v5656_v12  ;;  %v2303_v16 = vadd.f32 %v2302_v32, %v5656_v12  ;;  %v2415_v7 = vpop.f32.mrb[177].mxu1  ;;  %v2304_v29 = vpop.f32.mrb[178].mxu0 }
 0x975   :  { %7505 = vst [vmem:[#allocation20_spill] sm:$0xff] %v6499_v19  ;;  %v2416_v33 = vadd.f32 %v2415_v7, %v5656_v12  ;;  %v2305_v8 = vadd.f32 %v2304_v29, %v5661_v4  ;;  %v2417_v42 = vpop.f32.mrb[178].mxu1  ;;  %v2306_v28 = vpop.f32.mrb[179].mxu0  ;;  %v3348_v23 = vmax.f32 %v2301_v63, 0.0 }
 0x976   :  { %v2418_v50 = vadd.f32 %v2417_v42, %v5661_v4  ;;  %v2307_v48 = vadd.f32 %v2306_v28, %v5661_v4  ;;  %v2419_v36 = vpop.f32.mrb[179].mxu1  ;;  %v3350_v22 = vmax.f32 %v2414_v10, 0.0  ;;  %v3349_v32 = vmax.f32 %v2303_v16, 0.0 }
 0x977   :  { %v3380_v46 = vmax.f32 %v2305_v8, 0.0  ;;  %v2420_v14 = vadd.f32 %v2419_v36, %v5661_v4  ;;  %4753 = vmatmul.mubr.msk.bf16.gmra.mrb[28].mxu0 %vm78_vm0, %v6289_v56  ;;  %v3351_v29 = vmax.f32 %v2416_v33, 0.0 }
 0x978   :  { %v3382_v19 = vmax.f32 %v2418_v50, 0.0  ;;  %v3381_v7 = vmax.f32 %v2307_v48, 0.0  ;;  %4761 = vmatmul.mubr.msk.bf16.gmra.mrb[28].mxu1 %vm78_vm0, %v6289_v56  ;;  %3016 = vmatprep.mubr.bf16.mxu0 %v7380_v35 }
 0x979   :  { %v6514_v42 = vpack.c.bf16 %v3380_v46, %v3348_v23  ;;  %v3383_v28 = vmax.f32 %v2420_v14, 0.0  ;;  %3129 = vmatprep.mubr.bf16.mxu1 %v7380_v35 }
 0x97a   :  { %v6517_v63 = vpack.c.bf16 %v3382_v19, %v3350_v22  ;;  %v6519_v8 = vpack.c.bf16 %v3381_v7, %v3349_v32  ;;  %v2310_v36 = vpop.f32.mrb[180].mxu0 }
 0x97b   :  { %7506 = vst [vmem:[#allocation25_spill] sm:$0xff] %v6514_v42  ;;  %v6521_v10 = vpack.c.bf16 %v3383_v28, %v3351_v29  ;;  %v2311_v16 = vadd.f32 %v2310_v36, %v5682_v51  ;;  %v2423_v50 = vpop.f32.mrb[180].mxu1  ;;  %v2312_v48 = vpop.f32.mrb[181].mxu0 }
 0x97c   :  { %7507 = vst [vmem:[#allocation26_spill] sm:$0xff] %v6517_v63  ;;  %7508 = vst [vmem:[#allocation23_spill] sm:$0xff] %v6519_v8  ;;  %v2424_v56 = vadd.f32 %v2423_v50, %v5682_v51  ;;  %v2313_v33 = vadd.f32 %v2312_v48, %v5682_v51  ;;  %v2425_v46 = vpop.f32.mrb[181].mxu1  ;;  %v2314_v23 = vpop.f32.mrb[182].mxu0 }
 0x97d   :  { %7509 = vst [vmem:[#allocation24_spill] sm:$0xff] %v6521_v10  ;;  %v2426_v14 = vadd.f32 %v2425_v46, %v5682_v51  ;;  %v2315_v19 = vadd.f32 %v2314_v23, %v5687_v2  ;;  %v2427_v22 = vpop.f32.mrb[182].mxu1  ;;  %v2316_v32 = vpop.f32.mrb[183].mxu0  ;;  %v3412_v36 = vmax.f32 %v2311_v16, 0.0 }
 0x97e   :  { %v2428_v7 = vadd.f32 %v2427_v22, %v5687_v2  ;;  %v2317_v29 = vadd.f32 %v2316_v32, %v5687_v2  ;;  %v2429_v28 = vpop.f32.mrb[183].mxu1  ;;  %v3414_v50 = vmax.f32 %v2424_v56, 0.0  ;;  %v3413_v48 = vmax.f32 %v2313_v33, 0.0 }
 0x97f   :  { %v3444_v63 = vmax.f32 %v2315_v19, 0.0  ;;  %v2430_v42 = vadd.f32 %v2429_v28, %v5687_v2  ;;  %4754 = vmatmul.mubr.msk.bf16.gmra.mrb[32].mxu0 %vm78_vm0, %v6316_v57  ;;  %v3415_v23 = vmax.f32 %v2426_v14, 0.0 }
 0x980   :  { %v3446_v10 = vmax.f32 %v2428_v7, 0.0  ;;  %v3445_v46 = vmax.f32 %v2317_v29, 0.0  ;;  %4762 = vmatmul.mubr.msk.bf16.gmra.mrb[32].mxu1 %vm78_vm0, %v6316_v57  ;;  %3947 = vmatprep.mubr.bf16.mxu0 %v7380_v35 }
 0x981   :  { %v6536_v22 = vpack.c.bf16 %v3444_v63, %v3412_v36  ;;  %v3447_v32 = vmax.f32 %v2430_v42, 0.0  ;;  %3988 = vmatprep.mubr.bf16.mxu1 %v7380_v35  ;;  %v6551_v42 = vld [vmem:[%s7356_s7] sm:$0xf] }
 0x982   :  { %v6539_v16 = vpack.c.bf16 %v3446_v10, %v3414_v50  ;;  %v6541_v19 = vpack.c.bf16 %v3445_v46, %v3413_v48  ;;  %v2320_v28 = vpop.f32.mrb[184].mxu0 }
 0x983   :  { %7510 = vst [vmem:[#allocation29_spill] sm:$0xff] %v6536_v22  ;;  %v6543_v56 = vpack.c.bf16 %v3447_v32, %v3415_v23  ;;  %v2321_v33 = vadd.f32 %v2320_v28, %v5708_v47  ;;  %v2433_v7 = vpop.f32.mrb[184].mxu1  ;;  %v2322_v29 = vpop.f32.mrb[185].mxu0 }
 0x984   :  { %7511 = vst [vmem:[#allocation30_spill] sm:$0xff] %v6539_v16  ;;  %7512 = vst [vmem:[#allocation98_spill] sm:$0xff] %v6541_v19  ;;  %v2434_v57 = vadd.f32 %v2433_v7, %v5708_v47  ;;  %v2323_v14 = vadd.f32 %v2322_v29, %v5708_v47  ;;  %v2435_v63 = vpop.f32.mrb[185].mxu1  ;;  %v2324_v36 = vpop.f32.mrb[186].mxu0 }
 0x985   :  { %7513 = vst [vmem:[#allocation99_spill] sm:$0xff] %v6543_v56  ;;  %v2436_v10 = vadd.f32 %v2435_v63, %v5708_v47  ;;  %v2325_v50 = vadd.f32 %v2324_v36, %v5713_v25  ;;  %v2437_v48 = vpop.f32.mrb[186].mxu1  ;;  %v2326_v46 = vpop.f32.mrb[187].mxu0  ;;  %v3476_v7 = vmax.f32 %v2321_v33, 0.0  ;;  %v7514_v63 = vld [vmem:[#allocation27_spill] sm:$0xff]  ;;  %v7517_v33 = vld [vmem:[#allocation33_spill] sm:$0xff] }
 0x986   :  { %v2438_v23 = vadd.f32 %v2437_v48, %v5713_v25  ;;  %v2327_v32 = vadd.f32 %v2326_v46, %v5713_v25  ;;  %v2439_v28 = vpop.f32.mrb[187].mxu1  ;;  %v3478_v22 = vmax.f32 %v2434_v57, 0.0  ;;  %v3477_v56 = vmax.f32 %v2323_v14, 0.0  ;;  %v7516_v46 = vld [vmem:[#allocation28_spill] sm:$0xff]  ;;  %v7520_v57 = vld [vmem:[#allocation34_spill] sm:$0xff] }
 0x987   :  { %v3508_v29 = vmax.f32 %v2325_v50, 0.0  ;;  %v2440_v16 = vadd.f32 %v2439_v28, %v5713_v25  ;;  %3948 = vmatmul.mubr.bf16.vlgmr.msra.gmra.mrb[36].mxu0 %v6551_v42  ;;  %v3479_v36 = vmax.f32 %v2436_v10, 0.0 }
 0x988   :  { %v3510_v19 = vmax.f32 %v2438_v23, 0.0  ;;  %v3509_v8 = vmax.f32 %v2327_v32, 0.0  ;;  %3989 = vmatmul.mubr.bf16.vlgmr.msra.gmra.mrb[36].mxu1 %v6551_v42  ;;  %3998 = vmatpush1.bf16.msra.mxu0 %v7514_v63  ;;  %v7523_v63 = vld [vmem:[#allocation32_spill] sm:$0xff] }
 0x989   :  { %v6561_v26 = vpack.c.bf16 %v3508_v29, %v3476_v7  ;;  %v3511_v48 = vmax.f32 %v2440_v16, 0.0  ;;  %4039 = vmatpush1.bf16.msra.mxu1 %v7516_v46  ;;  %3999 = vmatprep.subr.bf16.mxu0 %v7517_v33  ;;  %v7524_v46 = vld [vmem:[#allocation37_spill] sm:$0xff] }
 0x98a   :  { %v6565_v50 = vpack.c.bf16 %v3510_v19, %v3478_v22  ;;  %v6567_v28 = vpack.c.bf16 %v3509_v8, %v3477_v56  ;;  %4040 = vmatprep.subr.bf16.mxu1 %v7520_v57  ;;  %v2330_v14 = vpop.f32.mrb[188].mxu0  ;;  %4029 = vmatprep.mubr.bf16.mxu0 %v7380_v35  ;;  %v7522_v8 = vld [vmem:[#allocation31_spill] sm:$0xff] }
 0x98b   :  { %7515 = vst [vmem:[#allocation27_spill] sm:$0xff] %v6561_v26  ;;  %v6571_v23 = vpack.c.bf16 %v3511_v48, %v3479_v36  ;;  %v2331_v10 = vadd.f32 %v2330_v14, %v5734_v43  ;;  %v2443_v32 = vpop.f32.mrb[188].mxu1  ;;  %v2332_v7 = vpop.f32.mrb[189].mxu0  ;;  %4070 = vmatprep.mubr.bf16.mxu1 %v7380_v35  ;;  %v7525_v14 = vld [vmem:[#allocation38_spill] sm:$0xff] }
 0x98c   :  { %7518 = vst [vmem:[#allocation28_spill] sm:$0xff] %v6565_v50  ;;  %7519 = vst [vmem:[#allocation33_spill] sm:$0xff] %v6567_v28  ;;  %v2444_v16 = vadd.f32 %v2443_v32, %v5734_v43  ;;  %v2333_v22 = vadd.f32 %v2332_v7, %v5734_v43  ;;  %v2445_v19 = vpop.f32.mrb[189].mxu1  ;;  %4000 = vmatpush1.bf16.msra.mxu0 %v7522_v8  ;;  %v2334_v56 = vpop.f32.mrb[190].mxu0 }
 0x98d   :  { %7521 = vst [vmem:[#allocation34_spill] sm:$0xff] %v6571_v23  ;;  %v2446_v29 = vadd.f32 %v2445_v19, %v5734_v43  ;;  %4041 = vmatpush1.bf16.msra.mxu1 %v7523_v63  ;;  %v2335_v36 = vadd.f32 %v2334_v56, %v5740_v3  ;;  %v2447_v48 = vpop.f32.mrb[190].mxu1  ;;  %4001 = vmatprep.subr.bf16.mxu0 %v7524_v46  ;;  %v2336_v33 = vpop.f32.mrb[191].mxu0  ;;  %v3540_v50 = vmax.f32 %v2331_v10, 0.0  ;;  %v7526_v56 = vld [vmem:[#allocation35_spill] sm:$0xff] }
 0x98e   :  { %v2448_v57 = vadd.f32 %v2447_v48, %v5740_v3  ;;  %4042 = vmatprep.subr.bf16.mxu1 %v7525_v14  ;;  %v2337_v32 = vadd.f32 %v2336_v33, %v5740_v3  ;;  %v2449_v7 = vpop.f32.mrb[191].mxu1  ;;  %v3542_v19 = vmax.f32 %v2444_v16, 0.0  ;;  %v3541_v23 = vmax.f32 %v2333_v22, 0.0  ;;  %v7528_v48 = vld [vmem:[#allocation36_spill] sm:$0xff]  ;;  %v7529_v14 = vld [vmem:[#allocation41_spill] sm:$0xff] }
 0x98f   :  { %v3572_v8 = vmax.f32 %v2335_v36, 0.0  ;;  %v2450_v26 = vadd.f32 %v2449_v7, %v5740_v3  ;;  %v3543_v45 = vmax.f32 %v2446_v29, 0.0  ;;  %v7531_v36 = vld [vmem:[#allocation42_spill] sm:$0xff] }
 0x990   :  { %v3574_v63 = vmax.f32 %v2448_v57, 0.0  ;;  %v3573_v28 = vmax.f32 %v2337_v32, 0.0  ;;  %4002 = vmatpush1.bf16.msra.mxu0 %v7526_v56 }
 0x991   :  { %v6587_v46 = vpack.c.bf16 %v3572_v8, %v3540_v50  ;;  %v3575_v52 = vmax.f32 %v2450_v26, 0.0  ;;  %4043 = vmatpush1.bf16.msra.mxu1 %v7528_v48  ;;  %4003 = vmatprep.subr.bf16.mxu0 %v7529_v14  ;;  %v7533_v8 = vld [vmem:[#allocation39_spill] sm:$0xff]  ;;  %v7535_v48 = vld [vmem:[#allocation45_spill] sm:$0xff] }
 0x992   :  { %v6591_v33 = vpack.c.bf16 %v3574_v63, %v3542_v19  ;;  %v6593_v10 = vpack.c.bf16 %v3573_v28, %v3541_v23  ;;  %4044 = vmatprep.subr.bf16.mxu1 %v7531_v36  ;;  %v2340_v16 = vpop.f32.mrb[192].mxu0  ;;  %v7534_v23 = vld [vmem:[#allocation40_spill] sm:$0xff] }
 0x993   :  { %7527 = vst [vmem:[#allocation31_spill] sm:$0xff] %v6587_v46  ;;  %v6596_v22 = vpack.c.bf16 %v3575_v52, %v3543_v45  ;;  %v2341_v57 = vadd.f32 %v2340_v16, %v5764_v31  ;;  %v2453_v32 = vpop.f32.mrb[192].mxu1  ;;  %v2342_v29 = vpop.f32.mrb[193].mxu0 }
 0x994   :  { %7530 = vst [vmem:[#allocation32_spill] sm:$0xff] %v6591_v33  ;;  %v2454_v50 = vadd.f32 %v2453_v32, %v5764_v31  ;;  %v2343_v26 = vadd.f32 %v2342_v29, %v5764_v31  ;;  %v2455_v7 = vpop.f32.mrb[193].mxu1  ;;  %4004 = vmatpush1.bf16.msra.mxu0 %v7533_v8  ;;  %v2344_v19 = vpop.f32.mrb[194].mxu0 }
 0x995   :  { %7532 = vst [vmem:[#allocation37_spill] sm:$0xff] %v6596_v22  ;;  %v2456_v28 = vadd.f32 %v2455_v7, %v5764_v31  ;;  %4045 = vmatpush1.bf16.msra.mxu1 %v7534_v23  ;;  %v2345_v63 = vadd.f32 %v2344_v19, %v5769_v13  ;;  %v2457_v45 = vpop.f32.mrb[194].mxu1  ;;  %4005 = vmatprep.subr.bf16.mxu0 %v5920_v34  ;;  %v2346_v52 = vpop.f32.mrb[195].mxu0  ;;  %v3604_v16 = vmax.f32 %v2341_v57, 0.0  ;;  %v7536_v19 = vld [vmem:[#allocation43_spill] sm:$0xff] }
 0x996   :  { %v2458_v56 = vadd.f32 %v2457_v45, %v5769_v13  ;;  %4046 = vmatprep.subr.bf16.mxu1 %v7535_v48  ;;  %v2347_v14 = vadd.f32 %v2346_v52, %v5769_v13  ;;  %v2459_v36 = vpop.f32.mrb[195].mxu1  ;;  %v3606_v7 = vmax.f32 %v2454_v50, 0.0  ;;  %v3605_v8 = vmax.f32 %v2343_v26, 0.0  ;;  %v7538_v45 = vld [vmem:[#allocation44_spill] sm:$0xff] }
 0x997   :  { %v3636_v32 = vmax.f32 %v2345_v63, 0.0  ;;  %v2460_v29 = vadd.f32 %v2459_v36, %v5769_v13  ;;  %v3607_v46 = vmax.f32 %v2456_v28, 0.0  ;;  %v7539_v48 = vld [vmem:[#allocation48_spill] sm:$0xff]  ;;  %v7542_v63 = vld [vmem:[#allocation49_spill] sm:$0xff] }
 0x998   :  { %v3638_v23 = vmax.f32 %v2458_v56, 0.0  ;;  %v3637_v33 = vmax.f32 %v2347_v14, 0.0  ;;  %4006 = vmatpush1.bf16.msra.mxu0 %v7536_v19 }
 0x999   :  { %v6611_v34 = vpack.c.bf16 %v3636_v32, %v3604_v16  ;;  %v3639_v22 = vmax.f32 %v2460_v29, 0.0  ;;  %4047 = vmatpush1.bf16.msra.mxu1 %v7538_v45  ;;  %4007 = vmatprep.subr.bf16.mxu0 %v7539_v48  ;;  %v7544_v29 = vld [vmem:[#allocation46_spill] sm:$0xff]  ;;  %v7547_v48 = vld [vmem:[#allocation53_spill] sm:$0xff] }
 0x99a   :  { %v6615_v52 = vpack.c.bf16 %v3638_v23, %v3606_v7  ;;  %v6617_v57 = vpack.c.bf16 %v3637_v33, %v3605_v8  ;;  %4048 = vmatprep.subr.bf16.mxu1 %v7542_v63  ;;  %v2496_v50 = vpop.f32.mrb[196].mxu0  ;;  %v7545_v8 = vld [vmem:[#allocation47_spill] sm:$0xff] }
 0x99b   :  { %7537 = vst [vmem:[#allocation38_spill] sm:$0xff] %v6611_v34  ;;  %v6620_v26 = vpack.c.bf16 %v3639_v22, %v3607_v46  ;;  %v2497_v56 = vadd.f32 %v2496_v50, %v5554_v58  ;;  %v2609_v14 = vpop.f32.mrb[196].mxu1  ;;  %v2498_v28 = vpop.f32.mrb[197].mxu0  ;;  %v7546_v22 = vld [vmem:[#allocation52_spill] sm:$0xff] }
 0x99c   :  { %7540 = vst [vmem:[#allocation35_spill] sm:$0xff] %v6615_v52  ;;  %7541 = vst [vmem:[#allocation36_spill] sm:$0xff] %v6617_v57  ;;  %v2610_v36 = vadd.f32 %v2609_v14, %v5554_v58  ;;  %v2499_v16 = vadd.f32 %v2498_v28, %v5554_v58  ;;  %v2611_v32 = vpop.f32.mrb[197].mxu1  ;;  %4008 = vmatpush1.bf16.msra.mxu0 %v7544_v29  ;;  %v2500_v7 = vpop.f32.mrb[198].mxu0 }
 0x99d   :  { %7543 = vst [vmem:[#allocation41_spill] sm:$0xff] %v6620_v26  ;;  %v2612_v33 = vadd.f32 %v2611_v32, %v5554_v58  ;;  %4049 = vmatpush1.bf16.msra.mxu1 %v7545_v8  ;;  %v2501_v23 = vadd.f32 %v2500_v7, %v5557_v62  ;;  %v2613_v46 = vpop.f32.mrb[198].mxu1  ;;  %4009 = vmatprep.subr.bf16.mxu0 %v7546_v22  ;;  %v2502_v19 = vpop.f32.mrb[199].mxu0  ;;  %v3160_v14 = vmax.f32 %v2497_v56, 0.0  ;;  %v7548_v7 = vld [vmem:[#allocation50_spill] sm:$0xff] }
 0x99e   :  { %v2614_v45 = vadd.f32 %v2613_v46, %v5557_v62  ;;  %4050 = vmatprep.subr.bf16.mxu1 %v7547_v48  ;;  %v2503_v63 = vadd.f32 %v2502_v19, %v5557_v62  ;;  %v2615_v50 = vpop.f32.mrb[199].mxu1  ;;  %v3162_v32 = vmax.f32 %v2610_v36, 0.0  ;;  %v3161_v52 = vmax.f32 %v2499_v16, 0.0  ;;  %v7550_v46 = vld [vmem:[#allocation51_spill] sm:$0xff]  ;;  %v7551_v48 = vld [vmem:[#allocation56_spill] sm:$0xff] }
 0x99f   :  { %v3192_v28 = vmax.f32 %v2501_v23, 0.0  ;;  %v2616_v29 = vadd.f32 %v2615_v50, %v5557_v62  ;;  %v3163_v26 = vmax.f32 %v2612_v33, 0.0  ;;  %v7553_v23 = vld [vmem:[#allocation57_spill] sm:$0xff] }
 0x9a0   :  { %v3194_v8 = vmax.f32 %v2614_v45, 0.0  ;;  %v3193_v34 = vmax.f32 %v2503_v63, 0.0  ;;  %4010 = vmatpush1.bf16.msra.mxu0 %v7548_v7 }
 0x9a1   :  { %v6635_v22 = vpack.c.bf16 %v3192_v28, %v3160_v14  ;;  %v3195_v57 = vmax.f32 %v2616_v29, 0.0  ;;  %4051 = vmatpush1.bf16.msra.mxu1 %v7550_v46  ;;  %4011 = vmatprep.subr.bf16.mxu0 %v7551_v48  ;;  %v7554_v29 = vld [vmem:[#allocation54_spill] sm:$0xff]  ;;  %v7557_v48 = vld [vmem:[#allocation61_spill] sm:$0xff] }
 0x9a2   :  { %v6639_v19 = vpack.c.bf16 %v3194_v8, %v3162_v32  ;;  %v6641_v56 = vpack.c.bf16 %v3193_v34, %v3161_v52  ;;  %4052 = vmatprep.subr.bf16.mxu1 %v7553_v23  ;;  %v2506_v36 = vpop.f32.mrb[200].mxu0  ;;  %v7555_v52 = vld [vmem:[#allocation55_spill] sm:$0xff] }
 0x9a3   :  { %7549 = vst [vmem:[#allocation42_spill] sm:$0xff] %v6635_v22  ;;  %v6644_v16 = vpack.c.bf16 %v3195_v57, %v3163_v26  ;;  %v2507_v45 = vadd.f32 %v2506_v36, %v5572_v11  ;;  %v2619_v63 = vpop.f32.mrb[200].mxu1  ;;  %v2508_v33 = vpop.f32.mrb[201].mxu0  ;;  %v7556_v26 = vld [vmem:[#allocation60_spill] sm:$0xff] }
 0x9a4   :  { %7552 = vst [vmem:[#allocation39_spill] sm:$0xff] %v6639_v19  ;;  %v2620_v50 = vadd.f32 %v2619_v63, %v5572_v11  ;;  %v2509_v14 = vadd.f32 %v2508_v33, %v5572_v11  ;;  %v2621_v28 = vpop.f32.mrb[201].mxu1  ;;  %4012 = vmatpush1.bf16.msra.mxu0 %v7554_v29  ;;  %v2510_v32 = vpop.f32.mrb[202].mxu0 }
 0x9a5   :  { %v2622_v34 = vadd.f32 %v2621_v28, %v5572_v11  ;;  %4053 = vmatpush1.bf16.msra.mxu1 %v7555_v52  ;;  %v2511_v8 = vadd.f32 %v2510_v32, %v5577_v5  ;;  %v2623_v57 = vpop.f32.mrb[202].mxu1  ;;  %4079 = vmatprep.subr.bf16.mxu0 %v7556_v26  ;;  %v2512_v7 = vpop.f32.mrb[203].mxu0  ;;  %v3224_v63 = vmax.f32 %v2507_v45, 0.0  ;;  %v7558_v26 = vld [vmem:[#allocation58_spill] sm:$0xff] }
 0x9a6   :  { %v2624_v46 = vadd.f32 %v2623_v57, %v5577_v5  ;;  %4120 = vmatprep.subr.bf16.mxu1 %v7557_v48  ;;  %v2513_v23 = vadd.f32 %v2512_v7, %v5577_v5  ;;  %v2625_v36 = vpop.f32.mrb[203].mxu1  ;;  %v3226_v28 = vmax.f32 %v2620_v50, 0.0  ;;  %v3225_v52 = vmax.f32 %v2509_v14, 0.0  ;;  %v7560_v7 = vld [vmem:[#allocation59_spill] sm:$0xff]  ;;  %v7563_v50 = vld [vmem:[#allocation64_spill] sm:$0xff] }
 0x9a7   :  { %v3256_v33 = vmax.f32 %v2511_v8, 0.0  ;;  %v2626_v29 = vadd.f32 %v2625_v36, %v5577_v5  ;;  %4030 = vmatmul.mubr.bf16.vlgmr.msra.gmra.mrb[40].mxu0 %v6551_v42  ;;  %v3227_v57 = vmax.f32 %v2622_v34, 0.0 }
 0x9a8   :  { %v3258_v32 = vmax.f32 %v2624_v46, 0.0  ;;  %v3257_v19 = vmax.f32 %v2513_v23, 0.0  ;;  %4071 = vmatmul.mubr.bf16.vlgmr.msra.gmra.mrb[40].mxu1 %v6551_v42  ;;  %4080 = vmatpush1.bf16.msra.mxu0 %v7558_v26 }
 0x9a9   :  { %v6661_v22 = vpack.c.bf16 %v3256_v33, %v3224_v63  ;;  %v3259_v48 = vmax.f32 %v2626_v29, 0.0  ;;  %4121 = vmatpush1.bf16.msra.mxu1 %v7560_v7  ;;  %4081 = vmatprep.subr.bf16.mxu0 %v6063_v18  ;;  %v7567_v7 = vld [vmem:[#allocation67_spill] sm:$0xff] }
 0x9aa   :  { %v6665_v45 = vpack.c.bf16 %v3258_v32, %v3226_v28  ;;  %v6667_v8 = vpack.c.bf16 %v3257_v19, %v3225_v52  ;;  %4122 = vmatprep.subr.bf16.mxu1 %v7563_v50  ;;  %v2516_v14 = vpop.f32.mrb[204].mxu0  ;;  %4111 = vmatprep.mubr.bf16.mxu0 %v7380_v35  ;;  %v7565_v19 = vld [vmem:[#allocation62_spill] sm:$0xff]  ;;  %v7566_v52 = vld [vmem:[#allocation63_spill] sm:$0xff] }
 0x9ab   :  { %7559 = vst [vmem:[#allocation40_spill] sm:$0xff] %v6661_v22  ;;  %v6671_v46 = vpack.c.bf16 %v3259_v48, %v3227_v57  ;;  %v2517_v34 = vadd.f32 %v2516_v14, %v5613_v1  ;;  %v2629_v23 = vpop.f32.mrb[204].mxu1  ;;  %v2518_v36 = vpop.f32.mrb[205].mxu0  ;;  %4152 = vmatprep.mubr.bf16.mxu1 %v7380_v35 }
 0x9ac   :  { %7561 = vst [vmem:[#allocation45_spill] sm:$0xff] %v6665_v45  ;;  %7562 = vst [vmem:[#allocation43_spill] sm:$0xff] %v6667_v8  ;;  %v2630_v63 = vadd.f32 %v2629_v23, %v5613_v1  ;;  %v2519_v18 = vadd.f32 %v2518_v36, %v5613_v1  ;;  %v2631_v33 = vpop.f32.mrb[205].mxu1  ;;  %4082 = vmatpush1.bf16.msra.mxu0 %v7565_v19  ;;  %v2520_v29 = vpop.f32.mrb[206].mxu0 }
 0x9ad   :  { %7564 = vst [vmem:[#allocation44_spill] sm:$0xff] %v6671_v46  ;;  %v2632_v28 = vadd.f32 %v2631_v33, %v5613_v1  ;;  %4123 = vmatpush1.bf16.msra.mxu1 %v7566_v52  ;;  %v2521_v32 = vadd.f32 %v2520_v29, %v5627_v17  ;;  %v2633_v26 = vpop.f32.mrb[206].mxu1  ;;  %4083 = vmatprep.subr.bf16.mxu0 %v6085_v6  ;;  %v2522_v57 = vpop.f32.mrb[207].mxu0  ;;  %v3288_v23 = vmax.f32 %v2517_v34, 0.0  ;;  %v7568_v29 = vld [vmem:[#allocation65_spill] sm:$0xff] }
 0x9ae   :  { %v2634_v48 = vadd.f32 %v2633_v26, %v5627_v17  ;;  %4124 = vmatprep.subr.bf16.mxu1 %v7567_v7  ;;  %v2523_v50 = vadd.f32 %v2522_v57, %v5627_v17  ;;  %v2635_v14 = vpop.f32.mrb[207].mxu1  ;;  %v3290_v33 = vmax.f32 %v2630_v63, 0.0  ;;  %v3289_v45 = vmax.f32 %v2519_v18, 0.0  ;;  %v7570_v26 = vld [vmem:[#allocation66_spill] sm:$0xff] }
 0x9af   :  { %v3320_v36 = vmax.f32 %v2521_v32, 0.0  ;;  %v2636_v19 = vadd.f32 %v2635_v14, %v5627_v17  ;;  %v3291_v46 = vmax.f32 %v2632_v28, 0.0  ;;  %v7572_v32 = vld [vmem:[#allocation70_spill] sm:$0xff] }
 0x9b0   :  { %v3322_v52 = vmax.f32 %v2634_v48, 0.0  ;;  %v3321_v22 = vmax.f32 %v2523_v50, 0.0  ;;  %4084 = vmatpush1.bf16.msra.mxu0 %v7568_v29 }
 0x9b1   :  { %v6687_v6 = vpack.c.bf16 %v3320_v36, %v3288_v23  ;;  %v3323_v8 = vmax.f32 %v2636_v19, 0.0  ;;  %4125 = vmatpush1.bf16.msra.mxu1 %v7570_v26  ;;  %4085 = vmatprep.subr.bf16.mxu0 %v6107_v54  ;;  %v7573_v36 = vld [vmem:[#allocation68_spill] sm:$0xff] }
 0x9b2   :  { %v6691_v57 = vpack.c.bf16 %v3322_v52, %v3290_v33  ;;  %v6693_v34 = vpack.c.bf16 %v3321_v22, %v3289_v45  ;;  %4126 = vmatprep.subr.bf16.mxu1 %v7572_v32  ;;  %v2526_v63 = vpop.f32.mrb[208].mxu0  ;;  %v7574_v45 = vld [vmem:[#allocation69_spill] sm:$0xff] }
 0x9b3   :  { %7569 = vst [vmem:[#allocation48_spill] sm:$0xff] %v6687_v6  ;;  %v6696_v18 = vpack.c.bf16 %v3323_v8, %v3291_v46  ;;  %v2527_v48 = vadd.f32 %v2526_v63, %v5656_v12  ;;  %v2639_v7 = vpop.f32.mrb[208].mxu1  ;;  %v2528_v28 = vpop.f32.mrb[209].mxu0  ;;  %v7575_v52 = vld [vmem:[#allocation73_spill] sm:$0xff] }
 0x9b4   :  { %7571 = vst [vmem:[#allocation49_spill] sm:$0xff] %v6691_v57  ;;  %v2640_v50 = vadd.f32 %v2639_v7, %v5656_v12  ;;  %v2529_v14 = vadd.f32 %v2528_v28, %v5656_v12  ;;  %v2641_v23 = vpop.f32.mrb[209].mxu1  ;;  %4086 = vmatpush1.bf16.msra.mxu0 %v7573_v36  ;;  %v2530_v54 = vpop.f32.mrb[210].mxu0 }
 0x9b5   :  { %v2642_v22 = vadd.f32 %v2641_v23, %v5656_v12  ;;  %4127 = vmatpush1.bf16.msra.mxu1 %v7574_v45  ;;  %v2531_v19 = vadd.f32 %v2530_v54, %v5661_v4  ;;  %v2643_v8 = vpop.f32.mrb[210].mxu1  ;;  %4087 = vmatprep.subr.bf16.mxu0 %v6129_v20  ;;  %v2532_v46 = vpop.f32.mrb[211].mxu0  ;;  %v3352_v32 = vmax.f32 %v2527_v48, 0.0  ;;  %v7576_v54 = vld [vmem:[#allocation71_spill] sm:$0xff] }
 0x9b6   :  { %v2644_v33 = vadd.f32 %v2643_v8, %v5661_v4  ;;  %4128 = vmatprep.subr.bf16.mxu1 %v7575_v52  ;;  %v2533_v29 = vadd.f32 %v2532_v46, %v5661_v4  ;;  %v2645_v26 = vpop.f32.mrb[211].mxu1  ;;  %v3354_v28 = vmax.f32 %v2640_v50, 0.0  ;;  %v3353_v23 = vmax.f32 %v2529_v14, 0.0  ;;  %v7577_v8 = vld [vmem:[#allocation72_spill] sm:$0xff] }
 0x9b7   :  { %v3384_v63 = vmax.f32 %v2531_v19, 0.0  ;;  %v2646_v7 = vadd.f32 %v2645_v26, %v5661_v4  ;;  %v3355_v57 = vmax.f32 %v2642_v22, 0.0 }
 0x9b8   :  { %v3386_v36 = vmax.f32 %v2644_v33, 0.0  ;;  %v3385_v45 = vmax.f32 %v2533_v29, 0.0  ;;  %4088 = vmatpush1.bf16.msra.mxu0 %v7576_v54 }
 0x9b9   :  { %v6711_v20 = vpack.c.bf16 %v3384_v63, %v3352_v32  ;;  %v3387_v6 = vmax.f32 %v2646_v7, 0.0  ;;  %4129 = vmatpush1.bf16.msra.mxu1 %v7577_v8  ;;  %4089 = vmatprep.subr.bf16.mxu0 %v6156_v9 }
 0x9ba   :  { %v6715_v46 = vpack.c.bf16 %v3386_v36, %v3354_v28  ;;  %v6717_v48 = vpack.c.bf16 %v3385_v45, %v3353_v23  ;;  %4130 = vmatprep.subr.bf16.mxu1 %v6160_v61  ;;  %v2536_v50 = vpop.f32.mrb[212].mxu0 }
 0x9bb   :  { %v6720_v14 = vpack.c.bf16 %v3387_v6, %v3355_v57  ;;  %v2537_v19 = vadd.f32 %v2536_v50, %v5682_v51  ;;  %v2649_v33 = vpop.f32.mrb[212].mxu1  ;;  %v2538_v22 = vpop.f32.mrb[213].mxu0 }
 0x9bc   :  { %v2650_v52 = vadd.f32 %v2649_v33, %v5682_v51  ;;  %v2539_v29 = vadd.f32 %v2538_v22, %v5682_v51  ;;  %v2651_v26 = vpop.f32.mrb[213].mxu1  ;;  %4090 = vmatpush1.bf16.msra.mxu0 %v6148_v60  ;;  %v2540_v9 = vpop.f32.mrb[214].mxu0  ;;  %v7578_v22 = vld [vmem:[#allocation74_spill] sm:$0xff] }
 0x9bd   :  { %v2652_v32 = vadd.f32 %v2651_v26, %v5682_v51  ;;  %4131 = vmatpush1.bf16.msra.mxu1 %v6154_v49  ;;  %v2541_v61 = vadd.f32 %v2540_v9, %v5687_v2  ;;  %v2653_v6 = vpop.f32.mrb[214].mxu1  ;;  %4091 = vmatprep.subr.bf16.mxu0 %v6181_v30  ;;  %v2542_v57 = vpop.f32.mrb[215].mxu0  ;;  %v3416_v23 = vmax.f32 %v2537_v19, 0.0  ;;  %v7581_v9 = vld [vmem:[#allocation78_spill] sm:$0xff] }
 0x9be   :  { %v2654_v63 = vadd.f32 %v2653_v6, %v5687_v2  ;;  %4132 = vmatprep.subr.bf16.mxu1 %v6183_v0  ;;  %v2543_v7 = vadd.f32 %v2542_v57, %v5687_v2  ;;  %v2655_v28 = vpop.f32.mrb[215].mxu1  ;;  %v3418_v45 = vmax.f32 %v2650_v52, 0.0  ;;  %v3417_v54 = vmax.f32 %v2539_v29, 0.0  ;;  %v7579_v0 = vld [vmem:[#allocation77_spill] sm:$0xff] }
 0x9bf   :  { %v3448_v60 = vmax.f32 %v2541_v61, 0.0  ;;  %v2656_v36 = vadd.f32 %v2655_v28, %v5687_v2  ;;  %v3419_v50 = vmax.f32 %v2652_v32, 0.0 }
 0x9c0   :  { %v3450_v49 = vmax.f32 %v2654_v63, 0.0  ;;  %v3449_v8 = vmax.f32 %v2543_v7, 0.0  ;;  %4092 = vmatpush1.bf16.msra.mxu0 %v6176_v39  ;;  %v7582_v7 = vld [vmem:[#allocation75_spill] sm:$0xff] }
 0x9c1   :  { %v6735_v30 = vpack.c.bf16 %v3448_v60, %v3416_v23  ;;  %v3451_v33 = vmax.f32 %v2656_v36, 0.0  ;;  %4133 = vmatpush1.bf16.msra.mxu1 %v7578_v22  ;;  %4093 = vmatprep.subr.bf16.mxu0 %v7579_v0  ;;  %v7583_v60 = vld [vmem:[#allocation76_spill] sm:$0xff] }
 0x9c2   :  { %v6739_v26 = vpack.c.bf16 %v3450_v49, %v3418_v45  ;;  %v6741_v19 = vpack.c.bf16 %v3449_v8, %v3417_v54  ;;  %4134 = vmatprep.subr.bf16.mxu1 %v7581_v9  ;;  %v2546_v52 = vpop.f32.mrb[216].mxu0  ;;  %v7584_v54 = vld [vmem:[#allocation81_spill] sm:$0xff] }
 0x9c3   :  { %v6744_v29 = vpack.c.bf16 %v3451_v33, %v3419_v50  ;;  %v2547_v61 = vadd.f32 %v2546_v52, %v5708_v47  ;;  %v2659_v39 = vpop.f32.mrb[216].mxu1  ;;  %v2548_v32 = vpop.f32.mrb[217].mxu0  ;;  %v7585_v50 = vld [vmem:[#allocation82_spill] sm:$0xff] }
 0x9c4   :  { %7580 = vst [vmem:[#allocation46_spill] sm:$0xff] %v6739_v26  ;;  %v2660_v6 = vadd.f32 %v2659_v39, %v5708_v47  ;;  %v2549_v57 = vadd.f32 %v2548_v32, %v5708_v47  ;;  %v2661_v63 = vpop.f32.mrb[217].mxu1  ;;  %4094 = vmatpush1.bf16.msra.mxu0 %v7582_v7  ;;  %v2550_v28 = vpop.f32.mrb[218].mxu0 }
 0x9c5   :  { %v2662_v23 = vadd.f32 %v2661_v63, %v5708_v47  ;;  %4135 = vmatpush1.bf16.msra.mxu1 %v7583_v60  ;;  %v2551_v36 = vadd.f32 %v2550_v28, %v5713_v25  ;;  %v2663_v45 = vpop.f32.mrb[218].mxu1  ;;  %4161 = vmatprep.subr.bf16.mxu0 %v7584_v54  ;;  %v2552_v49 = vpop.f32.mrb[219].mxu0  ;;  %v3480_v0 = vmax.f32 %v2547_v61, 0.0  ;;  %v7586_v28 = vld [vmem:[#allocation79_spill] sm:$0xff]  ;;  %v7589_v61 = vld [vmem:[#allocation85_spill] sm:$0xff] }
 0x9c6   :  { %v2664_v8 = vadd.f32 %v2663_v45, %v5713_v25  ;;  %4202 = vmatprep.subr.bf16.mxu1 %v7585_v50  ;;  %v2553_v33 = vadd.f32 %v2552_v49, %v5713_v25  ;;  %v2665_v22 = vpop.f32.mrb[219].mxu1  ;;  %v3482_v39 = vmax.f32 %v2660_v6, 0.0  ;;  %v3481_v32 = vmax.f32 %v2549_v57, 0.0  ;;  %v7588_v49 = vld [vmem:[#allocation80_spill] sm:$0xff]  ;;  %v7592_v6 = vld [vmem:[#allocation86_spill] sm:$0xff] }
 0x9c7   :  { %v3512_v9 = vmax.f32 %v2551_v36, 0.0  ;;  %v2666_v52 = vadd.f32 %v2665_v22, %v5713_v25  ;;  %4112 = vmatmul.mubr.bf16.vlgmr.msra.gmra.mrb[44].mxu0 %v6551_v42  ;;  %v3483_v60 = vmax.f32 %v2662_v23, 0.0 }
 0x9c8   :  { %v3514_v63 = vmax.f32 %v2664_v8, 0.0  ;;  %v3513_v7 = vmax.f32 %v2553_v33, 0.0  ;;  %4153 = vmatmul.mubr.bf16.vlgmr.msra.gmra.mrb[44].mxu1 %v6551_v42  ;;  %4162 = vmatpush1.bf16.msra.mxu0 %v7586_v28 }
 0x9c9   :  { %v6761_v45 = vpack.c.bf16 %v3512_v9, %v3480_v0  ;;  %v3515_v54 = vmax.f32 %v2666_v52, 0.0  ;;  %4203 = vmatpush1.bf16.msra.mxu1 %v7588_v49  ;;  %4163 = vmatprep.subr.bf16.mxu0 %v7589_v61 }
 0x9ca   :  { %v6765_v36 = vpack.c.bf16 %v3514_v63, %v3482_v39  ;;  %v6767_v50 = vpack.c.bf16 %v3513_v7, %v3481_v32  ;;  %4204 = vmatprep.subr.bf16.mxu1 %v7592_v6  ;;  %v2556_v57 = vpop.f32.mrb[220].mxu0  ;;  %4193 = vmatprep.mubr.bf16.mxu0 %v7380_v35  ;;  %v7594_v39 = vld [vmem:[#allocation83_spill] sm:$0xff]  ;;  %v7595_v7 = vld [vmem:[#allocation84_spill] sm:$0xff]  ;;  %v7597_v6 = vld [vmem:[#allocation90_spill] sm:$0xff] }
 0x9cb   :  { %7587 = vst [vmem:[#allocation47_spill] sm:$0xff] %v6761_v45  ;;  %v6771_v8 = vpack.c.bf16 %v3515_v54, %v3483_v60  ;;  %v2557_v23 = vadd.f32 %v2556_v57, %v5734_v43  ;;  %v2669_v33 = vpop.f32.mrb[220].mxu1  ;;  %v2558_v22 = vpop.f32.mrb[221].mxu0  ;;  %4234 = vmatprep.mubr.bf16.mxu1 %v7380_v35  ;;  %v7596_v54 = vld [vmem:[#allocation89_spill] sm:$0xff] }
 0x9cc   :  { %7590 = vst [vmem:[#allocation52_spill] sm:$0xff] %v6765_v36  ;;  %7591 = vst [vmem:[#allocation53_spill] sm:$0xff] %v6767_v50  ;;  %v2670_v0 = vadd.f32 %v2669_v33, %v5734_v43  ;;  %v2559_v9 = vadd.f32 %v2558_v22, %v5734_v43  ;;  %v2671_v52 = vpop.f32.mrb[221].mxu1  ;;  %4164 = vmatpush1.bf16.msra.mxu0 %v7594_v39  ;;  %v2560_v32 = vpop.f32.mrb[222].mxu0 }
 0x9cd   :  { %7593 = vst [vmem:[#allocation50_spill] sm:$0xff] %v6771_v8  ;;  %v2672_v63 = vadd.f32 %v2671_v52, %v5734_v43  ;;  %4205 = vmatpush1.bf16.msra.mxu1 %v7595_v7  ;;  %v2561_v28 = vadd.f32 %v2560_v32, %v5740_v3  ;;  %v2673_v60 = vpop.f32.mrb[222].mxu1  ;;  %4165 = vmatprep.subr.bf16.mxu0 %v7596_v54  ;;  %v2562_v49 = vpop.f32.mrb[223].mxu0  ;;  %v3544_v22 = vmax.f32 %v2557_v23, 0.0  ;;  %v7598_v32 = vld [vmem:[#allocation87_spill] sm:$0xff] }
 0x9ce   :  { %v2674_v61 = vadd.f32 %v2673_v60, %v5740_v3  ;;  %4206 = vmatprep.subr.bf16.mxu1 %v7597_v6  ;;  %v2563_v57 = vadd.f32 %v2562_v49, %v5740_v3  ;;  %v2675_v33 = vpop.f32.mrb[223].mxu1  ;;  %v3546_v52 = vmax.f32 %v2670_v0, 0.0  ;;  %v3545_v45 = vmax.f32 %v2559_v9, 0.0  ;;  %v7600_v60 = vld [vmem:[#allocation88_spill] sm:$0xff]  ;;  %v7601_v6 = vld [vmem:[#allocation93_spill] sm:$0xff] }
 0x9cf   :  { %v3576_v39 = vmax.f32 %v2561_v28, 0.0  ;;  %v2676_v36 = vadd.f32 %v2675_v33, %v5740_v3  ;;  %v3547_v50 = vmax.f32 %v2672_v63, 0.0  ;;  %v7603_v28 = vld [vmem:[#allocation94_spill] sm:$0xff] }
 0x9d0   :  { %v3578_v7 = vmax.f32 %v2674_v61, 0.0  ;;  %v3577_v8 = vmax.f32 %v2563_v57, 0.0  ;;  %4166 = vmatpush1.bf16.msra.mxu0 %v7598_v32 }
 0x9d1   :  { %v6787_v54 = vpack.c.bf16 %v3576_v39, %v3544_v22  ;;  %v3579_v26 = vmax.f32 %v2676_v36, 0.0  ;;  %4207 = vmatpush1.bf16.msra.mxu1 %v7600_v60  ;;  %4167 = vmatprep.subr.bf16.mxu0 %v7601_v6  ;;  %v7605_v39 = vld [vmem:[#allocation91_spill] sm:$0xff]  ;;  %v7607_v60 = vld [vmem:[#allocation97_spill] sm:$0xff] }
 0x9d2   :  { %v6791_v49 = vpack.c.bf16 %v3578_v7, %v3546_v52  ;;  %v6793_v23 = vpack.c.bf16 %v3577_v8, %v3545_v45  ;;  %4208 = vmatprep.subr.bf16.mxu1 %v7603_v28  ;;  %v2566_v0 = vpop.f32.mrb[224].mxu0  ;;  %v7606_v8 = vld [vmem:[#allocation92_spill] sm:$0xff] }
 0x9d3   :  { %7599 = vst [vmem:[#allocation51_spill] sm:$0xff] %v6787_v54  ;;  %v6796_v9 = vpack.c.bf16 %v3579_v26, %v3547_v50  ;;  %v2567_v61 = vadd.f32 %v2566_v0, %v5764_v31  ;;  %v2679_v57 = vpop.f32.mrb[224].mxu1  ;;  %v2568_v63 = vpop.f32.mrb[225].mxu0 }
 0x9d4   :  { %7602 = vst [vmem:[#allocation56_spill] sm:$0xff] %v6791_v49  ;;  %v2680_v33 = vadd.f32 %v2679_v57, %v5764_v31  ;;  %v2569_v36 = vadd.f32 %v2568_v63, %v5764_v31  ;;  %v2681_v22 = vpop.f32.mrb[225].mxu1  ;;  %4168 = vmatpush1.bf16.msra.mxu0 %v7605_v39  ;;  %v2570_v52 = vpop.f32.mrb[226].mxu0 }
 0x9d5   :  { %7604 = vst [vmem:[#allocation57_spill] sm:$0xff] %v6796_v9  ;;  %v2682_v45 = vadd.f32 %v2681_v22, %v5764_v31  ;;  %4209 = vmatpush1.bf16.msra.mxu1 %v7606_v8  ;;  %v2571_v7 = vadd.f32 %v2570_v52, %v5769_v13  ;;  %v2683_v26 = vpop.f32.mrb[226].mxu1  ;;  %4169 = vmatprep.subr.bf16.mxu0 %v6328_v37  ;;  %v2572_v50 = vpop.f32.mrb[227].mxu0  ;;  %v3608_v0 = vmax.f32 %v2567_v61, 0.0  ;;  %v7608_v52 = vld [vmem:[#allocation95_spill] sm:$0xff] }
 0x9d6   :  { %v2684_v32 = vadd.f32 %v2683_v26, %v5769_v13  ;;  %4210 = vmatprep.subr.bf16.mxu1 %v7607_v60  ;;  %v2573_v6 = vadd.f32 %v2572_v50, %v5769_v13  ;;  %v2685_v28 = vpop.f32.mrb[227].mxu1  ;;  %v3610_v22 = vmax.f32 %v2680_v33, 0.0  ;;  %v3609_v39 = vmax.f32 %v2569_v36, 0.0  ;;  %v7609_v26 = vld [vmem:[#allocation96_spill] sm:$0xff] }
 0x9d7   :  { %v3640_v57 = vmax.f32 %v2571_v7, 0.0  ;;  %v2686_v63 = vadd.f32 %v2685_v28, %v5769_v13  ;;  %v3611_v54 = vmax.f32 %v2682_v45, 0.0 }
 0x9d8   :  { %v3642_v8 = vmax.f32 %v2684_v32, 0.0  ;;  %v3641_v49 = vmax.f32 %v2573_v6, 0.0  ;;  %4170 = vmatpush1.bf16.msra.mxu0 %v7608_v52 }
 0x9d9   :  { %v6811_v37 = vpack.c.bf16 %v3640_v57, %v3608_v0  ;;  %v3643_v9 = vmax.f32 %v2686_v63, 0.0  ;;  %4211 = vmatpush1.bf16.msra.mxu1 %v7609_v26  ;;  %4171 = vmatprep.subr.bf16.mxu0 %v6352_v27 }
 0x9da   :  { %v6815_v50 = vpack.c.bf16 %v3642_v8, %v3610_v22  ;;  %v6817_v61 = vpack.c.bf16 %v3641_v49, %v3609_v39  ;;  %4212 = vmatprep.subr.bf16.mxu1 %v6356_v15  ;;  %v2722_v33 = vpop.f32.mrb[228].mxu0 }
 0x9db   :  { %v6820_v36 = vpack.c.bf16 %v3643_v9, %v3611_v54  ;;  %v2723_v7 = vadd.f32 %v2722_v33, %v5554_v58  ;;  %v2835_v32 = vpop.f32.mrb[228].mxu1  ;;  %v2724_v45 = vpop.f32.mrb[229].mxu0 }
 0x9dc   :  { %v2836_v60 = vadd.f32 %v2835_v32, %v5554_v58  ;;  %v2725_v6 = vadd.f32 %v2724_v45, %v5554_v58  ;;  %v2837_v28 = vpop.f32.mrb[229].mxu1  ;;  %4172 = vmatpush1.bf16.msra.mxu0 %v6346_v59  ;;  %v2726_v27 = vpop.f32.mrb[230].mxu0 }
 0x9dd   :  { %v2838_v49 = vadd.f32 %v2837_v28, %v5554_v58  ;;  %4213 = vmatpush1.bf16.msra.mxu1 %v6350_v24  ;;  %v2727_v15 = vadd.f32 %v2726_v27, %v5557_v62  ;;  %v2839_v54 = vpop.f32.mrb[230].mxu1  ;;  %4173 = vmatprep.subr.bf16.mxu0 %v6383_v40  ;;  %v2728_v9 = vpop.f32.mrb[231].mxu0  ;;  %v3164_v22 = vmax.f32 %v2723_v7, 0.0 }
 0x9de   :  { %v2840_v0 = vadd.f32 %v2839_v54, %v5557_v62  ;;  %4214 = vmatprep.subr.bf16.mxu1 %v6387_v44  ;;  %v2729_v57 = vadd.f32 %v2728_v9, %v5557_v62  ;;  %v2841_v63 = vpop.f32.mrb[231].mxu1  ;;  %v3166_v8 = vmax.f32 %v2836_v60, 0.0  ;;  %v3165_v52 = vmax.f32 %v2725_v6, 0.0  ;;  %v7611_v9 = vld [vmem:[#allocation8_spill] sm:$0xff] }
 0x9df   :  { %v3196_v59 = vmax.f32 %v2727_v15, 0.0  ;;  %v2842_v39 = vadd.f32 %v2841_v63, %v5557_v62  ;;  %v3167_v33 = vmax.f32 %v2838_v49, 0.0  ;;  %v7610_v15 = vld [vmem:[#allocation6_spill] sm:$0xff] }
 0x9e0   :  { %v3198_v24 = vmax.f32 %v2840_v0, 0.0  ;;  %v3197_v26 = vmax.f32 %v2729_v57, 0.0  ;;  %4174 = vmatpush1.bf16.msra.mxu0 %v6377_v55 }
 0x9e1   :  { %v6835_v40 = vpack.c.bf16 %v3196_v59, %v3164_v22  ;;  %v3199_v32 = vmax.f32 %v2842_v39, 0.0  ;;  %4215 = vmatpush1.bf16.msra.mxu1 %v6381_v53  ;;  %4175 = vmatprep.subr.bf16.mxu0 %v6414_v38  ;;  %v7612_v22 = vld [vmem:[#allocation10_spill] sm:$0xff] }
 0x9e2   :  { %v6839_v44 = vpack.c.bf16 %v3198_v24, %v3166_v8  ;;  %v6841_v7 = vpack.c.bf16 %v3197_v26, %v3165_v52  ;;  %4216 = vmatprep.subr.bf16.mxu1 %v6418_v41  ;;  %v2732_v45 = vpop.f32.mrb[232].mxu0 }
 0x9e3   :  { %v6844_v60 = vpack.c.bf16 %v3199_v32, %v3167_v33  ;;  %v2733_v6 = vadd.f32 %v2732_v45, %v5572_v11  ;;  %v2845_v55 = vpop.f32.mrb[232].mxu1  ;;  %v2734_v28 = vpop.f32.mrb[233].mxu0 }
 0x9e4   :  { %v2846_v27 = vadd.f32 %v2845_v55, %v5572_v11  ;;  %v2735_v49 = vadd.f32 %v2734_v28, %v5572_v11  ;;  %v2847_v53 = vpop.f32.mrb[233].mxu1  ;;  %4176 = vmatpush1.bf16.msra.mxu0 %v7610_v15  ;;  %v2736_v38 = vpop.f32.mrb[234].mxu0  ;;  %v7614_v15 = vld [vmem:[#allocation14_spill] sm:$0xff] }
 0x9e5   :  { %v2848_v54 = vadd.f32 %v2847_v53, %v5572_v11  ;;  %4217 = vmatpush1.bf16.msra.mxu1 %v7611_v9  ;;  %v2737_v41 = vadd.f32 %v2736_v38, %v5577_v5  ;;  %v2849_v0 = vpop.f32.mrb[234].mxu1  ;;  %4243 = vmatprep.subr.bf16.mxu0 %v6445_v21  ;;  %v2738_v57 = vpop.f32.mrb[235].mxu0  ;;  %v3228_v8 = vmax.f32 %v2733_v6, 0.0  ;;  %v7613_v21 = vld [vmem:[#allocation13_spill] sm:$0xff]  ;;  %v7615_v6 = vld [vmem:[#allocation16_spill] sm:$0xff] }
 0x9e6   :  { %v2850_v63 = vadd.f32 %v2849_v0, %v5577_v5  ;;  %4284 = vmatprep.subr.bf16.mxu1 %v7612_v22  ;;  %v2739_v59 = vadd.f32 %v2738_v57, %v5577_v5  ;;  %v2851_v39 = vpop.f32.mrb[235].mxu1  ;;  %v3230_v26 = vmax.f32 %v2846_v27, 0.0  ;;  %v3229_v33 = vmax.f32 %v2735_v49, 0.0  ;;  %v7616_v27 = vld [vmem:[#allocation17_spill] sm:$0xff] }
 0x9e7   :  { %v3260_v52 = vmax.f32 %v2737_v41, 0.0  ;;  %v2852_v24 = vadd.f32 %v2851_v39, %v5577_v5  ;;  %4194 = vmatmul.mubr.bf16.vlgmr.msra.gmra.mrb[48].mxu0 %v6551_v42  ;;  %v3231_v55 = vmax.f32 %v2848_v54, 0.0 }
 0x9e8   :  { %v3262_v32 = vmax.f32 %v2850_v63, 0.0  ;;  %v3261_v45 = vmax.f32 %v2739_v59, 0.0  ;;  %4235 = vmatmul.mubr.bf16.vlgmr.msra.gmra.mrb[48].mxu1 %v6551_v42  ;;  %4244 = vmatpush1.bf16.msra.mxu0 %v7613_v21  ;;  %v7617_v59 = vld [vmem:[#allocation12_spill] sm:$0xff] }
 0x9e9   :  { %v6861_v28 = vpack.c.bf16 %v3260_v52, %v3228_v8  ;;  %v3263_v53 = vmax.f32 %v2852_v24, 0.0  ;;  %4285 = vmatpush1.bf16.msra.mxu1 %v7614_v15  ;;  %4245 = vmatprep.subr.bf16.mxu0 %v7615_v6  ;;  %v7618_v52 = vld [vmem:[#allocation18_spill] sm:$0xff]  ;;  %v7620_v21 = vld [vmem:[#allocation20_spill] sm:$0xff] }
 0x9ea   :  { %v6865_v38 = vpack.c.bf16 %v3262_v32, %v3230_v26  ;;  %v6867_v9 = vpack.c.bf16 %v3261_v45, %v3229_v33  ;;  %4286 = vmatprep.subr.bf16.mxu1 %v7616_v27  ;;  %v2742_v49 = vpop.f32.mrb[236].mxu0  ;;  %4275 = vmatprep.mubr.bf16.mxu0 %v7380_v35  ;;  %v7619_v33 = vld [vmem:[#allocation19_spill] sm:$0xff] }
 0x9eb   :  { %v6871_v42 = vpack.c.bf16 %v3263_v53, %v3231_v55  ;;  %v2743_v54 = vadd.f32 %v2742_v49, %v5613_v1  ;;  %v2855_v41 = vpop.f32.mrb[236].mxu1  ;;  %v2744_v0 = vpop.f32.mrb[237].mxu0  ;;  %4316 = vmatprep.mubr.bf16.mxu1 %v7380_v35 }
 0x9ec   :  { %v2856_v57 = vadd.f32 %v2855_v41, %v5613_v1  ;;  %v2745_v63 = vadd.f32 %v2744_v0, %v5613_v1  ;;  %v2857_v22 = vpop.f32.mrb[237].mxu1  ;;  %4246 = vmatpush1.bf16.msra.mxu0 %v7617_v59  ;;  %v2746_v39 = vpop.f32.mrb[238].mxu0  ;;  %v7621_v59 = vld [vmem:[#allocation21_spill] sm:$0xff] }
 0x9ed   :  { %v2858_v8 = vadd.f32 %v2857_v22, %v5613_v1  ;;  %4287 = vmatpush1.bf16.msra.mxu1 %v7618_v52  ;;  %v2747_v24 = vadd.f32 %v2746_v39, %v5627_v17  ;;  %v2859_v26 = vpop.f32.mrb[238].mxu1  ;;  %4247 = vmatprep.subr.bf16.mxu0 %v7619_v33  ;;  %v2748_v32 = vpop.f32.mrb[239].mxu0  ;;  %v3292_v15 = vmax.f32 %v2743_v54, 0.0 }
 0x9ee   :  { %v2860_v45 = vadd.f32 %v2859_v26, %v5627_v17  ;;  %4288 = vmatprep.subr.bf16.mxu1 %v7620_v21  ;;  %v2749_v55 = vadd.f32 %v2748_v32, %v5627_v17  ;;  %v2861_v53 = vpop.f32.mrb[239].mxu1  ;;  %v3294_v49 = vmax.f32 %v2856_v57, 0.0  ;;  %v3293_v41 = vmax.f32 %v2745_v63, 0.0  ;;  %v7623_v26 = vld [vmem:[#allocation22_spill] sm:$0xff]  ;;  %v7624_v21 = vld [vmem:[#allocation23_spill] sm:$0xff] }
 0x9ef   :  { %v3324_v6 = vmax.f32 %v2747_v24, 0.0  ;;  %v2862_v27 = vadd.f32 %v2861_v53, %v5627_v17  ;;  %v3295_v39 = vmax.f32 %v2858_v8, 0.0  ;;  %v7626_v24 = vld [vmem:[#allocation24_spill] sm:$0xff] }
 0x9f0   :  { %v3326_v0 = vmax.f32 %v2860_v45, 0.0  ;;  %v3325_v22 = vmax.f32 %v2749_v55, 0.0  ;;  %4248 = vmatpush1.bf16.msra.mxu0 %v7621_v59 }
 0x9f1   :  { %v6887_v52 = vpack.c.bf16 %v3324_v6, %v3292_v15  ;;  %v3327_v33 = vmax.f32 %v2862_v27, 0.0  ;;  %4289 = vmatpush1.bf16.msra.mxu1 %v7623_v26  ;;  %4249 = vmatprep.subr.bf16.mxu0 %v7624_v21  ;;  %v7628_v27 = vld [vmem:[#allocation25_spill] sm:$0xff]  ;;  %v7631_v21 = vld [vmem:[#allocation99_spill] sm:$0xff] }
 0x9f2   :  { %v6891_v32 = vpack.c.bf16 %v3326_v0, %v3294_v49  ;;  %v6893_v54 = vpack.c.bf16 %v3325_v22, %v3293_v41  ;;  %4290 = vmatprep.subr.bf16.mxu1 %v7626_v24  ;;  %v2752_v57 = vpop.f32.mrb[240].mxu0  ;;  %v7629_v0 = vld [vmem:[#allocation26_spill] sm:$0xff] }
 0x9f3   :  { %7622 = vst [vmem:[#allocation54_spill] sm:$0xff] %v6887_v52  ;;  %v6896_v63 = vpack.c.bf16 %v3327_v33, %v3295_v39  ;;  %v2753_v45 = vadd.f32 %v2752_v57, %v5656_v12  ;;  %v2865_v55 = vpop.f32.mrb[240].mxu1  ;;  %v2754_v8 = vpop.f32.mrb[241].mxu0  ;;  %v7630_v39 = vld [vmem:[#allocation98_spill] sm:$0xff] }
 0x9f4   :  { %7625 = vst [vmem:[#allocation55_spill] sm:$0xff] %v6891_v32  ;;  %v2866_v53 = vadd.f32 %v2865_v55, %v5656_v12  ;;  %v2755_v15 = vadd.f32 %v2754_v8, %v5656_v12  ;;  %v2867_v6 = vpop.f32.mrb[241].mxu1  ;;  %4250 = vmatpush1.bf16.msra.mxu0 %v7628_v27  ;;  %v2756_v49 = vpop.f32.mrb[242].mxu0 }
 0x9f5   :  { %7627 = vst [vmem:[#allocation60_spill] sm:$0xff] %v6896_v63  ;;  %v2868_v41 = vadd.f32 %v2867_v6, %v5656_v12  ;;  %4291 = vmatpush1.bf16.msra.mxu1 %v7629_v0  ;;  %v2757_v22 = vadd.f32 %v2756_v49, %v5661_v4  ;;  %v2869_v59 = vpop.f32.mrb[242].mxu1  ;;  %4251 = vmatprep.subr.bf16.mxu0 %v7630_v39  ;;  %v2758_v33 = vpop.f32.mrb[243].mxu0  ;;  %v3356_v55 = vmax.f32 %v2753_v45, 0.0  ;;  %v7632_v49 = vld [vmem:[#allocation29_spill] sm:$0xff] }
 0x9f6   :  { %v2870_v26 = vadd.f32 %v2869_v59, %v5661_v4  ;;  %4292 = vmatprep.subr.bf16.mxu1 %v7631_v21  ;;  %v2759_v24 = vadd.f32 %v2758_v33, %v5661_v4  ;;  %v2871_v57 = vpop.f32.mrb[243].mxu1  ;;  %v3358_v6 = vmax.f32 %v2866_v53, 0.0  ;;  %v3357_v12 = vmax.f32 %v2755_v15, 0.0  ;;  %v7633_v59 = vld [vmem:[#allocation30_spill] sm:$0xff]  ;;  %v7634_v21 = vld [vmem:[#allocation33_spill] sm:$0xff] }
 0x9f7   :  { %v3388_v8 = vmax.f32 %v2757_v22, 0.0  ;;  %v2872_v27 = vadd.f32 %v2871_v57, %v5661_v4  ;;  %v3359_v52 = vmax.f32 %v2868_v41, 0.0  ;;  %v7636_v22 = vld [vmem:[#allocation34_spill] sm:$0xff] }
 0x9f8   :  { %v3390_v0 = vmax.f32 %v2870_v26, 0.0  ;;  %v3389_v32 = vmax.f32 %v2759_v24, 0.0  ;;  %4252 = vmatpush1.bf16.msra.mxu0 %v7632_v49 }
 0x9f9   :  { %v6911_v39 = vpack.c.bf16 %v3388_v8, %v3356_v55  ;;  %v3391_v63 = vmax.f32 %v2872_v27, 0.0  ;;  %4293 = vmatpush1.bf16.msra.mxu1 %v7633_v59  ;;  %4253 = vmatprep.subr.bf16.mxu0 %v7634_v21  ;;  %v7637_v27 = vld [vmem:[#allocation27_spill] sm:$0xff]  ;;  %v7639_v59 = vld [vmem:[#allocation37_spill] sm:$0xff] }
 0x9fa   :  { %v6915_v33 = vpack.c.bf16 %v3390_v0, %v3358_v6  ;;  %v6917_v45 = vpack.c.bf16 %v3389_v32, %v3357_v12  ;;  %4294 = vmatprep.subr.bf16.mxu1 %v7636_v22  ;;  %v2762_v53 = vpop.f32.mrb[244].mxu0  ;;  %v7638_v32 = vld [vmem:[#allocation28_spill] sm:$0xff] }
 0x9fb   :  { %v6920_v15 = vpack.c.bf16 %v3391_v63, %v3359_v52  ;;  %v2763_v26 = vadd.f32 %v2762_v53, %v5682_v51  ;;  %v2875_v24 = vpop.f32.mrb[244].mxu1  ;;  %v2764_v41 = vpop.f32.mrb[245].mxu0 }
 0x9fc   :  { %7635 = vst [vmem:[#allocation61_spill] sm:$0xff] %v6915_v33  ;;  %v2876_v57 = vadd.f32 %v2875_v24, %v5682_v51  ;;  %v2765_v55 = vadd.f32 %v2764_v41, %v5682_v51  ;;  %v2877_v8 = vpop.f32.mrb[245].mxu1  ;;  %4254 = vmatpush1.bf16.msra.mxu0 %v7637_v27  ;;  %v2766_v6 = vpop.f32.mrb[246].mxu0 }
 0x9fd   :  { %v2878_v12 = vadd.f32 %v2877_v8, %v5682_v51  ;;  %4295 = vmatpush1.bf16.msra.mxu1 %v7638_v32  ;;  %v2767_v0 = vadd.f32 %v2766_v6, %v5687_v2  ;;  %v2879_v52 = vpop.f32.mrb[246].mxu1  ;;  %4255 = vmatprep.subr.bf16.mxu0 %v6593_v10  ;;  %v2768_v63 = vpop.f32.mrb[247].mxu0  ;;  %v3420_v53 = vmax.f32 %v2763_v26, 0.0  ;;  %v7640_v6 = vld [vmem:[#allocation31_spill] sm:$0xff] }
 0x9fe   :  { %v2880_v49 = vadd.f32 %v2879_v52, %v5687_v2  ;;  %4296 = vmatprep.subr.bf16.mxu1 %v7639_v59  ;;  %v2769_v21 = vadd.f32 %v2768_v63, %v5687_v2  ;;  %v2881_v22 = vpop.f32.mrb[247].mxu1  ;;  %v3422_v8 = vmax.f32 %v2876_v57, 0.0  ;;  %v3421_v27 = vmax.f32 %v2765_v55, 0.0  ;;  %v7641_v52 = vld [vmem:[#allocation32_spill] sm:$0xff] }
 0x9ff   :  { %v3452_v24 = vmax.f32 %v2767_v0, 0.0  ;;  %v2882_v41 = vadd.f32 %v2881_v22, %v5687_v2  ;;  %v3423_v4 = vmax.f32 %v2878_v12, 0.0  ;;  %v7642_v59 = vld [vmem:[#allocation36_spill] sm:$0xff]  ;;  %v7643_v0 = vld [vmem:[#allocation41_spill] sm:$0xff] }
 0xa00   :  { %v3454_v32 = vmax.f32 %v2880_v49, 0.0  ;;  %v3453_v51 = vmax.f32 %v2769_v21, 0.0  ;;  %4256 = vmatpush1.bf16.msra.mxu0 %v7640_v6 }
 0xa01   :  { %v6935_v10 = vpack.c.bf16 %v3452_v24, %v3420_v53  ;;  %v3455_v33 = vmax.f32 %v2882_v41, 0.0  ;;  %4297 = vmatpush1.bf16.msra.mxu1 %v7641_v52  ;;  %4257 = vmatprep.subr.bf16.mxu0 %v7642_v59  ;;  %v7644_v41 = vld [vmem:[#allocation38_spill] sm:$0xff] }
 0xa02   :  { %v6939_v63 = vpack.c.bf16 %v3454_v32, %v3422_v8  ;;  %v6941_v26 = vpack.c.bf16 %v3453_v51, %v3421_v27  ;;  %4298 = vmatprep.subr.bf16.mxu1 %v7643_v0  ;;  %v2772_v57 = vpop.f32.mrb[248].mxu0  ;;  %v7645_v27 = vld [vmem:[#allocation35_spill] sm:$0xff] }
 0xa03   :  { %v6944_v55 = vpack.c.bf16 %v3455_v33, %v3423_v4  ;;  %v2773_v49 = vadd.f32 %v2772_v57, %v5708_v47  ;;  %v2885_v21 = vpop.f32.mrb[248].mxu1  ;;  %v2774_v12 = vpop.f32.mrb[249].mxu0 }
 0xa04   :  { %v2886_v22 = vadd.f32 %v2885_v21, %v5708_v47  ;;  %v2775_v53 = vadd.f32 %v2774_v12, %v5708_v47  ;;  %v2887_v24 = vpop.f32.mrb[249].mxu1  ;;  %4258 = vmatpush1.bf16.msra.mxu0 %v7644_v41  ;;  %v2776_v8 = vpop.f32.mrb[250].mxu0  ;;  %v6961_v12 = vld [vmem:[%s7356_s7] sm:$0xf] }
 0xa05   :  { %v2888_v51 = vadd.f32 %v2887_v24, %v5708_v47  ;;  %4299 = vmatpush1.bf16.msra.mxu1 %v7645_v27  ;;  %v2777_v32 = vadd.f32 %v2776_v8, %v5713_v25  ;;  %v2889_v4 = vpop.f32.mrb[250].mxu1  ;;  %4325 = vmatprep.subr.bf16.mxu0 %v6641_v56  ;;  %v2778_v33 = vpop.f32.mrb[251].mxu0  ;;  %v3484_v0 = vmax.f32 %v2773_v49, 0.0 }
 0xa06   :  { %v2890_v6 = vadd.f32 %v2889_v4, %v5713_v25  ;;  %4366 = vmatprep.subr.bf16.mxu1 %v6644_v16  ;;  %v2779_v52 = vadd.f32 %v2778_v33, %v5713_v25  ;;  %v2891_v59 = vpop.f32.mrb[251].mxu1  ;;  %v3486_v56 = vmax.f32 %v2886_v22, 0.0  ;;  %v3485_v24 = vmax.f32 %v2775_v53, 0.0  ;;  %v7646_v16 = vld [vmem:[#allocation42_spill] sm:$0xff]  ;;  %v7647_v4 = vld [vmem:[#allocation39_spill] sm:$0xff]  ;;  %v7650_v22 = vld [vmem:[#allocation44_spill] sm:$0xff] }
 0xa07   :  { %v3516_v57 = vmax.f32 %v2777_v32, 0.0  ;;  %v2892_v21 = vadd.f32 %v2891_v59, %v5713_v25  ;;  %4276 = vmatmul.mubr.bf16.vlgmr.msra.gmra.mrb[52].mxu0 %v6961_v12  ;;  %v3487_v27 = vmax.f32 %v2888_v51, 0.0  ;;  %v7648_v33 = vld [vmem:[#allocation43_spill] sm:$0xff] }
 0xa08   :  { %v3518_v41 = vmax.f32 %v2890_v6, 0.0  ;;  %v3517_v8 = vmax.f32 %v2779_v52, 0.0  ;;  %4317 = vmatmul.mubr.bf16.vlgmr.msra.gmra.mrb[52].mxu1 %v6961_v12  ;;  %4326 = vmatpush1.bf16.msra.mxu0 %v7646_v16  ;;  %v7652_v16 = vld [vmem:[#allocation45_spill] sm:$0xff] }
 0xa09   :  { %v6966_v49 = vpack.c.bf16 %v3516_v57, %v3484_v0  ;;  %v3519_v32 = vmax.f32 %v2892_v21, 0.0  ;;  %4367 = vmatpush1.bf16.msra.mxu1 %v7647_v4  ;;  %4327 = vmatprep.subr.bf16.mxu0 %v7648_v33 }
 0xa0a   :  { %v6970_v59 = vpack.c.bf16 %v3518_v41, %v3486_v56  ;;  %v6972_v25 = vpack.c.bf16 %v3517_v8, %v3485_v24  ;;  %4368 = vmatprep.subr.bf16.mxu1 %v7650_v22  ;;  %v2782_v53 = vpop.f32.mrb[252].mxu0  ;;  %4357 = vmatprep.mubr.bf16.mxu0 %v7380_v35  ;;  %v7651_v24 = vld [vmem:[#allocation40_spill] sm:$0xff] }
 0xa0b   :  { %v6976_v6 = vpack.c.bf16 %v3519_v32, %v3487_v27  ;;  %v2783_v51 = vadd.f32 %v2782_v53, %v5734_v43  ;;  %v2895_v52 = vpop.f32.mrb[252].mxu1  ;;  %v2784_v0 = vpop.f32.mrb[253].mxu0  ;;  %4398 = vmatprep.mubr.bf16.mxu1 %v7380_v35 }
 0xa0c   :  { %7649 = vst [vmem:[#allocation58_spill] sm:$0xff] %v6970_v59  ;;  %v2896_v57 = vadd.f32 %v2895_v52, %v5734_v43  ;;  %v2785_v21 = vadd.f32 %v2784_v0, %v5734_v43  ;;  %v2897_v56 = vpop.f32.mrb[253].mxu1  ;;  %4328 = vmatpush1.bf16.msra.mxu0 %v7651_v24  ;;  %v2786_v41 = vpop.f32.mrb[254].mxu0 }
 0xa0d   :  { %v2898_v8 = vadd.f32 %v2897_v56, %v5734_v43  ;;  %4369 = vmatpush1.bf16.msra.mxu1 %v7652_v16  ;;  %v2787_v27 = vadd.f32 %v2786_v41, %v5740_v3  ;;  %v2899_v32 = vpop.f32.mrb[254].mxu1  ;;  %4329 = vmatprep.subr.bf16.mxu0 %v6693_v34  ;;  %v2788_v4 = vpop.f32.mrb[255].mxu0  ;;  %v3548_v52 = vmax.f32 %v2783_v51, 0.0  ;;  %v7653_v41 = vld [vmem:[#allocation48_spill] sm:$0xff] }
 0xa0e   :  { %v2900_v33 = vadd.f32 %v2899_v32, %v5740_v3  ;;  %4370 = vmatprep.subr.bf16.mxu1 %v6696_v18  ;;  %v2789_v22 = vadd.f32 %v2788_v4, %v5740_v3  ;;  %v2901_v53 = vpop.f32.mrb[255].mxu1  ;;  %v3550_v56 = vmax.f32 %v2896_v57, 0.0  ;;  %v3549_v43 = vmax.f32 %v2785_v21, 0.0  ;;  %v7654_v32 = vld [vmem:[#allocation49_spill] sm:$0xff] }
 0xa0f   :  { %v3580_v0 = vmax.f32 %v2787_v27, 0.0  ;;  %v2902_v24 = vadd.f32 %v2901_v53, %v5740_v3  ;;  %v3551_v2 = vmax.f32 %v2898_v8, 0.0 }
 0xa10   :  { %v3582_v16 = vmax.f32 %v2900_v33, 0.0  ;;  %v3581_v47 = vmax.f32 %v2789_v22, 0.0  ;;  %4330 = vmatpush1.bf16.msra.mxu0 %v7653_v41 }
 0xa11   :  { %v6992_v34 = vpack.c.bf16 %v3580_v0, %v3548_v52  ;;  %v3583_v59 = vmax.f32 %v2902_v24, 0.0  ;;  %4371 = vmatpush1.bf16.msra.mxu1 %v7654_v32  ;;  %4331 = vmatprep.subr.bf16.mxu0 %v6717_v48 }
 0xa12   :  { %v6996_v18 = vpack.c.bf16 %v3582_v16, %v3550_v56  ;;  %v6998_v51 = vpack.c.bf16 %v3581_v47, %v3549_v43  ;;  %4372 = vmatprep.subr.bf16.mxu1 %v6720_v14  ;;  %v2792_v57 = vpop.f32.mrb[0].mxu0 }
 0xa13   :  { %v7001_v21 = vpack.c.bf16 %v3583_v59, %v3551_v2  ;;  %v2793_v27 = vadd.f32 %v2792_v57, %v5764_v31  ;;  %v2905_v4 = vpop.f32.mrb[0].mxu1  ;;  %v2794_v8 = vpop.f32.mrb[1].mxu0 }
 0xa14   :  { %v2906_v33 = vadd.f32 %v2905_v4, %v5764_v31  ;;  %v2795_v22 = vadd.f32 %v2794_v8, %v5764_v31  ;;  %v2907_v53 = vpop.f32.mrb[1].mxu1  ;;  %4332 = vmatpush1.bf16.msra.mxu0 %v6711_v20  ;;  %v2796_v48 = vpop.f32.mrb[2].mxu0  ;;  %v7655_v8 = vld [vmem:[#allocation46_spill] sm:$0xff] }
 0xa15   :  { %v2908_v47 = vadd.f32 %v2907_v53, %v5764_v31  ;;  %4373 = vmatpush1.bf16.msra.mxu1 %v6715_v46  ;;  %v2797_v43 = vadd.f32 %v2796_v48, %v5769_v13  ;;  %v2909_v2 = vpop.f32.mrb[2].mxu1  ;;  %4333 = vmatprep.subr.bf16.mxu0 %v6741_v19  ;;  %v2798_v14 = vpop.f32.mrb[3].mxu0  ;;  %v3612_v24 = vmax.f32 %v2793_v27, 0.0  ;;  %v7657_v48 = vld [vmem:[#allocation50_spill] sm:$0xff] }
 0xa16   :  { %v2910_v59 = vadd.f32 %v2909_v2, %v5769_v13  ;;  %4374 = vmatprep.subr.bf16.mxu1 %v6744_v29  ;;  %v2799_v52 = vadd.f32 %v2798_v14, %v5769_v13  ;;  %v2911_v0 = vpop.f32.mrb[3].mxu1  ;;  %v3614_v16 = vmax.f32 %v2906_v33, 0.0  ;;  %v3613_v41 = vmax.f32 %v2795_v22, 0.0  ;;  %v7656_v29 = vld [vmem:[#allocation53_spill] sm:$0xff] }
 0xa17   :  { %v3644_v20 = vmax.f32 %v2797_v43, 0.0  ;;  %v2912_v56 = vadd.f32 %v2911_v0, %v5769_v13  ;;  %v3615_v57 = vmax.f32 %v2908_v47, 0.0 }
 0xa18   :  { %v3646_v46 = vmax.f32 %v2910_v59, 0.0  ;;  %v3645_v32 = vmax.f32 %v2799_v52, 0.0  ;;  %4334 = vmatpush1.bf16.msra.mxu0 %v6735_v30  ;;  %v7658_v52 = vld [vmem:[#allocation47_spill] sm:$0xff] }
 0xa19   :  { %v7016_v19 = vpack.c.bf16 %v3644_v20, %v3612_v24  ;;  %v3647_v4 = vmax.f32 %v2912_v56, 0.0  ;;  %4375 = vmatpush1.bf16.msra.mxu1 %v7655_v8  ;;  %4335 = vmatprep.subr.bf16.mxu0 %v7656_v29  ;;  %v7659_v20 = vld [vmem:[#allocation52_spill] sm:$0xff] }
 0xa1a   :  { %v7020_v53 = vpack.c.bf16 %v3646_v46, %v3614_v16  ;;  %v7022_v27 = vpack.c.bf16 %v3645_v32, %v3613_v41  ;;  %4376 = vmatprep.subr.bf16.mxu1 %v7657_v48  ;;  %v2948_v33 = vpop.f32.mrb[4].mxu0  ;;  %v7660_v32 = vld [vmem:[#allocation57_spill] sm:$0xff] }
 0xa1b   :  { %v7025_v22 = vpack.c.bf16 %v3647_v4, %v3615_v57  ;;  %v2949_v43 = vadd.f32 %v2948_v33, %v5554_v58  ;;  %v3061_v30 = vpop.f32.mrb[4].mxu1  ;;  %v2950_v47 = vpop.f32.mrb[5].mxu0 }
 0xa1c   :  { %v3062_v2 = vadd.f32 %v3061_v30, %v5554_v58  ;;  %v2951_v14 = vadd.f32 %v2950_v47, %v5554_v58  ;;  %v3063_v59 = vpop.f32.mrb[5].mxu1  ;;  %4336 = vmatpush1.bf16.msra.mxu0 %v7658_v52  ;;  %v2952_v0 = vpop.f32.mrb[6].mxu0 }
 0xa1d   :  { %v3064_v24 = vadd.f32 %v3063_v59, %v5554_v58  ;;  %4377 = vmatpush1.bf16.msra.mxu1 %v7659_v20  ;;  %v2953_v56 = vadd.f32 %v2952_v0, %v5557_v62  ;;  %v3065_v16 = vpop.f32.mrb[6].mxu1  ;;  %4337 = vmatprep.subr.bf16.mxu0 %v6793_v23  ;;  %v2954_v41 = vpop.f32.mrb[7].mxu0  ;;  %v3168_v8 = vmax.f32 %v2949_v43, 0.0  ;;  %v7661_v59 = vld [vmem:[#allocation51_spill] sm:$0xff]  ;;  %v7662_v20 = vld [vmem:[#allocation56_spill] sm:$0xff] }
 0xa1e   :  { %v3066_v46 = vadd.f32 %v3065_v16, %v5557_v62  ;;  %4378 = vmatprep.subr.bf16.mxu1 %v7660_v32  ;;  %v2955_v57 = vadd.f32 %v2954_v41, %v5557_v62  ;;  %v3067_v4 = vpop.f32.mrb[7].mxu1  ;;  %v3170_v58 = vmax.f32 %v3062_v2, 0.0  ;;  %v3169_v33 = vmax.f32 %v2951_v14, 0.0 }
 0xa1f   :  { %v3200_v29 = vmax.f32 %v2953_v56, 0.0  ;;  %v3068_v48 = vadd.f32 %v3067_v4, %v5557_v62  ;;  %v3171_v52 = vmax.f32 %v3064_v24, 0.0 }
 0xa20   :  { %v3202_v30 = vmax.f32 %v3066_v46, 0.0  ;;  %v3201_v47 = vmax.f32 %v2955_v57, 0.0  ;;  %4338 = vmatpush1.bf16.msra.mxu0 %v7661_v59 }
 0xa21   :  { %v7040_v23 = vpack.c.bf16 %v3200_v29, %v3168_v8  ;;  %v3203_v0 = vmax.f32 %v3068_v48, 0.0  ;;  %4379 = vmatpush1.bf16.msra.mxu1 %v7662_v20  ;;  %4339 = vmatprep.subr.bf16.mxu0 %v6817_v61 }
 0xa22   :  { %v7044_v16 = vpack.c.bf16 %v3202_v30, %v3170_v58  ;;  %v7046_v43 = vpack.c.bf16 %v3201_v47, %v3169_v33  ;;  %4380 = vmatprep.subr.bf16.mxu1 %v6820_v36  ;;  %v2958_v62 = vpop.f32.mrb[8].mxu0 }
 0xa23   :  { %v7049_v2 = vpack.c.bf16 %v3203_v0, %v3171_v52  ;;  %v2959_v14 = vadd.f32 %v2958_v62, %v5572_v11  ;;  %v3071_v56 = vpop.f32.mrb[8].mxu1  ;;  %v2960_v24 = vpop.f32.mrb[9].mxu0 }
 0xa24   :  { %v3072_v41 = vadd.f32 %v3071_v56, %v5572_v11  ;;  %v2961_v46 = vadd.f32 %v2960_v24, %v5572_v11  ;;  %v3073_v32 = vpop.f32.mrb[9].mxu1  ;;  %4340 = vmatpush1.bf16.msra.mxu0 %v6811_v37  ;;  %v2962_v61 = vpop.f32.mrb[10].mxu0 }
 0xa25   :  { %v3074_v57 = vadd.f32 %v3073_v32, %v5572_v11  ;;  %4381 = vmatpush1.bf16.msra.mxu1 %v6815_v50  ;;  %v2963_v36 = vadd.f32 %v2962_v61, %v5577_v5  ;;  %v3075_v4 = vpop.f32.mrb[10].mxu1  ;;  %4407 = vmatprep.subr.bf16.mxu0 %v6841_v7  ;;  %v2964_v8 = vpop.f32.mrb[11].mxu0  ;;  %v3232_v33 = vmax.f32 %v2959_v14, 0.0 }
 0xa26   :  { %v3076_v29 = vadd.f32 %v3075_v4, %v5577_v5  ;;  %4448 = vmatprep.subr.bf16.mxu1 %v6844_v60  ;;  %v2965_v48 = vadd.f32 %v2964_v8, %v5577_v5  ;;  %v3077_v58 = vpop.f32.mrb[11].mxu1  ;;  %v3234_v11 = vmax.f32 %v3072_v41, 0.0  ;;  %v3233_v50 = vmax.f32 %v2961_v46, 0.0 }
 0xa27   :  { %v3264_v37 = vmax.f32 %v2963_v36, 0.0  ;;  %v3078_v30 = vadd.f32 %v3077_v58, %v5577_v5  ;;  %4358 = vmatmul.mubr.bf16.vlgmr.msra.gmra.mrb[56].mxu0 %v6961_v12  ;;  %v3235_v7 = vmax.f32 %v3074_v57, 0.0  ;;  %v7663_v36 = vld [vmem:[#allocation60_spill] sm:$0xff] }
 0xa28   :  { %v3266_v47 = vmax.f32 %v3076_v29, 0.0  ;;  %v3265_v59 = vmax.f32 %v2965_v48, 0.0  ;;  %4399 = vmatmul.mubr.bf16.vlgmr.msra.gmra.mrb[56].mxu1 %v6961_v12  ;;  %4408 = vmatpush1.bf16.msra.mxu0 %v6835_v40 }
 0xa29   :  { %v7066_v52 = vpack.c.bf16 %v3264_v37, %v3232_v33  ;;  %v3267_v60 = vmax.f32 %v3078_v30, 0.0  ;;  %4449 = vmatpush1.bf16.msra.mxu1 %v6839_v44  ;;  %4409 = vmatprep.subr.bf16.mxu0 %v6867_v9  ;;  %v7664_v37 = vld [vmem:[#allocation54_spill] sm:$0xff] }
 0xa2a   :  { %v7070_v0 = vpack.c.bf16 %v3266_v47, %v3234_v11  ;;  %v7072_v5 = vpack.c.bf16 %v3265_v59, %v3233_v50  ;;  %4450 = vmatprep.subr.bf16.mxu1 %v6871_v42  ;;  %v2968_v20 = vpop.f32.mrb[12].mxu0  ;;  %4439 = vmatprep.mubr.bf16.mxu0 %v7380_v35  ;;  %v7665_v50 = vld [vmem:[#allocation55_spill] sm:$0xff] }
 0xa2b   :  { %v7076_v62 = vpack.c.bf16 %v3267_v60, %v3235_v7  ;;  %v2969_v40 = vadd.f32 %v2968_v20, %v5613_v1  ;;  %v3081_v14 = vpop.f32.mrb[12].mxu1  ;;  %v2970_v56 = vpop.f32.mrb[13].mxu0  ;;  %4480 = vmatprep.mubr.bf16.mxu1 %v7380_v35  ;;  %v7666_v60 = vld [vmem:[#allocation3_spill] sm:$0xff] }
 0xa2c   :  { %v3082_v44 = vadd.f32 %v3081_v14, %v5613_v1  ;;  %v2971_v9 = vadd.f32 %v2970_v56, %v5613_v1  ;;  %v3083_v24 = vpop.f32.mrb[13].mxu1  ;;  %4410 = vmatpush1.bf16.msra.mxu0 %v6861_v28  ;;  %v2972_v41 = vpop.f32.mrb[14].mxu0 }
 0xa2d   :  { %v3084_v42 = vadd.f32 %v3083_v24, %v5613_v1  ;;  %4451 = vmatpush1.bf16.msra.mxu1 %v6865_v38  ;;  %v2973_v46 = vadd.f32 %v2972_v41, %v5627_v17  ;;  %v3085_v32 = vpop.f32.mrb[14].mxu1  ;;  %4411 = vmatprep.subr.bf16.mxu0 %v6893_v54  ;;  %v2974_v61 = vpop.f32.mrb[15].mxu0  ;;  %v3296_v29 = vmax.f32 %v2969_v40, 0.0  ;;  %v7667_v41 = vld [vmem:[#allocation61_spill] sm:$0xff] }
 0xa2e   :  { %v3086_v57 = vadd.f32 %v3085_v32, %v5627_v17  ;;  %4452 = vmatprep.subr.bf16.mxu1 %v7663_v36  ;;  %v2975_v4 = vadd.f32 %v2974_v61, %v5627_v17  ;;  %v3087_v8 = vpop.f32.mrb[15].mxu1  ;;  %v3298_v1 = vmax.f32 %v3082_v44, 0.0  ;;  %v3297_v58 = vmax.f32 %v2971_v9, 0.0 }
 0xa2f   :  { %v3328_v28 = vmax.f32 %v2973_v46, 0.0  ;;  %v3088_v48 = vadd.f32 %v3087_v8, %v5627_v17  ;;  %v3299_v30 = vmax.f32 %v3084_v42, 0.0 }
 0xa30   :  { %v3330_v38 = vmax.f32 %v3086_v57, 0.0  ;;  %v3329_v33 = vmax.f32 %v2975_v4, 0.0  ;;  %4412 = vmatpush1.bf16.msra.mxu0 %v7664_v37 }
 0xa31   :  { %v7092_v54 = vpack.c.bf16 %v3328_v28, %v3296_v29  ;;  %v3331_v11 = vmax.f32 %v3088_v48, 0.0  ;;  %4453 = vmatpush1.bf16.msra.mxu1 %v7665_v50  ;;  %4413 = vmatprep.subr.bf16.mxu0 %v6917_v45 }
 0xa32   :  { %v7096_v47 = vpack.c.bf16 %v3330_v38, %v3298_v1  ;;  %v7098_v59 = vpack.c.bf16 %v3329_v33, %v3297_v58  ;;  %4454 = vmatprep.subr.bf16.mxu1 %v6920_v15  ;;  %v2978_v17 = vpop.f32.mrb[16].mxu0  ;;  %v7668_v15 = vld [vmem:[#allocation4_spill] sm:$0xff] }
 0xa33   :  { %v7101_v7 = vpack.c.bf16 %v3331_v11, %v3299_v30  ;;  %v2979_v20 = vadd.f32 %v2978_v17, %v7666_v60  ;;  %v3091_v40 = vpop.f32.mrb[16].mxu1  ;;  %v2980_v14 = vpop.f32.mrb[17].mxu0  ;;  %v7669_v11 = vld [vmem:[#allocation5_spill] sm:$0xff] }
 0xa34   :  { %v3092_v56 = vadd.f32 %v3091_v40, %v7666_v60  ;;  %v2981_v44 = vadd.f32 %v2980_v14, %v7666_v60  ;;  %v3093_v9 = vpop.f32.mrb[17].mxu1  ;;  %4414 = vmatpush1.bf16.msra.mxu0 %v6911_v39  ;;  %v2982_v45 = vpop.f32.mrb[18].mxu0  ;;  %v7670_v14 = vld [vmem:[#allocation58_spill] sm:$0xff] }
 0xa35   :  { %v3094_v24 = vadd.f32 %v3093_v9, %v7666_v60  ;;  %4455 = vmatpush1.bf16.msra.mxu1 %v7667_v41  ;;  %v2983_v42 = vadd.f32 %v2982_v45, %v7668_v15  ;;  %v3095_v46 = vpop.f32.mrb[18].mxu1  ;;  %4415 = vmatprep.subr.bf16.mxu0 %v6941_v26  ;;  %v2984_v32 = vpop.f32.mrb[19].mxu0  ;;  %v3360_v4 = vmax.f32 %v2979_v20, 0.0 }
 0xa36   :  { %v3096_v61 = vadd.f32 %v3095_v46, %v7668_v15  ;;  %4456 = vmatprep.subr.bf16.mxu1 %v6944_v55  ;;  %v2985_v57 = vadd.f32 %v2984_v32, %v7668_v15  ;;  %v3097_v36 = vpop.f32.mrb[19].mxu1  ;;  %v3362_v29 = vmax.f32 %v3092_v56, 0.0  ;;  %v3361_v28 = vmax.f32 %v2981_v44, 0.0 }
 0xa37   :  { %v3392_v39 = vmax.f32 %v2983_v42, 0.0  ;;  %v3098_v8 = vadd.f32 %v3097_v36, %v7668_v15  ;;  %v3363_v58 = vmax.f32 %v3094_v24, 0.0 }
 0xa38   :  { %v3394_v48 = vmax.f32 %v3096_v61, 0.0  ;;  %v3393_v1 = vmax.f32 %v2985_v57, 0.0  ;;  %4416 = vmatpush1.bf16.msra.mxu0 %v6935_v10 }
 0xa39   :  { %v7116_v26 = vpack.c.bf16 %v3392_v39, %v3360_v4  ;;  %v3395_v38 = vmax.f32 %v3098_v8, 0.0  ;;  %4457 = vmatpush1.bf16.msra.mxu1 %v6939_v63  ;;  %4417 = vmatprep.subr.bf16.mxu0 %v6972_v25 }
 0xa3a   :  { %v7120_v55 = vpack.c.bf16 %v3394_v48, %v3362_v29  ;;  %v7122_v33 = vpack.c.bf16 %v3393_v1, %v3361_v28  ;;  %4458 = vmatprep.subr.bf16.mxu1 %v6976_v6  ;;  %v2988_v37 = vpop.f32.mrb[20].mxu0  ;;  %v7671_v6 = vld [vmem:[#allocation7_spill] sm:$0xff]  ;;  %v7672_v28 = vld [vmem:[#allocation9_spill] sm:$0xff] }
 0xa3b   :  { %v7125_v30 = vpack.c.bf16 %v3395_v38, %v3363_v58  ;;  %v2989_v50 = vadd.f32 %v2988_v37, %v7669_v11  ;;  %v3101_v10 = vpop.f32.mrb[20].mxu1  ;;  %v2990_v17 = vpop.f32.mrb[21].mxu0 }
 0xa3c   :  { %v3102_v60 = vadd.f32 %v3101_v10, %v7669_v11  ;;  %v2991_v20 = vadd.f32 %v2990_v17, %v7669_v11  ;;  %v3103_v63 = vpop.f32.mrb[21].mxu1  ;;  %4418 = vmatpush1.bf16.msra.mxu0 %v6966_v49  ;;  %v2992_v25 = vpop.f32.mrb[22].mxu0 }
 0xa3d   :  { %v3104_v40 = vadd.f32 %v3103_v63, %v7669_v11  ;;  %4459 = vmatpush1.bf16.msra.mxu1 %v7670_v14  ;;  %v2993_v56 = vadd.f32 %v2992_v25, %v7671_v6  ;;  %v3105_v44 = vpop.f32.mrb[22].mxu1  ;;  %4419 = vmatprep.subr.bf16.mxu0 %v6998_v51  ;;  %v2994_v9 = vpop.f32.mrb[23].mxu0  ;;  %v3424_v15 = vmax.f32 %v2989_v50, 0.0 }
 0xa3e   :  { %v3106_v45 = vadd.f32 %v3105_v44, %v7671_v6  ;;  %4460 = vmatprep.subr.bf16.mxu1 %v7001_v21  ;;  %v2995_v24 = vadd.f32 %v2994_v9, %v7671_v6  ;;  %v3107_v41 = vpop.f32.mrb[23].mxu1  ;;  %v3426_v46 = vmax.f32 %v3102_v60, 0.0  ;;  %v3425_v32 = vmax.f32 %v2991_v20, 0.0 }
 0xa3f   :  { %v3456_v49 = vmax.f32 %v2993_v56, 0.0  ;;  %v3108_v42 = vadd.f32 %v3107_v41, %v7671_v6  ;;  %v3427_v36 = vmax.f32 %v3104_v40, 0.0 }
 0xa40   :  { %v3458_v61 = vmax.f32 %v3106_v45, 0.0  ;;  %v3457_v57 = vmax.f32 %v2995_v24, 0.0  ;;  %4420 = vmatpush1.bf16.msra.mxu0 %v6992_v34 }
 0xa41   :  { %v7140_v51 = vpack.c.bf16 %v3456_v49, %v3424_v15  ;;  %v3459_v4 = vmax.f32 %v3108_v42, 0.0  ;;  %4461 = vmatpush1.bf16.msra.mxu1 %v6996_v18  ;;  %4421 = vmatprep.subr.bf16.mxu0 %v7022_v27 }
 0xa42   :  { %v7144_v21 = vpack.c.bf16 %v3458_v61, %v3426_v46  ;;  %v7146_v39 = vpack.c.bf16 %v3457_v57, %v3425_v32  ;;  %4462 = vmatprep.subr.bf16.mxu1 %v7025_v22  ;;  %v2998_v8 = vpop.f32.mrb[24].mxu0  ;;  %v7673_v22 = vld [vmem:[#allocation11_spill] sm:$0xff] }
 0xa43   :  { %v7149_v29 = vpack.c.bf16 %v3459_v4, %v3427_v36  ;;  %v2999_v48 = vadd.f32 %v2998_v8, %v7672_v28  ;;  %v3111_v34 = vpop.f32.mrb[24].mxu1  ;;  %v3000_v1 = vpop.f32.mrb[25].mxu0 }
 0xa44   :  { %v3112_v58 = vadd.f32 %v3111_v34, %v7672_v28  ;;  %v3001_v38 = vadd.f32 %v3000_v1, %v7672_v28  ;;  %v3113_v18 = vpop.f32.mrb[25].mxu1  ;;  %4422 = vmatpush1.bf16.msra.mxu0 %v7016_v19  ;;  %v3002_v27 = vpop.f32.mrb[26].mxu0 }
 0xa45   :  { %v3114_v37 = vadd.f32 %v3113_v18, %v7672_v28  ;;  %4463 = vmatpush1.bf16.msra.mxu1 %v7020_v53  ;;  %v3003_v11 = vadd.f32 %v3002_v27, %v7673_v22  ;;  %v3115_v50 = vpop.f32.mrb[26].mxu1  ;;  %4489 = vmatprep.subr.bf16.mxu0 %v7046_v43  ;;  %v3004_v10 = vpop.f32.mrb[27].mxu0  ;;  %v3488_v63 = vmax.f32 %v2999_v48, 0.0 }
 0xa46   :  { %v3116_v17 = vadd.f32 %v3115_v50, %v7673_v22  ;;  %4530 = vmatprep.subr.bf16.mxu1 %v7049_v2  ;;  %v3005_v60 = vadd.f32 %v3004_v10, %v7673_v22  ;;  %v3117_v20 = vpop.f32.mrb[27].mxu1  ;;  %v3490_v53 = vmax.f32 %v3112_v58, 0.0  ;;  %v3489_v40 = vmax.f32 %v3001_v38, 0.0 }
 0xa47   :  { %v3520_v19 = vmax.f32 %v3003_v11, 0.0  ;;  %v3118_v25 = vadd.f32 %v3117_v20, %v7673_v22  ;;  %4440 = vmatmul.mubr.bf16.vlgmr.msra.gmra.mrb[60].mxu0 %v6961_v12  ;;  %v3491_v43 = vmax.f32 %v3114_v37, 0.0 }
 0xa48   :  { %v3522_v14 = vmax.f32 %v3116_v17, 0.0  ;;  %v3521_v6 = vmax.f32 %v3005_v60, 0.0  ;;  %4481 = vmatmul.mubr.bf16.vlgmr.msra.gmra.mrb[60].mxu1 %v6961_v12  ;;  %4490 = vmatpush1.bf16.msra.mxu0 %v7040_v23  ;;  %v7674_v23 = vld [vmem:[#allocation15_spill] sm:$0xff] }
 0xa49   :  { %v7166_v56 = vpack.c.bf16 %v3520_v19, %v3488_v63  ;;  %v3523_v2 = vmax.f32 %v3118_v25, 0.0  ;;  %4531 = vmatpush1.bf16.msra.mxu1 %v7044_v16  ;;  %4491 = vmatprep.subr.bf16.mxu0 %v7072_v5 }
 0xa4a   :  { %v7170_v44 = vpack.c.bf16 %v3522_v14, %v3490_v53  ;;  %v7172_v9 = vpack.c.bf16 %v3521_v6, %v3489_v40  ;;  %4532 = vmatprep.subr.bf16.mxu1 %v7076_v62  ;;  %v3008_v45 = vpop.f32.mrb[28].mxu0  ;;  %4521 = vmatprep.mubr.bf16.mxu0 %v7380_v35 }
 0xa4b   :  { %v7176_v24 = vpack.c.bf16 %v3523_v2, %v3491_v43  ;;  %v3009_v41 = vadd.f32 %v3008_v45, %v7674_v23  ;;  %v3121_v15 = vpop.f32.mrb[28].mxu1  ;;  %v3010_v49 = vpop.f32.mrb[29].mxu0  ;;  %4562 = vmatprep.mubr.bf16.mxu1 %v7380_v35 }
 0xa4c   :  { %v3122_v16 = vadd.f32 %v3121_v15, %v7674_v23  ;;  %v3011_v5 = vadd.f32 %v3010_v49, %v7674_v23  ;;  %v3123_v42 = vpop.f32.mrb[29].mxu1  ;;  %4492 = vmatpush1.bf16.msra.mxu0 %v7066_v52  ;;  %v3012_v46 = vpop.f32.mrb[30].mxu0 }
 0xa4d   :  { %v3124_v62 = vadd.f32 %v3123_v42, %v7674_v23  ;;  %4533 = vmatpush1.bf16.msra.mxu1 %v7070_v0  ;;  %v3013_v32 = vadd.f32 %v3012_v46, %v5740_v3  ;;  %v3125_v61 = vpop.f32.mrb[30].mxu1  ;;  %4493 = vmatprep.subr.bf16.mxu0 %v7098_v59  ;;  %v3014_v57 = vpop.f32.mrb[31].mxu0  ;;  %v3552_v8 = vmax.f32 %v3009_v41, 0.0 }
 0xa4e   :  { %v3126_v35 = vadd.f32 %v3125_v61, %v5740_v3  ;;  %4534 = vmatprep.subr.bf16.mxu1 %v7101_v7  ;;  %v3015_v36 = vadd.f32 %v3014_v57, %v5740_v3  ;;  %v3127_v4 = vpop.f32.mrb[31].mxu1  ;;  %v3554_v48 = vmax.f32 %v3122_v16, 0.0  ;;  %v3553_v34 = vmax.f32 %v3011_v5, 0.0 }
 0xa4f   :  { %v3584_v52 = vmax.f32 %v3013_v32, 0.0  ;;  %v3128_v28 = vadd.f32 %v3127_v4, %v5740_v3  ;;  %v3555_v58 = vmax.f32 %v3124_v62, 0.0 }
 0xa50   :  { %v3586_v0 = vmax.f32 %v3126_v35, 0.0  ;;  %v3585_v1 = vmax.f32 %v3015_v36, 0.0  ;;  %4494 = vmatpush1.bf16.msra.mxu0 %v7092_v54 }
 0xa51   :  { %v7192_v59 = vpack.c.bf16 %v3584_v52, %v3552_v8  ;;  %v3587_v38 = vmax.f32 %v3128_v28, 0.0  ;;  %4535 = vmatpush1.bf16.msra.mxu1 %v7096_v47  ;;  %4495 = vmatprep.subr.bf16.mxu0 %v7122_v33 }
 0xa52   :  { %v3874_v7 = vpack.c.bf16 %v3586_v0, %v3554_v48  ;;  %v3873_v18 = vpack.c.bf16 %v3585_v1, %v3553_v34  ;;  %4536 = vmatprep.subr.bf16.mxu1 %v7125_v30  ;;  %v3018_v27 = vpop.f32.mrb[32].mxu0 }
 0xa53   :  { %v3875_v3 = vpack.c.bf16 %v3587_v38, %v3555_v58  ;;  %v3019_v37 = vadd.f32 %v3018_v27, %v5764_v31  ;;  %v3131_v22 = vpop.f32.mrb[32].mxu1  ;;  %v3020_v11 = vpop.f32.mrb[33].mxu0 }
 0xa54   :  { %v3132_v54 = vadd.f32 %v3131_v22, %v5764_v31  ;;  %v3021_v50 = vadd.f32 %v3020_v11, %v5764_v31  ;;  %v3133_v10 = vpop.f32.mrb[33].mxu1  ;;  %4496 = vmatpush1.bf16.msra.mxu0 %v7116_v26  ;;  %v3022_v47 = vpop.f32.mrb[34].mxu0 }
 0xa55   :  { %v3134_v33 = vadd.f32 %v3133_v10, %v5764_v31  ;;  %4537 = vmatpush1.bf16.msra.mxu1 %v7120_v55  ;;  %v3023_v30 = vadd.f32 %v3022_v47, %v5769_v13  ;;  %v3135_v17 = vpop.f32.mrb[34].mxu1  ;;  %4497 = vmatprep.subr.bf16.mxu0 %v7146_v39  ;;  %v3024_v60 = vpop.f32.mrb[35].mxu0  ;;  %v3616_v25 = vmax.f32 %v3019_v37, 0.0 }
 0xa56   :  { %v3136_v20 = vadd.f32 %v3135_v17, %v5769_v13  ;;  %4538 = vmatprep.subr.bf16.mxu1 %v7149_v29  ;;  %v3025_v63 = vadd.f32 %v3024_v60, %v5769_v13  ;;  %v3137_v19 = vpop.f32.mrb[35].mxu1  ;;  %v3618_v31 = vmax.f32 %v3132_v54, 0.0  ;;  %v3617_v40 = vmax.f32 %v3021_v50, 0.0  ;;  %v7212_v29 = vpop.permute.xlu0 %3912 }
 0xa57   :  { %v3648_v26 = vmax.f32 %v3023_v30, 0.0  ;;  %v3138_v53 = vadd.f32 %v3137_v19, %v5769_v13  ;;  %v3619_v6 = vmax.f32 %v3134_v33, 0.0 }
 0xa58   :  { %v3650_v55 = vmax.f32 %v3136_v20, 0.0  ;;  %v3649_v14 = vmax.f32 %v3025_v63, 0.0  ;;  %4498 = vmatpush1.bf16.msra.mxu0 %v7140_v51 }
 0xa59   :  { %v3904_v39 = vpack.c.bf16 %v3648_v26, %v3616_v25  ;;  %v3651_v43 = vmax.f32 %v3138_v53, 0.0  ;;  %4539 = vmatpush1.bf16.msra.mxu1 %v7144_v21  ;;  %4499 = vmatprep.subr.bf16.mxu0 %v7172_v9 }
 0xa5a   :  { %v3906_v2 = vpack.c.bf16 %v3650_v55, %v3618_v31  ;;  %v3905_v45 = vpack.c.bf16 %v3649_v14, %v3617_v40  ;;  %4540 = vmatprep.subr.bf16.mxu1 %v7176_v24  ;;  %v3949_v13 = vpop.f32.mrb[36].mxu0 }
 0xa5b   :  { %v3907_v23 = vpack.c.bf16 %v3651_v43, %v3619_v6  ;;  %v3950_v41 = vadd.f32 %v3949_v13, %v7212_v29  ;;  %v3990_v15 = vpop.f32.mrb[36].mxu1  ;;  %v3951_v49 = vpop.f32.mrb[37].mxu0 }
 0xa5c   :  { %v3991_v51 = vadd.f32 %v3990_v15, %v7212_v29  ;;  %v3952_v16 = vadd.f32 %v3951_v49, %v7212_v29  ;;  %v3992_v5 = vpop.f32.mrb[37].mxu1  ;;  %4500 = vmatpush1.bf16.msra.mxu0 %v7166_v56  ;;  %v3953_v21 = vpop.f32.mrb[38].mxu0 }
 0xa5d   :  { %4571 = vst [vmem:[%s7357_s9] sm:$0xff] %v3950_v41  ;;  %v3993_v9 = vadd.f32 %v3992_v5, %v7212_v29  ;;  %4541 = vmatpush1.bf16.msra.mxu1 %v7170_v44  ;;  %4501 = vmatprep.subr.bf16.mxu0 %v3873_v18  ;;  %v3994_v24 = vpop.f32.mrb[38].mxu1  ;;  %v3954_v42 = vpop.f32.mrb[39].mxu0 }
 0xa5e   :  { %4573 = vst [vmem:[%s7357_s9 + $0x10] sm:$0xff] %v3991_v51  ;;  %4572 = vst [vmem:[%s7357_s9 + $0x8] sm:$0xff] %v3952_v16  ;;  %4542 = vmatprep.subr.bf16.mxu1 %v3875_v3  ;;  %v3995_v56 = vpop.f32.mrb[39].mxu1 }
 0xa5f   :  { %4574 = vst [vmem:[%s7357_s9 + $0x18] sm:$0xff] %v3993_v9 }
 0xa60   :  { %4502 = vmatpush1.bf16.msra.mxu0 %v7192_v59 }
 0xa61   :  { %4543 = vmatpush1.bf16.msra.mxu1 %v3874_v7  ;;  %4503 = vmatprep.subr.bf16.mxu0 %v3905_v45 }
 0xa62   :  { %4544 = vmatprep.subr.bf16.mxu1 %v3907_v23 }
 0xa64   :  { %4504 = vmatpush1.bf16.msra.mxu0 %v3904_v39 }
 0xa65   :  { %4545 = vmatpush1.bf16.msra.mxu1 %v3906_v2 }
 0xa67   :  { %4522 = vmatmul.mubr.bf16.vlgmr.msra.gmra.mrb[64].mxu0 %v6961_v12 }
 0xa68   :  { %4563 = vmatmul.mubr.bf16.vlgmr.msra.gmra.mrb[64].mxu1 %v6961_v12 }
 0xa7a   :  { %v4031_v44 = vpop.f32.mrb[40].mxu0 }
 0xa7b   :  { %v4032_v46 = vadd.f32 %v4031_v44, %v7212_v29  ;;  %v4072_v62 = vpop.f32.mrb[40].mxu1  ;;  %v4033_v32 = vpop.f32.mrb[41].mxu0 }
 0xa7c   :  { %v4073_v61 = vadd.f32 %v4072_v62, %v7212_v29  ;;  %v4034_v57 = vadd.f32 %v4033_v32, %v7212_v29  ;;  %v4074_v35 = vpop.f32.mrb[41].mxu1  ;;  %v4035_v36 = vpop.f32.mrb[42].mxu0 }
 0xa7d   :  { %4575 = vst [vmem:[%s7357_s9 + $0x20] sm:$0xff] %v4032_v46  ;;  %v4075_v4 = vadd.f32 %v4074_v35, %v7212_v29  ;;  %v4076_v8 = vpop.f32.mrb[42].mxu1  ;;  %v4036_v52 = vpop.f32.mrb[43].mxu0 }
 0xa7e   :  { %4577 = vst [vmem:[%s7357_s9 + $0x30] sm:$0xff] %v4073_v61  ;;  %4576 = vst [vmem:[%s7357_s9 + $0x28] sm:$0xff] %v4034_v57  ;;  %v4077_v12 = vpop.f32.mrb[43].mxu1 }
 0xa7f   :  { %4578 = vst [vmem:[%s7357_s9 + $0x38] sm:$0xff] %v4075_v4 }
 0xa9a   :  { %v4113_v28 = vpop.f32.mrb[44].mxu0 }
 0xa9b   :  { %v4114_v48 = vadd.f32 %v4113_v28, %v7212_v29  ;;  %v4154_v34 = vpop.f32.mrb[44].mxu1  ;;  %v4115_v0 = vpop.f32.mrb[45].mxu0 }
 0xa9c   :  { %v4155_v1 = vadd.f32 %v4154_v34, %v7212_v29  ;;  %v4116_v58 = vadd.f32 %v4115_v0, %v7212_v29  ;;  %v4156_v59 = vpop.f32.mrb[45].mxu1  ;;  %v4117_v38 = vpop.f32.mrb[46].mxu0 }
 0xa9d   :  { %4579 = vst [vmem:[%s7357_s9 + $0x40] sm:$0xff] %v4114_v48  ;;  %v4157_v7 = vadd.f32 %v4156_v59, %v7212_v29  ;;  %v4158_v18 = vpop.f32.mrb[46].mxu1  ;;  %v4118_v27 = vpop.f32.mrb[47].mxu0 }
 0xa9e   :  { %4581 = vst [vmem:[%s7357_s9 + $0x50] sm:$0xff] %v4155_v1  ;;  %4580 = vst [vmem:[%s7357_s9 + $0x48] sm:$0xff] %v4116_v58  ;;  %v4159_v3 = vpop.f32.mrb[47].mxu1 }
 0xa9f   :  { %4582 = vst [vmem:[%s7357_s9 + $0x58] sm:$0xff] %v4157_v7 }
 0xaba   :  { %v4195_v37 = vpop.f32.mrb[48].mxu0 }
 0xabb   :  { %v4196_v22 = vadd.f32 %v4195_v37, %v7212_v29  ;;  %v4236_v11 = vpop.f32.mrb[48].mxu1  ;;  %v4197_v54 = vpop.f32.mrb[49].mxu0 }
 0xabc   :  { %v4237_v50 = vadd.f32 %v4236_v11, %v7212_v29  ;;  %v4198_v10 = vadd.f32 %v4197_v54, %v7212_v29  ;;  %v4238_v47 = vpop.f32.mrb[49].mxu1  ;;  %v4199_v33 = vpop.f32.mrb[50].mxu0 }
 0xabd   :  { %4583 = vst [vmem:[%s7357_s9 + $0x60] sm:$0xff] %v4196_v22  ;;  %v4239_v30 = vadd.f32 %v4238_v47, %v7212_v29  ;;  %v4240_v17 = vpop.f32.mrb[50].mxu1  ;;  %v4200_v60 = vpop.f32.mrb[51].mxu0 }
 0xabe   :  { %4585 = vst [vmem:[%s7357_s9 + $0x70] sm:$0xff] %v4237_v50  ;;  %4584 = vst [vmem:[%s7357_s9 + $0x68] sm:$0xff] %v4198_v10  ;;  %v4241_v20 = vpop.f32.mrb[51].mxu1 }
 0xabf   :  { %4586 = vst [vmem:[%s7357_s9 + $0x78] sm:$0xff] %v4239_v30 }
 0xada   :  { %v4277_v63 = vpop.f32.mrb[52].mxu0 }
 0xadb   :  { %v4278_v19 = vadd.f32 %v4277_v63, %v7212_v29  ;;  %v4318_v25 = vpop.f32.mrb[52].mxu1  ;;  %v4279_v26 = vpop.f32.mrb[53].mxu0 }
 0xadc   :  { %v4319_v53 = vadd.f32 %v4318_v25, %v7212_v29  ;;  %v4280_v31 = vadd.f32 %v4279_v26, %v7212_v29  ;;  %v4320_v40 = vpop.f32.mrb[53].mxu1  ;;  %v4281_v55 = vpop.f32.mrb[54].mxu0 }
 0xadd   :  { %4587 = vst [vmem:[%s7357_s9 + $0x80] sm:$0xff] %v4278_v19  ;;  %v4321_v14 = vadd.f32 %v4320_v40, %v7212_v29  ;;  %v4322_v6 = vpop.f32.mrb[54].mxu1  ;;  %v4282_v39 = vpop.f32.mrb[55].mxu0 }
 0xade   :  { %4589 = vst [vmem:[%s7357_s9 + $0x90] sm:$0xff] %v4319_v53  ;;  %4588 = vst [vmem:[%s7357_s9 + $0x88] sm:$0xff] %v4280_v31  ;;  %v4323_v43 = vpop.f32.mrb[55].mxu1 }
 0xadf   :  { %4590 = vst [vmem:[%s7357_s9 + $0x98] sm:$0xff] %v4321_v14 }
 0xafa   :  { %v4359_v2 = vpop.f32.mrb[56].mxu0 }
 0xafb   :  { %v4360_v45 = vadd.f32 %v4359_v2, %v7212_v29  ;;  %v4400_v13 = vpop.f32.mrb[56].mxu1  ;;  %v4361_v23 = vpop.f32.mrb[57].mxu0 }
 0xafc   :  { %v4401_v41 = vadd.f32 %v4400_v13, %v7212_v29  ;;  %v4362_v15 = vadd.f32 %v4361_v23, %v7212_v29  ;;  %v4402_v49 = vpop.f32.mrb[57].mxu1  ;;  %v4363_v51 = vpop.f32.mrb[58].mxu0 }
 0xafd   :  { %4591 = vst [vmem:[%s7357_s9 + $0xa0] sm:$0xff] %v4360_v45  ;;  %v4403_v16 = vadd.f32 %v4402_v49, %v7212_v29  ;;  %v4404_v5 = vpop.f32.mrb[58].mxu1  ;;  %v4364_v21 = vpop.f32.mrb[59].mxu0 }
 0xafe   :  { %4593 = vst [vmem:[%s7357_s9 + $0xb0] sm:$0xff] %v4401_v41  ;;  %4592 = vst [vmem:[%s7357_s9 + $0xa8] sm:$0xff] %v4362_v15  ;;  %v4405_v9 = vpop.f32.mrb[59].mxu1 }
 0xaff   :  { %4594 = vst [vmem:[%s7357_s9 + $0xb8] sm:$0xff] %v4403_v16 }
 0xb1a   :  { %v4441_v24 = vpop.f32.mrb[60].mxu0 }
 0xb1b   :  { %v4442_v42 = vadd.f32 %v4441_v24, %v7212_v29  ;;  %v4482_v56 = vpop.f32.mrb[60].mxu1  ;;  %v4443_v44 = vpop.f32.mrb[61].mxu0 }
 0xb1c   :  { %v4483_v46 = vadd.f32 %v4482_v56, %v7212_v29  ;;  %v4444_v62 = vadd.f32 %v4443_v44, %v7212_v29  ;;  %v4484_v32 = vpop.f32.mrb[61].mxu1  ;;  %v4445_v61 = vpop.f32.mrb[62].mxu0 }
 0xb1d   :  { %4595 = vst [vmem:[%s7357_s9 + $0xc0] sm:$0xff] %v4442_v42  ;;  %v4485_v57 = vadd.f32 %v4484_v32, %v7212_v29  ;;  %v4486_v35 = vpop.f32.mrb[62].mxu1  ;;  %v4446_v36 = vpop.f32.mrb[63].mxu0 }
 0xb1e   :  { %4597 = vst [vmem:[%s7357_s9 + $0xd0] sm:$0xff] %v4483_v46  ;;  %4596 = vst [vmem:[%s7357_s9 + $0xc8] sm:$0xff] %v4444_v62  ;;  %v4487_v4 = vpop.f32.mrb[63].mxu1 }
 0xb1f   :  { %4598 = vst [vmem:[%s7357_s9 + $0xd8] sm:$0xff] %v4485_v57 }
 0xb3a   :  { %v4523_v8 = vpop.f32.mrb[64].mxu0 }
 0xb3b   :  { %v4524_v52 = vadd.f32 %v4523_v8, %v7212_v29  ;;  %v4564_v12 = vpop.f32.mrb[64].mxu1  ;;  %v4525_v28 = vpop.f32.mrb[65].mxu0 }
 0xb3c   :  { %v4565_v48 = vadd.f32 %v4564_v12, %v7212_v29  ;;  %v4526_v34 = vadd.f32 %v4525_v28, %v7212_v29  ;;  %v4566_v0 = vpop.f32.mrb[65].mxu1  ;;  %v4527_v1 = vpop.f32.mrb[66].mxu0 }
 0xb3d   :  { %4599 = vst [vmem:[%s7357_s9 + $0xe0] sm:$0xff] %v4524_v52  ;;  %v4567_v58 = vadd.f32 %v4566_v0, %v7212_v29  ;;  %v4568_v59 = vpop.f32.mrb[66].mxu1  ;;  %v4528_v38 = vpop.f32.mrb[67].mxu0 }
 0xb3e   :  { %4601 = vst [vmem:[%s7357_s9 + $0xf0] sm:$0xff] %v4565_v48  ;;  %4600 = vst [vmem:[%s7357_s9 + $0xe8] sm:$0xff] %v4526_v34  ;;  %v4569_v7 = vpop.f32.mrb[67].mxu1 }
 0xb3f   :  { %4602 = vst [vmem:[%s7357_s9 + $0xf8] sm:$0xff] %v4567_v58 }

</bundles_post_ra>
